<compile_context>
chip_gen: v7x
topology: tpu7x:2x2x1
jax: 0.10.0
libtpu: 0.0.40
codegen_flags: <defaults>
</compile_context>

<pallas_src>
import math

import jax
import jax.numpy as jnp
from jax.experimental import pallas as pl
from jax.experimental.pallas import tpu as pltpu

# ----------------------------- config ---------------------------------------
B = 2
L = 8            # sequence length of x_t
L_CTX = 8        # condition sequence length
D_X = 16
D_MODEL = 64
TIME_EMBED_MULT = 2
TIME_EMBED_DIM = D_MODEL * TIME_EMBED_MULT   # 128
NBLOCKS = 1
HEADS = 4
DIM_HEAD = 16
INNER = HEADS * DIM_HEAD                      # 64
DEPTH = 1
MULT_FF = 2
FF_INNER = int(D_MODEL * MULT_FF)             # 128
CONTEXT_DIM = 32
GN_GROUPS = 32
USE_POS_EMB = True
OUT_PAD = 128                                 # lane-dense output slab width
BP = 8                                        # padded batch dim for stats matmuls
ROWS_N = 128                                  # width of the bias/gamma rows slab
W_SLAB_N = 256                                # width of the packed weight slab


# ----------------------------- packed-parameter layout ----------------------
def _build_layout():
    """Static row offsets for the packed weight slab / rows slab."""
    w_entries = [("time_w1", D_MODEL, TIME_EMBED_DIM),
                 ("time_w2", TIME_EMBED_DIM, TIME_EMBED_DIM),
                 ("in_w", D_X, D_MODEL)]
    r_entries = [("time_b1", TIME_EMBED_DIM), ("time_b2", TIME_EMBED_DIM),
                 ("in_b", D_MODEL)]
    for i in range(NBLOCKS):
        p = f"b{i}_"
        w_entries += [(p + "conv1_w", D_MODEL, D_MODEL),
                      (p + "emb_w", TIME_EMBED_DIM, D_MODEL),
                      (p + "conv2_w", D_MODEL, D_MODEL),
                      (p + "proj_in_w", D_MODEL, INNER)]
        r_entries += [(p + "gn1_g", D_MODEL), (p + "gn1_b", D_MODEL),
                      (p + "conv1_b", D_MODEL), (p + "emb_b", D_MODEL),
                      (p + "gn2_g", D_MODEL), (p + "gn2_b", D_MODEL),
                      (p + "conv2_b", D_MODEL),
                      (p + "st_gn_g", D_MODEL), (p + "st_gn_b", D_MODEL),
                      (p + "proj_in_b", INNER)]
        for j in range(DEPTH):
            q = p + f"t{j}_"
            w_entries += [(q + "wqkv1", INNER, 3 * INNER),
                          (q + "wo1", INNER, D_MODEL),
                          (q + "wq2", INNER, INNER),
                          (q + "wkv2", CONTEXT_DIM, 2 * INNER),
                          (q + "wo2", INNER, D_MODEL),
                          (q + "geglu_w", D_MODEL, 2 * FF_INNER),
                          (q + "ff_out_w", FF_INNER, D_MODEL)]
            r_entries += [(q + "ln1_g", INNER), (q + "ln1_b", INNER),
                          (q + "bo1", D_MODEL),
                          (q + "ln2_g", INNER), (q + "ln2_b", INNER),
                          (q + "bo2", D_MODEL),
                          (q + "ln3_g", INNER), (q + "ln3_b", INNER),
                          (q + "geglu_b_val", FF_INNER),
                          (q + "geglu_b_gate", FF_INNER),
                          (q + "ff_out_b", D_MODEL)]
        w_entries += [(p + "proj_out_w", INNER, D_MODEL)]
        r_entries += [(p + "proj_out_b", D_MODEL)]
    w_entries += [("out_w", D_MODEL, OUT_PAD)]
    r_entries += [("out_gn_g", D_MODEL), ("out_gn_b", D_MODEL), ("out_b", OUT_PAD)]

    w_layout, off = {}, 0
    for name, k, n in w_entries:
        assert n <= W_SLAB_N and k % 8 == 0 or name == "in_w"
        w_layout[name] = (off, k, n)
        off += k
    w_rows = ((off + 15) // 16) * 16          # bf16 sublane-pack alignment
    r_layout = {name: (idx, n) for idx, (name, n) in enumerate(r_entries)}
    assert all(n <= ROWS_N for _, n in r_entries)
    r_rows = ((len(r_entries) + 7) // 8) * 8
    return w_layout, w_rows, r_layout, r_rows


W_LAYOUT, W_ROWS, R_LAYOUT, R_ROWS = _build_layout()


# ----------------------------- fused Pallas kernel ---------------------------
def _fused_unet_kernel(x_ref, tsin_ref, pos_ref, cond_ref, sel_ref, selT_ref,
                       gnA_ref, mself_ref, mcross_ref, rows_ref, w_ref, o_ref):
    """Whole UNet forward for one batch of (B, L) tokens, fully in VMEM."""
    f32, bf16 = jnp.float32, jnp.bfloat16

    def W(name):                                   # bf16 weight view (static slice)
        off, k, n = W_LAYOUT[name]
        return w_ref[off:off + k, :n]

    def R(name):                                   # f32 (1, n) bias/gamma row
        idx, n = R_LAYOUT[name]
        return rows_ref[idx:idx + 1, :n]

    def mm(a, w):                                  # bf16 MXU, f32 accumulate
        return jnp.dot(a.astype(bf16), w, preferred_element_type=f32)

    def mmf(a, w):                                 # f32 matmul (statistics paths)
        return jnp.dot(a, w, preferred_element_type=f32)

    def silu(v):
        return v * jax.nn.sigmoid(v)

    def gelu_tanh(z):
        # tanh-form GELU; tanh expressed via sigmoid (one EUP op).
        u = 0.7978845608028654 * (z + 0.044715 * z * z * z)
        t = 2.0 * jax.nn.sigmoid(2.0 * u) - 1.0
        return 0.5 * z * (1.0 + t)

    x = x_ref[...]          # (B*L, D_X)    f32
    tsin = tsin_ref[...]    # (BP, D_MODEL) f32 (batch rows >= B are zero)
    pos = pos_ref[...]      # (B*L, D_MODEL)
    cond = cond_ref[...]    # (B*Lc, CONTEXT_DIM)
    sel = sel_ref[...]      # (B*L, BP) one-hot batch selector (broadcast)
    selT = selT_ref[...]    # (BP, B*L) one-hot batch selector (reduce)
    gnA = gnA_ref[...]      # (C, C) folded group-average matrix (incl. 1/(L*cpg))
    mself = mself_ref[...]  # (B*L, B*L)  additive block-diagonal attention mask
    mcross = mcross_ref[...]  # (B*L, B*Lc)

    def group_norm(h2, gname, bname, eps, do_silu):
        # torch GroupNorm semantics: per (batch, group) stats over (L, C/G).
        s1 = mmf(selT, h2)                              # (BP, C) per-batch sums
        mean = mmf(sel, mmf(s1, gnA))                   # (B*L, C) group means
        d = h2 - mean
        var = mmf(mmf(selT, d * d), gnA)                # (BP, C) biased variance
        rstd = mmf(sel, jax.lax.rsqrt(var + eps))       # (B*L, C)
        y = d * rstd * R(gname) + R(bname)
        return silu(y) if do_silu else y

    def layer_norm(h2, gname, bname, eps=1e-5):
        mean = jnp.mean(h2, axis=-1, keepdims=True)
        d = h2 - mean
        var = jnp.mean(d * d, axis=-1, keepdims=True)
        return d * jax.lax.rsqrt(var + eps) * R(gname) + R(bname)

    def mha(q, k, v, bias, wo_name, bo_name):
        # q already carries the 1/sqrt(d) scale (folded into wq at prep time).
        q = q.astype(bf16)
        k = k.astype(bf16)
        v = v.astype(bf16)
        heads_out = []
        for hh in range(HEADS):
            sl = slice(hh * DIM_HEAD, (hh + 1) * DIM_HEAD)
            s = jax.lax.dot_general(q[:, sl], k[:, sl],
                                    (((1,), (1,)), ((), ())),
                                    preferred_element_type=f32)
            s = s + bias                                # block-diag batch mask
            m = jnp.max(s, axis=-1, keepdims=True)
            p = jnp.exp(s - m)
            p = p * pl.reciprocal(jnp.sum(p, axis=-1, keepdims=True), approx=True)
            heads_out.append(jnp.dot(p.astype(bf16), v[:, sl],
                                     preferred_element_type=f32))
        o = jnp.concatenate(heads_out, axis=-1)         # (B*L, INNER)
        return mm(o, W(wo_name)) + R(bo_name)           # single output projection

    # ---- time embedding MLP: Linear -> SiLU -> Linear ----
    t = silu(mm(tsin, W("time_w1")) + R("time_b1"))
    t_emb = mm(t, W("time_w2")) + R("time_b2")          # (BP, TIME_EMBED_DIM)
    t_silu = silu(t_emb)                                # hoisted (block-invariant)

    # ---- in_layers (Conv1d k=1) + positional embedding ----
    h = mm(x, W("in_w")) + R("in_b") + pos              # (B*L, D_MODEL)

    for i in range(NBLOCKS):
        p = f"b{i}_"

        # -------- ResBlock --------
        hh = group_norm(h, p + "gn1_g", p + "gn1_b", 1e-5, True)
        hh = mm(hh, W(p + "conv1_w")) + R(p + "conv1_b")
        emb = mm(t_silu, W(p + "emb_w")) + R(p + "emb_b")   # (BP, C)
        hh = hh + mmf(sel, emb)                              # broadcast over L
        hh = group_norm(hh, p + "gn2_g", p + "gn2_b", 1e-5, True)
        hh = mm(hh, W(p + "conv2_w")) + R(p + "conv2_b")     # dropout=Identity (eval)
        h = h + hh                                           # skip = Identity

        # -------- SpatialTransformer --------
        x_in = h
        hh = group_norm(h, p + "st_gn_g", p + "st_gn_b", 1e-6, False)
        hh = mm(hh, W(p + "proj_in_w")) + R(p + "proj_in_b")

        for j in range(DEPTH):
            q_ = p + f"t{j}_"

            # self-attention (fused QKV, scale folded into wq)
            hn = layer_norm(hh, q_ + "ln1_g", q_ + "ln1_b")
            qkv = mm(hn, W(q_ + "wqkv1"))                    # (B*L, 3*INNER)
            hh = hh + mha(qkv[:, :INNER], qkv[:, INNER:2 * INNER],
                          qkv[:, 2 * INNER:], mself, q_ + "wo1", q_ + "bo1")

            # cross-attention with condition (fused KV)
            hn = layer_norm(hh, q_ + "ln2_g", q_ + "ln2_b")
            q2 = mm(hn, W(q_ + "wq2"))
            kv = mm(cond, W(q_ + "wkv2"))                    # (B*Lc, 2*INNER)
            hh = hh + mha(q2, kv[:, :INNER], kv[:, INNER:], mcross,
                          q_ + "wo2", q_ + "bo2")

            # GEGLU feed-forward
            hn = layer_norm(hh, q_ + "ln3_g", q_ + "ln3_b")
            g = mm(hn, W(q_ + "geglu_w"))                    # (B*L, 2*FF_INNER)
            val = g[:, :FF_INNER] + R(q_ + "geglu_b_val")
            gate = g[:, FF_INNER:] + R(q_ + "geglu_b_gate")
            ff = val * gelu_tanh(gate)
            hh = hh + mm(ff, W(q_ + "ff_out_w")) + R(q_ + "ff_out_b")

        hh = mm(hh, W(p + "proj_out_w")) + R(p + "proj_out_b")
        h = hh + x_in

    # ---- out_layers: GroupNorm -> SiLU -> Conv1d(d_model, d_x, 1), lane-padded ----
    h = group_norm(h, "out_gn_g", "out_gn_b", 1e-5, True)
    o_ref[...] = (mm(h, W("out_w")) + R("out_b")).astype(o_ref.dtype)


# ----------------------------- glue (plain JAX) ------------------------------
def timestep_embedding(timesteps, dim, max_period=10000):
    half = dim // 2
    freqs = jnp.exp(-math.log(max_period) *
                    jnp.arange(half, dtype=jnp.float32) / half)
    args = timesteps.astype(jnp.float32)[:, None] * freqs[None]
    emb = jnp.concatenate([jnp.cos(args), jnp.sin(args)], axis=-1)
    if dim % 2:
        emb = jnp.concatenate([emb, jnp.zeros_like(emb[:, :1])], axis=-1)
    return emb


def prepare_params(params, Bn=B, Ln=L, Lc=L_CTX):
    """One-time packing of weights into slabs + static tables (outside jit)."""
    wslab = jnp.zeros((W_ROWS, W_SLAB_N), jnp.float32)
    rows = jnp.zeros((R_ROWS, ROWS_N), jnp.float32)

    def put_w(name, mat):
        nonlocal wslab
        off, k, n = W_LAYOUT[name]
        mat = jnp.asarray(mat, jnp.float32)
        assert mat.shape == (k, n), (name, mat.shape, (k, n))
        wslab = wslab.at[off:off + k, :n].set(mat)

    def put_r(name, vec):
        nonlocal rows
        idx, n = R_LAYOUT[name]
        vec = jnp.asarray(vec, jnp.float32).reshape(-1)
        assert vec.shape[0] == n, (name, vec.shape, n)
        rows = rows.at[idx, :n].set(vec)

    scale = DIM_HEAD ** -0.5
    put_w("time_w1", params["time_w1"]); put_r("time_b1", params["time_b1"])
    put_w("time_w2", params["time_w2"]); put_r("time_b2", params["time_b2"])
    put_w("in_w", params["in_w"]);       put_r("in_b", params["in_b"])

    for i, blk in enumerate(params["blocks"]):
        p = f"b{i}_"
        res, st = blk["res"], blk["st"]
        put_r(p + "gn1_g", res["gn1_g"]); put_r(p + "gn1_b", res["gn1_b"])
        put_w(p + "conv1_w", res["conv1_w"]); put_r(p + "conv1_b", res["conv1_b"])
        put_w(p + "emb_w", res["emb_w"]); put_r(p + "emb_b", res["emb_b"])
        put_r(p + "gn2_g", res["gn2_g"]); put_r(p + "gn2_b", res["gn2_b"])
        put_w(p + "conv2_w", res["conv2_w"]); put_r(p + "conv2_b", res["conv2_b"])
        put_r(p + "st_gn_g", st["gn_g"]); put_r(p + "st_gn_b", st["gn_b"])
        put_w(p + "proj_in_w", st["proj_in_w"]); put_r(p + "proj_in_b", st["proj_in_b"])
        for j, tb in enumerate(st["blocks"]):
            q = p + f"t{j}_"
            a1, a2, ff = tb["attn1"], tb["attn2"], tb["ff"]
            put_r(q + "ln1_g", tb["ln1_g"]); put_r(q + "ln1_b", tb["ln1_b"])
            put_w(q + "wqkv1",
                  jnp.concatenate([a1["wq"] * scale, a1["wk"], a1["wv"]], axis=1))
            put_w(q + "wo1", a1["wo"]); put_r(q + "bo1", a1["bo"])
            put_r(q + "ln2_g", tb["ln2_g"]); put_r(q + "ln2_b", tb["ln2_b"])
            put_w(q + "wq2", a2["wq"] * scale)
            put_w(q + "wkv2", jnp.concatenate([a2["wk"], a2["wv"]], axis=1))
            put_w(q + "wo2", a2["wo"]); put_r(q + "bo2", a2["bo"])
            put_r(q + "ln3_g", tb["ln3_g"]); put_r(q + "ln3_b", tb["ln3_b"])
            put_w(q + "geglu_w", ff["geglu_w"])
            put_r(q + "geglu_b_val", ff["geglu_b"][:FF_INNER])
            put_r(q + "geglu_b_gate", ff["geglu_b"][FF_INNER:])
            put_w(q + "ff_out_w", ff["out_w"]); put_r(q + "ff_out_b", ff["out_b"])
        put_w(p + "proj_out_w", st["proj_out_w"]); put_r(p + "proj_out_b", st["proj_out_b"])

    put_r("out_gn_g", params["out_gn_g"]); put_r("out_gn_b", params["out_gn_b"])
    out_w_pad = jnp.zeros((D_MODEL, OUT_PAD), jnp.float32).at[:, :D_X].set(params["out_w"])
    out_b_pad = jnp.zeros((OUT_PAD,), jnp.float32).at[:D_X].set(params["out_b"])
    put_w("out_w", out_w_pad); put_r("out_b", out_b_pad)

    # static GroupNorm folded one-hot matrix: A[c, c'] = 1/(L*cpg) iff same group
    cpg = D_MODEL // GN_GROUPS
    oh = jnp.repeat(jnp.eye(GN_GROUPS, dtype=jnp.float32), cpg, axis=0)     # (C, G)
    gnA = (oh @ oh.T) * (1.0 / float(Ln * cpg))                             # (C, C)

    # batch-selector matrices (padded to BP rows/cols for sublane alignment)
    sel_core = jnp.repeat(jnp.eye(Bn, dtype=jnp.float32), Ln, axis=0)       # (B*L, B)
    sel = jnp.zeros((Bn * Ln, BP), jnp.float32).at[:, :Bn].set(sel_core)
    selT = sel.T

    # additive block-diagonal attention masks (tokens attend within own batch)
    rb = jnp.repeat(jnp.arange(Bn), Ln)
    cb_c = jnp.repeat(jnp.arange(Bn), Lc)
    mask_self = jnp.where(rb[:, None] == rb[None, :], 0.0, -1e9).astype(jnp.float32)
    mask_cross = jnp.where(rb[:, None] == cb_c[None, :], 0.0, -1e9).astype(jnp.float32)

    if USE_POS_EMB:
        pos = timestep_embedding(jnp.arange(Ln, dtype=jnp.float32), D_MODEL)
        pos = jnp.tile(pos, (Bn, 1))                                         # (B*L, C)
    else:
        pos = jnp.zeros((Bn * Ln, D_MODEL), jnp.float32)

    return {"wslab": wslab.astype(jnp.bfloat16), "rows": rows, "gnA": gnA,
            "sel": sel, "selT": selT, "mask_self": mask_self,
            "mask_cross": mask_cross, "pos": pos}


def unet_forward(prep, x_t, ts, cond):
    """x_t: (B, L, d_x) [or (B, d_x)], ts: (B,), cond: (B, L_ctx, context_dim)."""
    in_ndim = x_t.ndim
    if in_ndim == 2:
        x_t = x_t[:, None, :]
    Bn, Ln, dx = x_t.shape
    _, Lc, dc = cond.shape

    # sinusoidal t-embedding (tiny XLA ops; sin/cos kept out of the Mosaic kernel)
    tsin = timestep_embedding(ts, D_MODEL)                          # (B, d_model)
    tsin_p = jnp.zeros((BP, D_MODEL), jnp.float32).at[:Bn].set(tsin)

    args = [x_t.reshape(Bn * Ln, dx).astype(jnp.float32),
            tsin_p, prep["pos"],
            cond.reshape(Bn * Lc, dc).astype(jnp.float32),
            prep["sel"], prep["selT"], prep["gnA"],
            prep["mask_self"], prep["mask_cross"],
            prep["rows"], prep["wslab"]]

    out = pl.pallas_call(
        _fused_unet_kernel,
        out_shape=jax.ShapeDtypeStruct((Bn * Ln, OUT_PAD), jnp.float32),
        grid=(1,),
        in_specs=[pl.BlockSpec(a.shape, lambda i: (0, 0)) for a in args],
        out_specs=pl.BlockSpec((Bn * Ln, OUT_PAD), lambda i: (0, 0)),
        compiler_params=pltpu.CompilerParams(
            dimension_semantics=("arbitrary",)),
    )(*args)

    h = out[:, :dx].reshape(Bn, Ln, dx)
    if in_ndim == 2:
        h = h[:, 0, :]
    return h


# ----------------------------- pure-JAX reference (for sanity check) ---------
def _ref_gn(x, g, b, eps, do_silu):
    Bn, Ln, C = x.shape
    xg = x.reshape(Bn, Ln, GN_GROUPS, C // GN_GROUPS)
    mean = jnp.mean(xg, axis=(1, 3), keepdims=True)
    var = jnp.mean((xg - mean) ** 2, axis=(1, 3), keepdims=True)
    y = ((xg - mean) * jax.lax.rsqrt(var + eps)).reshape(Bn, Ln, C) * g + b
    return jax.nn.silu(y) if do_silu else y


def _ref_ln(x, g, b, eps=1e-5):
    mean = jnp.mean(x, axis=-1, keepdims=True)
    var = jnp.mean((x - mean) ** 2, axis=-1, keepdims=True)
    return (x - mean) * jax.lax.rsqrt(var + eps) * g + b


def _ref_attn(xq, xkv, p):
    Bn, Lq, _ = xq.shape
    Lk = xkv.shape[1]
    q = (xq @ p["wq"]).reshape(Bn, Lq, HEADS, DIM_HEAD)
    k = (xkv @ p["wk"]).reshape(Bn, Lk, HEADS, DIM_HEAD)
    v = (xkv @ p["wv"]).reshape(Bn, Lk, HEADS, DIM_HEAD)
    s = jnp.einsum("bqhd,bkhd->bhqk", q, k) * (DIM_HEAD ** -0.5)
    a = jax.nn.softmax(s, axis=-1)
    o = jnp.einsum("bhqk,bkhd->bqhd", a, v).reshape(Bn, Lq, INNER)
    return o @ p["wo"] + p["bo"]


def _ref_forward(params, x_t, ts, cond):
    t_emb = timestep_embedding(ts, D_MODEL)
    t_emb = jax.nn.silu(t_emb @ params["time_w1"] + params["time_b1"])
    t_emb = t_emb @ params["time_w2"] + params["time_b2"]
    h = x_t @ params["in_w"] + params["in_b"]
    if USE_POS_EMB:
        h = h + timestep_embedding(jnp.arange(h.shape[1], dtype=jnp.float32), D_MODEL)[None]
    for blk in params["blocks"]:
        res, st = blk["res"], blk["st"]
        hh = _ref_gn(h, res["gn1_g"], res["gn1_b"], 1e-5, True) @ res["conv1_w"] + res["conv1_b"]
        emb = jax.nn.silu(t_emb) @ res["emb_w"] + res["emb_b"]
        hh = hh + emb[:, None, :]
        hh = _ref_gn(hh, res["gn2_g"], res["gn2_b"], 1e-5, True) @ res["conv2_w"] + res["conv2_b"]
        h = h + hh
        x_in = h
        hh = _ref_gn(h, st["gn_g"], st["gn_b"], 1e-6, False) @ st["proj_in_w"] + st["proj_in_b"]
        for tb_ in st["blocks"]:
            hn = _ref_ln(hh, tb_["ln1_g"], tb_["ln1_b"])
            hh = hh + _ref_attn(hn, hn, tb_["attn1"])
            hn = _ref_ln(hh, tb_["ln2_g"], tb_["ln2_b"])
            hh = hh + _ref_attn(hn, cond, tb_["attn2"])
            hn = _ref_ln(hh, tb_["ln3_g"], tb_["ln3_b"])
            g = hn @ tb_["ff"]["geglu_w"] + tb_["ff"]["geglu_b"]
            gg = g[..., :FF_INNER] * jax.nn.gelu(g[..., FF_INNER:], approximate=False)
            hh = hh + gg @ tb_["ff"]["out_w"] + tb_["ff"]["out_b"]
        hh = hh @ st["proj_out_w"] + st["proj_out_b"]
        h = hh + x_in
    h = _ref_gn(h, params["out_gn_g"], params["out_gn_b"], 1e-5, True)
    return h @ params["out_w"] + params["out_b"]


# ----------------------------- deterministic parameter init -----------------
def init_params(key):
    keys = iter(jax.random.split(key, 128))

    def w(shape, scale=0.02):
        return scale * jax.random.normal(next(keys), shape, jnp.float32)

    def zeros(n):
        return jnp.zeros((n,), jnp.float32)

    def ones(n):
        return jnp.ones((n,), jnp.float32)

    def attn_params(ctx_dim):
        return {"wq": w((D_MODEL, INNER)), "wk": w((ctx_dim, INNER)),
                "wv": w((ctx_dim, INNER)), "wo": w((INNER, D_MODEL)),
                "bo": zeros(D_MODEL)}

    def block_params():
        res = {"gn1_g": ones(D_MODEL), "gn1_b": zeros(D_MODEL),
               "conv1_w": w((D_MODEL, D_MODEL)), "conv1_b": zeros(D_MODEL),
               "emb_w": w((TIME_EMBED_DIM, D_MODEL)), "emb_b": zeros(D_MODEL),
               "gn2_g": ones(D_MODEL), "gn2_b": zeros(D_MODEL),
               "conv2_w": w((D_MODEL, D_MODEL)), "conv2_b": zeros(D_MODEL)}
        tblocks = []
        for _ in range(DEPTH):
            tblocks.append({
                "ln1_g": ones(INNER), "ln1_b": zeros(INNER),
                "ln2_g": ones(INNER), "ln2_b": zeros(INNER),
                "ln3_g": ones(INNER), "ln3_b": zeros(INNER),
                "attn1": attn_params(INNER),
                "attn2": attn_params(CONTEXT_DIM),
                "ff": {"geglu_w": w((D_MODEL, 2 * FF_INNER)), "geglu_b": zeros(2 * FF_INNER),
                       "out_w": w((FF_INNER, D_MODEL)), "out_b": zeros(D_MODEL)},
            })
        st = {"gn_g": ones(D_MODEL), "gn_b": zeros(D_MODEL),
              "proj_in_w": w((D_MODEL, INNER)), "proj_in_b": zeros(INNER),
              "proj_out_w": w((INNER, D_MODEL)), "proj_out_b": zeros(D_MODEL),
              "blocks": tblocks}
        return {"res": res, "st": st}

    params = {
        "time_w1": w((D_MODEL, TIME_EMBED_DIM)), "time_b1": zeros(TIME_EMBED_DIM),
        "time_w2": w((TIME_EMBED_DIM, TIME_EMBED_DIM)), "time_b2": zeros(TIME_EMBED_DIM),
        "in_w": w((D_X, D_MODEL)), "in_b": zeros(D_MODEL),
        "blocks": [block_params() for _ in range(NBLOCKS)],
        "out_gn_g": ones(D_MODEL), "out_gn_b": zeros(D_MODEL),
        "out_w": w((D_MODEL, D_X)), "out_b": zeros(D_X),
    }
    # TODO(synk): the reference zero-inits ResBlock.out conv / ST.proj_out
    # (zero_module); small random weights used here so the kernel computes
    # non-trivial values.
    return params


# ----------------------------- main ------------------------------------------
if __name__ == "__main__":
    key = jax.random.PRNGKey(0)
    kp, kx, kc = jax.random.split(key, 3)
    params = init_params(kp)
    prep = prepare_params(params)            # one-time weight packing (outside jit)

    x_t = jax.random.normal(kx, (B, L, D_X), jnp.float32)
    ts = jnp.array([3, 7], dtype=jnp.int32)
    cond = jax.random.normal(kc, (B, L_CTX, CONTEXT_DIM), jnp.float32)

    fwd = jax.jit(unet_forward)
    out = jax.block_until_ready(fwd(prep, x_t, ts, cond))

    assert out.shape == (B, L, D_X), out.shape
    assert bool(jnp.all(jnp.isfinite(out)))

    # sanity check against a pure-JAX reference (loose tol: bf16 MXU inputs,
    # approx reciprocal in softmax, tanh-form GELU)
    ref = _ref_forward(params, x_t, ts, cond)
    assert bool(jnp.allclose(out, ref, rtol=2e-2, atol=2e-2)), \
        float(jnp.max(jnp.abs(out - ref)))

    print("KERNEL_OK")
</pallas_src>

<mosaic_0001>
module attributes {stable_mosaic.version = 11 : i64} {
  func.func @_fused_unet_kernel(%arg0: i32, %arg1: memref<16x16xf32, #tpu.memory_space<vmem>>, %arg2: memref<8x64xf32, #tpu.memory_space<vmem>>, %arg3: memref<16x64xf32, #tpu.memory_space<vmem>>, %arg4: memref<16x32xf32, #tpu.memory_space<vmem>>, %arg5: memref<16x8xf32, #tpu.memory_space<vmem>>, %arg6: memref<8x16xf32, #tpu.memory_space<vmem>>, %arg7: memref<64x64xf32, #tpu.memory_space<vmem>>, %arg8: memref<16x16xf32, #tpu.memory_space<vmem>>, %arg9: memref<16x16xf32, #tpu.memory_space<vmem>>, %arg10: memref<32x128xf32, #tpu.memory_space<vmem>>, %arg11: memref<1136x256xbf16, #tpu.memory_space<vmem>>, %arg12: memref<16x128xf32, #tpu.memory_space<vmem>>) attributes {dimension_semantics = [#tpu.dimension_semantics<arbitrary>], iteration_bounds = array<i64: 1>, scalar_prefetch = 0 : i64, scratch_operands = 0 : i64, tpu.core_type = #tpu.core_type<tc>, window_params = [{pipeline_mode = #tpu.pipeline_mode<synchronous>, transform_indices = @transform_0, window_bounds = array<i64: 16, 16>}, {pipeline_mode = #tpu.pipeline_mode<synchronous>, transform_indices = @transform_1, window_bounds = array<i64: 8, 64>}, {pipeline_mode = #tpu.pipeline_mode<synchronous>, transform_indices = @transform_2, window_bounds = array<i64: 16, 64>}, {pipeline_mode = #tpu.pipeline_mode<synchronous>, transform_indices = @transform_3, window_bounds = array<i64: 16, 32>}, {pipeline_mode = #tpu.pipeline_mode<synchronous>, transform_indices = @transform_4, window_bounds = array<i64: 16, 8>}, {pipeline_mode = #tpu.pipeline_mode<synchronous>, transform_indices = @transform_5, window_bounds = array<i64: 8, 16>}, {pipeline_mode = #tpu.pipeline_mode<synchronous>, transform_indices = @transform_6, window_bounds = array<i64: 64, 64>}, {pipeline_mode = #tpu.pipeline_mode<synchronous>, transform_indices = @transform_7, window_bounds = array<i64: 16, 16>}, {pipeline_mode = #tpu.pipeline_mode<synchronous>, transform_indices = @transform_8, window_bounds = array<i64: 16, 16>}, {pipeline_mode = #tpu.pipeline_mode<synchronous>, transform_indices = @transform_9, window_bounds = array<i64: 32, 128>}, {pipeline_mode = #tpu.pipeline_mode<synchronous>, transform_indices = @transform_10, window_bounds = array<i64: 1136, 256>}, {pipeline_mode = #tpu.pipeline_mode<synchronous>, transform_indices = @transform_11, window_bounds = array<i64: 16, 128>}]} {
    %c0 = arith.constant 0 : index
    %c0_0 = arith.constant 0 : index
    %0 = vector.load %arg1[%c0, %c0_0] : memref<16x16xf32, #tpu.memory_space<vmem>>, vector<16x16xf32>
    %c0_1 = arith.constant 0 : index
    %c0_2 = arith.constant 0 : index
    %1 = vector.load %arg2[%c0_1, %c0_2] : memref<8x64xf32, #tpu.memory_space<vmem>>, vector<8x64xf32>
    %c0_3 = arith.constant 0 : index
    %c0_4 = arith.constant 0 : index
    %2 = vector.load %arg3[%c0_3, %c0_4] : memref<16x64xf32, #tpu.memory_space<vmem>>, vector<16x64xf32>
    %c0_5 = arith.constant 0 : index
    %c0_6 = arith.constant 0 : index
    %3 = vector.load %arg4[%c0_5, %c0_6] : memref<16x32xf32, #tpu.memory_space<vmem>>, vector<16x32xf32>
    %c0_7 = arith.constant 0 : index
    %c0_8 = arith.constant 0 : index
    %4 = vector.load %arg5[%c0_7, %c0_8] : memref<16x8xf32, #tpu.memory_space<vmem>>, vector<16x8xf32>
    %c0_9 = arith.constant 0 : index
    %c0_10 = arith.constant 0 : index
    %5 = vector.load %arg6[%c0_9, %c0_10] : memref<8x16xf32, #tpu.memory_space<vmem>>, vector<8x16xf32>
    %c0_11 = arith.constant 0 : index
    %c0_12 = arith.constant 0 : index
    %6 = vector.load %arg7[%c0_11, %c0_12] : memref<64x64xf32, #tpu.memory_space<vmem>>, vector<64x64xf32>
    %c0_13 = arith.constant 0 : index
    %c0_14 = arith.constant 0 : index
    %7 = vector.load %arg8[%c0_13, %c0_14] : memref<16x16xf32, #tpu.memory_space<vmem>>, vector<16x16xf32>
    %c0_15 = arith.constant 0 : index
    %c0_16 = arith.constant 0 : index
    %8 = vector.load %arg9[%c0_15, %c0_16] : memref<16x16xf32, #tpu.memory_space<vmem>>, vector<16x16xf32>
    %c0_17 = arith.constant 0 : index
    %c0_18 = arith.constant 0 : index
    %9 = vector.load %arg11[%c0_17, %c0_18] : memref<1136x256xbf16, #tpu.memory_space<vmem>>, vector<64x128xbf16>
    %10 = arith.truncf %1 : vector<8x64xf32> to vector<8x64xbf16>
    %cst = arith.constant dense<0.000000e+00> : vector<8x128xf32>
    %11 = tpu.matmul %10, %9, %cst {dimension_numbers = #tpu.dot_dimension_numbers<[1], [0], [0], [1], [0, 0, 1, 1], [], []>} : vector<8x64xbf16>, vector<64x128xbf16>, vector<8x128xf32> -> vector<8x128xf32>
    %c0_19 = arith.constant 0 : index
    %c0_20 = arith.constant 0 : index
    %12 = vector.load %arg10[%c0_19, %c0_20] : memref<32x128xf32, #tpu.memory_space<vmem>>, vector<1x128xf32>
    %13 = vector.broadcast %12 : vector<1x128xf32> to vector<8x128xf32>
    %14 = arith.addf %11, %13 : vector<8x128xf32>
    %15 = arith.negf %14 : vector<8x128xf32>
    %16 = math.exp %15 : vector<8x128xf32>
    %cst_21 = arith.constant 1.000000e+00 : f32
    %17 = vector.broadcast %cst_21 : f32 to vector<8x128xf32>
    %18 = arith.addf %17, %16 : vector<8x128xf32>
    %19 = arith.divf %17, %18 : vector<8x128xf32>
    %20 = arith.mulf %14, %19 : vector<8x128xf32>
    %c64 = arith.constant 64 : index
    %c0_22 = arith.constant 0 : index
    %21 = vector.load %arg11[%c64, %c0_22] : memref<1136x256xbf16, #tpu.memory_space<vmem>>, vector<128x128xbf16>
    %22 = arith.truncf %20 : vector<8x128xf32> to vector<8x128xbf16>
    %cst_23 = arith.constant dense<0.000000e+00> : vector<8x128xf32>
    %23 = tpu.matmul %22, %21, %cst_23 {dimension_numbers = #tpu.dot_dimension_numbers<[1], [0], [0], [1], [0, 0, 1, 1], [], []>} : vector<8x128xbf16>, vector<128x128xbf16>, vector<8x128xf32> -> vector<8x128xf32>
    %c1 = arith.constant 1 : index
    %c0_24 = arith.constant 0 : index
    %24 = vector.load %arg10[%c1, %c0_24] : memref<32x128xf32, #tpu.memory_space<vmem>>, vector<1x128xf32>
    %25 = vector.broadcast %24 : vector<1x128xf32> to vector<8x128xf32>
    %26 = arith.addf %23, %25 : vector<8x128xf32>
    %27 = arith.negf %26 : vector<8x128xf32>
    %28 = math.exp %27 : vector<8x128xf32>
    %cst_25 = arith.constant 1.000000e+00 : f32
    %29 = vector.broadcast %cst_25 : f32 to vector<8x128xf32>
    %30 = arith.addf %29, %28 : vector<8x128xf32>
    %31 = arith.divf %29, %30 : vector<8x128xf32>
    %32 = arith.mulf %26, %31 : vector<8x128xf32>
    %c192 = arith.constant 192 : index
    %c0_26 = arith.constant 0 : index
    %33 = vector.load %arg11[%c192, %c0_26] : memref<1136x256xbf16, #tpu.memory_space<vmem>>, vector<16x64xbf16>
    %34 = arith.truncf %0 : vector<16x16xf32> to vector<16x16xbf16>
    %cst_27 = arith.constant dense<0.000000e+00> : vector<16x64xf32>
    %35 = tpu.matmul %34, %33, %cst_27 {dimension_numbers = #tpu.dot_dimension_numbers<[1], [0], [0], [1], [0, 0, 1, 1], [], []>} : vector<16x16xbf16>, vector<16x64xbf16>, vector<16x64xf32> -> vector<16x64xf32>
    %c2 = arith.constant 2 : index
    %c0_28 = arith.constant 0 : index
    %36 = vector.load %arg10[%c2, %c0_28] : memref<32x128xf32, #tpu.memory_space<vmem>>, vector<1x64xf32>
    %37 = vector.broadcast %36 : vector<1x64xf32> to vector<16x64xf32>
    %38 = arith.addf %35, %37 : vector<16x64xf32>
    %39 = arith.addf %38, %2 : vector<16x64xf32>
    %cst_29 = arith.constant dense<0.000000e+00> : vector<8x64xf32>
    %40 = tpu.matmul %5, %39, %cst_29 {dimension_numbers = #tpu.dot_dimension_numbers<[1], [0], [0], [1], [0, 0, 1, 1], [], []>} : vector<8x16xf32>, vector<16x64xf32>, vector<8x64xf32> -> vector<8x64xf32>
    %cst_30 = arith.constant dense<0.000000e+00> : vector<8x64xf32>
    %41 = tpu.matmul %40, %6, %cst_30 {dimension_numbers = #tpu.dot_dimension_numbers<[1], [0], [0], [1], [0, 0, 1, 1], [], []>} : vector<8x64xf32>, vector<64x64xf32>, vector<8x64xf32> -> vector<8x64xf32>
    %cst_31 = arith.constant dense<0.000000e+00> : vector<16x64xf32>
    %42 = tpu.matmul %4, %41, %cst_31 {dimension_numbers = #tpu.dot_dimension_numbers<[1], [0], [0], [1], [0, 0, 1, 1], [], []>} : vector<16x8xf32>, vector<8x64xf32>, vector<16x64xf32> -> vector<16x64xf32>
    %43 = arith.subf %39, %42 : vector<16x64xf32>
    %44 = arith.mulf %43, %43 : vector<16x64xf32>
    %cst_32 = arith.constant dense<0.000000e+00> : vector<8x64xf32>
    %45 = tpu.matmul %5, %44, %cst_32 {dimension_numbers = #tpu.dot_dimension_numbers<[1], [0], [0], [1], [0, 0, 1, 1], [], []>} : vector<8x16xf32>, vector<16x64xf32>, vector<8x64xf32> -> vector<8x64xf32>
    %cst_33 = arith.constant dense<0.000000e+00> : vector<8x64xf32>
    %46 = tpu.matmul %45, %6, %cst_33 {dimension_numbers = #tpu.dot_dimension_numbers<[1], [0], [0], [1], [0, 0, 1, 1], [], []>} : vector<8x64xf32>, vector<64x64xf32>, vector<8x64xf32> -> vector<8x64xf32>
    %cst_34 = arith.constant 9.99999974E-6 : f32
    %47 = vector.broadcast %cst_34 : f32 to vector<8x64xf32>
    %48 = arith.addf %46, %47 : vector<8x64xf32>
    %49 = math.rsqrt %48 : vector<8x64xf32>
    %cst_35 = arith.constant dense<0.000000e+00> : vector<16x64xf32>
    %50 = tpu.matmul %4, %49, %cst_35 {dimension_numbers = #tpu.dot_dimension_numbers<[1], [0], [0], [1], [0, 0, 1, 1], [], []>} : vector<16x8xf32>, vector<8x64xf32>, vector<16x64xf32> -> vector<16x64xf32>
    %51 = arith.mulf %43, %50 : vector<16x64xf32>
    %c3 = arith.constant 3 : index
    %c0_36 = arith.constant 0 : index
    %52 = vector.load %arg10[%c3, %c0_36] : memref<32x128xf32, #tpu.memory_space<vmem>>, vector<1x64xf32>
    %53 = vector.broadcast %52 : vector<1x64xf32> to vector<16x64xf32>
    %54 = arith.mulf %51, %53 : vector<16x64xf32>
    %c4 = arith.constant 4 : index
    %c0_37 = arith.constant 0 : index
    %55 = vector.load %arg10[%c4, %c0_37] : memref<32x128xf32, #tpu.memory_space<vmem>>, vector<1x64xf32>
    %56 = vector.broadcast %55 : vector<1x64xf32> to vector<16x64xf32>
    %57 = arith.addf %54, %56 : vector<16x64xf32>
    %58 = arith.negf %57 : vector<16x64xf32>
    %59 = math.exp %58 : vector<16x64xf32>
    %cst_38 = arith.constant 1.000000e+00 : f32
    %60 = vector.broadcast %cst_38 : f32 to vector<16x64xf32>
    %61 = arith.addf %60, %59 : vector<16x64xf32>
    %62 = arith.divf %60, %61 : vector<16x64xf32>
    %63 = arith.mulf %57, %62 : vector<16x64xf32>
    %c208 = arith.constant 208 : index
    %c0_39 = arith.constant 0 : index
    %64 = vector.load %arg11[%c208, %c0_39] : memref<1136x256xbf16, #tpu.memory_space<vmem>>, vector<64x64xbf16>
    %65 = arith.truncf %63 : vector<16x64xf32> to vector<16x64xbf16>
    %cst_40 = arith.constant dense<0.000000e+00> : vector<16x64xf32>
    %66 = tpu.matmul %65, %64, %cst_40 {dimension_numbers = #tpu.dot_dimension_numbers<[1], [0], [0], [1], [0, 0, 1, 1], [], []>} : vector<16x64xbf16>, vector<64x64xbf16>, vector<16x64xf32> -> vector<16x64xf32>
    %c5 = arith.constant 5 : index
    %c0_41 = arith.constant 0 : index
    %67 = vector.load %arg10[%c5, %c0_41] : memref<32x128xf32, #tpu.memory_space<vmem>>, vector<1x64xf32>
    %68 = vector.broadcast %67 : vector<1x64xf32> to vector<16x64xf32>
    %69 = arith.addf %66, %68 : vector<16x64xf32>
    %c272 = arith.constant 272 : index
    %c0_42 = arith.constant 0 : index
    %70 = vector.load %arg11[%c272, %c0_42] : memref<1136x256xbf16, #tpu.memory_space<vmem>>, vector<128x64xbf16>
    %71 = arith.truncf %32 : vector<8x128xf32> to vector<8x128xbf16>
    %cst_43 = arith.constant dense<0.000000e+00> : vector<8x64xf32>
    %72 = tpu.matmul %71, %70, %cst_43 {dimension_numbers = #tpu.dot_dimension_numbers<[1], [0], [0], [1], [0, 0, 1, 1], [], []>} : vector<8x128xbf16>, vector<128x64xbf16>, vector<8x64xf32> -> vector<8x64xf32>
    %c6 = arith.constant 6 : index
    %c0_44 = arith.constant 0 : index
    %73 = vector.load %arg10[%c6, %c0_44] : memref<32x128xf32, #tpu.memory_space<vmem>>, vector<1x64xf32>
    %74 = vector.broadcast %73 : vector<1x64xf32> to vector<8x64xf32>
    %75 = arith.addf %72, %74 : vector<8x64xf32>
    %cst_45 = arith.constant dense<0.000000e+00> : vector<16x64xf32>
    %76 = tpu.matmul %4, %75, %cst_45 {dimension_numbers = #tpu.dot_dimension_numbers<[1], [0], [0], [1], [0, 0, 1, 1], [], []>} : vector<16x8xf32>, vector<8x64xf32>, vector<16x64xf32> -> vector<16x64xf32>
    %77 = arith.addf %69, %76 : vector<16x64xf32>
    %cst_46 = arith.constant dense<0.000000e+00> : vector<8x64xf32>
    %78 = tpu.matmul %5, %77, %cst_46 {dimension_numbers = #tpu.dot_dimension_numbers<[1], [0], [0], [1], [0, 0, 1, 1], [], []>} : vector<8x16xf32>, vector<16x64xf32>, vector<8x64xf32> -> vector<8x64xf32>
    %cst_47 = arith.constant dense<0.000000e+00> : vector<8x64xf32>
    %79 = tpu.matmul %78, %6, %cst_47 {dimension_numbers = #tpu.dot_dimension_numbers<[1], [0], [0], [1], [0, 0, 1, 1], [], []>} : vector<8x64xf32>, vector<64x64xf32>, vector<8x64xf32> -> vector<8x64xf32>
    %cst_48 = arith.constant dense<0.000000e+00> : vector<16x64xf32>
    %80 = tpu.matmul %4, %79, %cst_48 {dimension_numbers = #tpu.dot_dimension_numbers<[1], [0], [0], [1], [0, 0, 1, 1], [], []>} : vector<16x8xf32>, vector<8x64xf32>, vector<16x64xf32> -> vector<16x64xf32>
    %81 = arith.subf %77, %80 : vector<16x64xf32>
    %82 = arith.mulf %81, %81 : vector<16x64xf32>
    %cst_49 = arith.constant dense<0.000000e+00> : vector<8x64xf32>
    %83 = tpu.matmul %5, %82, %cst_49 {dimension_numbers = #tpu.dot_dimension_numbers<[1], [0], [0], [1], [0, 0, 1, 1], [], []>} : vector<8x16xf32>, vector<16x64xf32>, vector<8x64xf32> -> vector<8x64xf32>
    %cst_50 = arith.constant dense<0.000000e+00> : vector<8x64xf32>
    %84 = tpu.matmul %83, %6, %cst_50 {dimension_numbers = #tpu.dot_dimension_numbers<[1], [0], [0], [1], [0, 0, 1, 1], [], []>} : vector<8x64xf32>, vector<64x64xf32>, vector<8x64xf32> -> vector<8x64xf32>
    %cst_51 = arith.constant 9.99999974E-6 : f32
    %85 = vector.broadcast %cst_51 : f32 to vector<8x64xf32>
    %86 = arith.addf %84, %85 : vector<8x64xf32>
    %87 = math.rsqrt %86 : vector<8x64xf32>
    %cst_52 = arith.constant dense<0.000000e+00> : vector<16x64xf32>
    %88 = tpu.matmul %4, %87, %cst_52 {dimension_numbers = #tpu.dot_dimension_numbers<[1], [0], [0], [1], [0, 0, 1, 1], [], []>} : vector<16x8xf32>, vector<8x64xf32>, vector<16x64xf32> -> vector<16x64xf32>
    %89 = arith.mulf %81, %88 : vector<16x64xf32>
    %c7 = arith.constant 7 : index
    %c0_53 = arith.constant 0 : index
    %90 = vector.load %arg10[%c7, %c0_53] : memref<32x128xf32, #tpu.memory_space<vmem>>, vector<1x64xf32>
    %91 = vector.broadcast %90 : vector<1x64xf32> to vector<16x64xf32>
    %92 = arith.mulf %89, %91 : vector<16x64xf32>
    %c8 = arith.constant 8 : index
    %c0_54 = arith.constant 0 : index
    %93 = vector.load %arg10[%c8, %c0_54] : memref<32x128xf32, #tpu.memory_space<vmem>>, vector<1x64xf32>
    %94 = vector.broadcast %93 : vector<1x64xf32> to vector<16x64xf32>
    %95 = arith.addf %92, %94 : vector<16x64xf32>
    %96 = arith.negf %95 : vector<16x64xf32>
    %97 = math.exp %96 : vector<16x64xf32>
    %cst_55 = arith.constant 1.000000e+00 : f32
    %98 = vector.broadcast %cst_55 : f32 to vector<16x64xf32>
    %99 = arith.addf %98, %97 : vector<16x64xf32>
    %100 = arith.divf %98, %99 : vector<16x64xf32>
    %101 = arith.mulf %95, %100 : vector<16x64xf32>
    %c400 = arith.constant 400 : index
    %c0_56 = arith.constant 0 : index
    %102 = vector.load %arg11[%c400, %c0_56] : memref<1136x256xbf16, #tpu.memory_space<vmem>>, vector<64x64xbf16>
    %103 = arith.truncf %101 : vector<16x64xf32> to vector<16x64xbf16>
    %cst_57 = arith.constant dense<0.000000e+00> : vector<16x64xf32>
    %104 = tpu.matmul %103, %102, %cst_57 {dimension_numbers = #tpu.dot_dimension_numbers<[1], [0], [0], [1], [0, 0, 1, 1], [], []>} : vector<16x64xbf16>, vector<64x64xbf16>, vector<16x64xf32> -> vector<16x64xf32>
    %c9 = arith.constant 9 : index
    %c0_58 = arith.constant 0 : index
    %105 = vector.load %arg10[%c9, %c0_58] : memref<32x128xf32, #tpu.memory_space<vmem>>, vector<1x64xf32>
    %106 = vector.broadcast %105 : vector<1x64xf32> to vector<16x64xf32>
    %107 = arith.addf %104, %106 : vector<16x64xf32>
    %108 = arith.addf %39, %107 : vector<16x64xf32>
    %cst_59 = arith.constant dense<0.000000e+00> : vector<8x64xf32>
    %109 = tpu.matmul %5, %108, %cst_59 {dimension_numbers = #tpu.dot_dimension_numbers<[1], [0], [0], [1], [0, 0, 1, 1], [], []>} : vector<8x16xf32>, vector<16x64xf32>, vector<8x64xf32> -> vector<8x64xf32>
    %cst_60 = arith.constant dense<0.000000e+00> : vector<8x64xf32>
    %110 = tpu.matmul %109, %6, %cst_60 {dimension_numbers = #tpu.dot_dimension_numbers<[1], [0], [0], [1], [0, 0, 1, 1], [], []>} : vector<8x64xf32>, vector<64x64xf32>, vector<8x64xf32> -> vector<8x64xf32>
    %cst_61 = arith.constant dense<0.000000e+00> : vector<16x64xf32>
    %111 = tpu.matmul %4, %110, %cst_61 {dimension_numbers = #tpu.dot_dimension_numbers<[1], [0], [0], [1], [0, 0, 1, 1], [], []>} : vector<16x8xf32>, vector<8x64xf32>, vector<16x64xf32> -> vector<16x64xf32>
    %112 = arith.subf %108, %111 : vector<16x64xf32>
    %113 = arith.mulf %112, %112 : vector<16x64xf32>
    %cst_62 = arith.constant dense<0.000000e+00> : vector<8x64xf32>
    %114 = tpu.matmul %5, %113, %cst_62 {dimension_numbers = #tpu.dot_dimension_numbers<[1], [0], [0], [1], [0, 0, 1, 1], [], []>} : vector<8x16xf32>, vector<16x64xf32>, vector<8x64xf32> -> vector<8x64xf32>
    %cst_63 = arith.constant dense<0.000000e+00> : vector<8x64xf32>
    %115 = tpu.matmul %114, %6, %cst_63 {dimension_numbers = #tpu.dot_dimension_numbers<[1], [0], [0], [1], [0, 0, 1, 1], [], []>} : vector<8x64xf32>, vector<64x64xf32>, vector<8x64xf32> -> vector<8x64xf32>
    %cst_64 = arith.constant 9.99999997E-7 : f32
    %116 = vector.broadcast %cst_64 : f32 to vector<8x64xf32>
    %117 = arith.addf %115, %116 : vector<8x64xf32>
    %118 = math.rsqrt %117 : vector<8x64xf32>
    %cst_65 = arith.constant dense<0.000000e+00> : vector<16x64xf32>
    %119 = tpu.matmul %4, %118, %cst_65 {dimension_numbers = #tpu.dot_dimension_numbers<[1], [0], [0], [1], [0, 0, 1, 1], [], []>} : vector<16x8xf32>, vector<8x64xf32>, vector<16x64xf32> -> vector<16x64xf32>
    %120 = arith.mulf %112, %119 : vector<16x64xf32>
    %c10 = arith.constant 10 : index
    %c0_66 = arith.constant 0 : index
    %121 = vector.load %arg10[%c10, %c0_66] : memref<32x128xf32, #tpu.memory_space<vmem>>, vector<1x64xf32>
    %122 = vector.broadcast %121 : vector<1x64xf32> to vector<16x64xf32>
    %123 = arith.mulf %120, %122 : vector<16x64xf32>
    %c11 = arith.constant 11 : index
    %c0_67 = arith.constant 0 : index
    %124 = vector.load %arg10[%c11, %c0_67] : memref<32x128xf32, #tpu.memory_space<vmem>>, vector<1x64xf32>
    %125 = vector.broadcast %124 : vector<1x64xf32> to vector<16x64xf32>
    %126 = arith.addf %123, %125 : vector<16x64xf32>
    %c464 = arith.constant 464 : index
    %c0_68 = arith.constant 0 : index
    %127 = vector.load %arg11[%c464, %c0_68] : memref<1136x256xbf16, #tpu.memory_space<vmem>>, vector<64x64xbf16>
    %128 = arith.truncf %126 : vector<16x64xf32> to vector<16x64xbf16>
    %cst_69 = arith.constant dense<0.000000e+00> : vector<16x64xf32>
    %129 = tpu.matmul %128, %127, %cst_69 {dimension_numbers = #tpu.dot_dimension_numbers<[1], [0], [0], [1], [0, 0, 1, 1], [], []>} : vector<16x64xbf16>, vector<64x64xbf16>, vector<16x64xf32> -> vector<16x64xf32>
    %c12 = arith.constant 12 : index
    %c0_70 = arith.constant 0 : index
    %130 = vector.load %arg10[%c12, %c0_70] : memref<32x128xf32, #tpu.memory_space<vmem>>, vector<1x64xf32>
    %131 = vector.broadcast %130 : vector<1x64xf32> to vector<16x64xf32>
    %132 = arith.addf %129, %131 : vector<16x64xf32>
    %cst_71 = arith.constant dense<0.000000e+00> : vector<16xf32>
    %133 = vector.multi_reduction <add>, %132, %cst_71 [1] : vector<16x64xf32> to vector<16xf32>
    %134 = vector.shape_cast %133 : vector<16xf32> to vector<16x1xf32>
    %cst_72 = arith.constant 6.400000e+01 : f32
    %135 = vector.broadcast %cst_72 : f32 to vector<16x1xf32>
    %136 = arith.divf %134, %135 : vector<16x1xf32>
    %137 = vector.broadcast %136 : vector<16x1xf32> to vector<16x64xf32>
    %138 = arith.subf %132, %137 : vector<16x64xf32>
    %139 = arith.mulf %138, %138 : vector<16x64xf32>
    %cst_73 = arith.constant dense<0.000000e+00> : vector<16xf32>
    %140 = vector.multi_reduction <add>, %139, %cst_73 [1] : vector<16x64xf32> to vector<16xf32>
    %141 = vector.shape_cast %140 : vector<16xf32> to vector<16x1xf32>
    %cst_74 = arith.constant 6.400000e+01 : f32
    %142 = vector.broadcast %cst_74 : f32 to vector<16x1xf32>
    %143 = arith.divf %141, %142 : vector<16x1xf32>
    %cst_75 = arith.constant 9.99999974E-6 : f32
    %144 = vector.broadcast %cst_75 : f32 to vector<16x1xf32>
    %145 = arith.addf %143, %144 : vector<16x1xf32>
    %146 = math.rsqrt %145 : vector<16x1xf32>
    %147 = vector.broadcast %146 : vector<16x1xf32> to vector<16x64xf32>
    %148 = arith.mulf %138, %147 : vector<16x64xf32>
    %c13 = arith.constant 13 : index
    %c0_76 = arith.constant 0 : index
    %149 = vector.load %arg10[%c13, %c0_76] : memref<32x128xf32, #tpu.memory_space<vmem>>, vector<1x64xf32>
    %150 = vector.broadcast %149 : vector<1x64xf32> to vector<16x64xf32>
    %151 = arith.mulf %148, %150 : vector<16x64xf32>
    %c14 = arith.constant 14 : index
    %c0_77 = arith.constant 0 : index
    %152 = vector.load %arg10[%c14, %c0_77] : memref<32x128xf32, #tpu.memory_space<vmem>>, vector<1x64xf32>
    %153 = vector.broadcast %152 : vector<1x64xf32> to vector<16x64xf32>
    %154 = arith.addf %151, %153 : vector<16x64xf32>
    %c528 = arith.constant 528 : index
    %c0_78 = arith.constant 0 : index
    %155 = vector.load %arg11[%c528, %c0_78] : memref<1136x256xbf16, #tpu.memory_space<vmem>>, vector<64x192xbf16>
    %156 = arith.truncf %154 : vector<16x64xf32> to vector<16x64xbf16>
    %cst_79 = arith.constant dense<0.000000e+00> : vector<16x192xf32>
    %157 = tpu.matmul %156, %155, %cst_79 {dimension_numbers = #tpu.dot_dimension_numbers<[1], [0], [0], [1], [0, 0, 1, 1], [], []>} : vector<16x64xbf16>, vector<64x192xbf16>, vector<16x192xf32> -> vector<16x192xf32>
    %158 = vector.extract_strided_slice %157 {offsets = [0, 0], sizes = [16, 64], strides = [1, 1]} : vector<16x192xf32> to vector<16x64xf32>
    %159 = vector.extract_strided_slice %157 {offsets = [0, 64], sizes = [16, 64], strides = [1, 1]} : vector<16x192xf32> to vector<16x64xf32>
    %160 = vector.extract_strided_slice %157 {offsets = [0, 128], sizes = [16, 64], strides = [1, 1]} : vector<16x192xf32> to vector<16x64xf32>
    %161 = arith.truncf %158 : vector<16x64xf32> to vector<16x64xbf16>
    %162 = arith.truncf %159 : vector<16x64xf32> to vector<16x64xbf16>
    %163 = arith.truncf %160 : vector<16x64xf32> to vector<16x64xbf16>
    %164 = vector.extract_strided_slice %161 {offsets = [0, 0], sizes = [16, 16], strides = [1, 1]} : vector<16x64xbf16> to vector<16x16xbf16>
    %165 = vector.extract_strided_slice %162 {offsets = [0, 0], sizes = [16, 16], strides = [1, 1]} : vector<16x64xbf16> to vector<16x16xbf16>
    %cst_80 = arith.constant dense<0.000000e+00> : vector<16x16xf32>
    %166 = tpu.matmul %164, %165, %cst_80 {dimension_numbers = #tpu.dot_dimension_numbers<[1], [1], [0], [0], [0, 0, 1, 0], [], []>} : vector<16x16xbf16>, vector<16x16xbf16>, vector<16x16xf32> -> vector<16x16xf32>
    %167 = arith.addf %166, %7 : vector<16x16xf32>
    %cst_81 = arith.constant dense<0xFF800000> : vector<16xf32>
    %168 = vector.multi_reduction <maximumf>, %167, %cst_81 [1] : vector<16x16xf32> to vector<16xf32>
    %169 = vector.shape_cast %168 : vector<16xf32> to vector<16x1xf32>
    %170 = vector.broadcast %169 : vector<16x1xf32> to vector<16x16xf32>
    %171 = arith.subf %167, %170 : vector<16x16xf32>
    %172 = math.exp %171 : vector<16x16xf32>
    %cst_82 = arith.constant dense<0.000000e+00> : vector<16xf32>
    %173 = vector.multi_reduction <add>, %172, %cst_82 [1] : vector<16x16xf32> to vector<16xf32>
    %174 = vector.shape_cast %173 : vector<16xf32> to vector<16x1xf32>
    %175 = tpu.reciprocal %174 {approx = true} : vector<16x1xf32> -> vector<16x1xf32>
    %176 = vector.broadcast %175 : vector<16x1xf32> to vector<16x16xf32>
    %177 = arith.mulf %172, %176 : vector<16x16xf32>
    %178 = arith.truncf %177 : vector<16x16xf32> to vector<16x16xbf16>
    %179 = vector.extract_strided_slice %163 {offsets = [0, 0], sizes = [16, 16], strides = [1, 1]} : vector<16x64xbf16> to vector<16x16xbf16>
    %cst_83 = arith.constant dense<0.000000e+00> : vector<16x16xf32>
    %180 = tpu.matmul %178, %179, %cst_83 {dimension_numbers = #tpu.dot_dimension_numbers<[1], [0], [0], [1], [0, 0, 1, 1], [], []>} : vector<16x16xbf16>, vector<16x16xbf16>, vector<16x16xf32> -> vector<16x16xf32>
    %181 = vector.extract_strided_slice %161 {offsets = [0, 16], sizes = [16, 16], strides = [1, 1]} : vector<16x64xbf16> to vector<16x16xbf16>
    %182 = vector.extract_strided_slice %162 {offsets = [0, 16], sizes = [16, 16], strides = [1, 1]} : vector<16x64xbf16> to vector<16x16xbf16>
    %cst_84 = arith.constant dense<0.000000e+00> : vector<16x16xf32>
    %183 = tpu.matmul %181, %182, %cst_84 {dimension_numbers = #tpu.dot_dimension_numbers<[1], [1], [0], [0], [0, 0, 1, 0], [], []>} : vector<16x16xbf16>, vector<16x16xbf16>, vector<16x16xf32> -> vector<16x16xf32>
    %184 = arith.addf %183, %7 : vector<16x16xf32>
    %cst_85 = arith.constant dense<0xFF800000> : vector<16xf32>
    %185 = vector.multi_reduction <maximumf>, %184, %cst_85 [1] : vector<16x16xf32> to vector<16xf32>
    %186 = vector.shape_cast %185 : vector<16xf32> to vector<16x1xf32>
    %187 = vector.broadcast %186 : vector<16x1xf32> to vector<16x16xf32>
    %188 = arith.subf %184, %187 : vector<16x16xf32>
    %189 = math.exp %188 : vector<16x16xf32>
    %cst_86 = arith.constant dense<0.000000e+00> : vector<16xf32>
    %190 = vector.multi_reduction <add>, %189, %cst_86 [1] : vector<16x16xf32> to vector<16xf32>
    %191 = vector.shape_cast %190 : vector<16xf32> to vector<16x1xf32>
    %192 = tpu.reciprocal %191 {approx = true} : vector<16x1xf32> -> vector<16x1xf32>
    %193 = vector.broadcast %192 : vector<16x1xf32> to vector<16x16xf32>
    %194 = arith.mulf %189, %193 : vector<16x16xf32>
    %195 = arith.truncf %194 : vector<16x16xf32> to vector<16x16xbf16>
    %196 = vector.extract_strided_slice %163 {offsets = [0, 16], sizes = [16, 16], strides = [1, 1]} : vector<16x64xbf16> to vector<16x16xbf16>
    %cst_87 = arith.constant dense<0.000000e+00> : vector<16x16xf32>
    %197 = tpu.matmul %195, %196, %cst_87 {dimension_numbers = #tpu.dot_dimension_numbers<[1], [0], [0], [1], [0, 0, 1, 1], [], []>} : vector<16x16xbf16>, vector<16x16xbf16>, vector<16x16xf32> -> vector<16x16xf32>
    %198 = vector.extract_strided_slice %161 {offsets = [0, 32], sizes = [16, 16], strides = [1, 1]} : vector<16x64xbf16> to vector<16x16xbf16>
    %199 = vector.extract_strided_slice %162 {offsets = [0, 32], sizes = [16, 16], strides = [1, 1]} : vector<16x64xbf16> to vector<16x16xbf16>
    %cst_88 = arith.constant dense<0.000000e+00> : vector<16x16xf32>
    %200 = tpu.matmul %198, %199, %cst_88 {dimension_numbers = #tpu.dot_dimension_numbers<[1], [1], [0], [0], [0, 0, 1, 0], [], []>} : vector<16x16xbf16>, vector<16x16xbf16>, vector<16x16xf32> -> vector<16x16xf32>
    %201 = arith.addf %200, %7 : vector<16x16xf32>
    %cst_89 = arith.constant dense<0xFF800000> : vector<16xf32>
    %202 = vector.multi_reduction <maximumf>, %201, %cst_89 [1] : vector<16x16xf32> to vector<16xf32>
    %203 = vector.shape_cast %202 : vector<16xf32> to vector<16x1xf32>
    %204 = vector.broadcast %203 : vector<16x1xf32> to vector<16x16xf32>
    %205 = arith.subf %201, %204 : vector<16x16xf32>
    %206 = math.exp %205 : vector<16x16xf32>
    %cst_90 = arith.constant dense<0.000000e+00> : vector<16xf32>
    %207 = vector.multi_reduction <add>, %206, %cst_90 [1] : vector<16x16xf32> to vector<16xf32>
    %208 = vector.shape_cast %207 : vector<16xf32> to vector<16x1xf32>
    %209 = tpu.reciprocal %208 {approx = true} : vector<16x1xf32> -> vector<16x1xf32>
    %210 = vector.broadcast %209 : vector<16x1xf32> to vector<16x16xf32>
    %211 = arith.mulf %206, %210 : vector<16x16xf32>
    %212 = arith.truncf %211 : vector<16x16xf32> to vector<16x16xbf16>
    %213 = vector.extract_strided_slice %163 {offsets = [0, 32], sizes = [16, 16], strides = [1, 1]} : vector<16x64xbf16> to vector<16x16xbf16>
    %cst_91 = arith.constant dense<0.000000e+00> : vector<16x16xf32>
    %214 = tpu.matmul %212, %213, %cst_91 {dimension_numbers = #tpu.dot_dimension_numbers<[1], [0], [0], [1], [0, 0, 1, 1], [], []>} : vector<16x16xbf16>, vector<16x16xbf16>, vector<16x16xf32> -> vector<16x16xf32>
    %215 = vector.extract_strided_slice %161 {offsets = [0, 48], sizes = [16, 16], strides = [1, 1]} : vector<16x64xbf16> to vector<16x16xbf16>
    %216 = vector.extract_strided_slice %162 {offsets = [0, 48], sizes = [16, 16], strides = [1, 1]} : vector<16x64xbf16> to vector<16x16xbf16>
    %cst_92 = arith.constant dense<0.000000e+00> : vector<16x16xf32>
    %217 = tpu.matmul %215, %216, %cst_92 {dimension_numbers = #tpu.dot_dimension_numbers<[1], [1], [0], [0], [0, 0, 1, 0], [], []>} : vector<16x16xbf16>, vector<16x16xbf16>, vector<16x16xf32> -> vector<16x16xf32>
    %218 = arith.addf %217, %7 : vector<16x16xf32>
    %cst_93 = arith.constant dense<0xFF800000> : vector<16xf32>
    %219 = vector.multi_reduction <maximumf>, %218, %cst_93 [1] : vector<16x16xf32> to vector<16xf32>
    %220 = vector.shape_cast %219 : vector<16xf32> to vector<16x1xf32>
    %221 = vector.broadcast %220 : vector<16x1xf32> to vector<16x16xf32>
    %222 = arith.subf %218, %221 : vector<16x16xf32>
    %223 = math.exp %222 : vector<16x16xf32>
    %cst_94 = arith.constant dense<0.000000e+00> : vector<16xf32>
    %224 = vector.multi_reduction <add>, %223, %cst_94 [1] : vector<16x16xf32> to vector<16xf32>
    %225 = vector.shape_cast %224 : vector<16xf32> to vector<16x1xf32>
    %226 = tpu.reciprocal %225 {approx = true} : vector<16x1xf32> -> vector<16x1xf32>
    %227 = vector.broadcast %226 : vector<16x1xf32> to vector<16x16xf32>
    %228 = arith.mulf %223, %227 : vector<16x16xf32>
    %229 = arith.truncf %228 : vector<16x16xf32> to vector<16x16xbf16>
    %230 = vector.extract_strided_slice %163 {offsets = [0, 48], sizes = [16, 16], strides = [1, 1]} : vector<16x64xbf16> to vector<16x16xbf16>
    %cst_95 = arith.constant dense<0.000000e+00> : vector<16x16xf32>
    %231 = tpu.matmul %229, %230, %cst_95 {dimension_numbers = #tpu.dot_dimension_numbers<[1], [0], [0], [1], [0, 0, 1, 1], [], []>} : vector<16x16xbf16>, vector<16x16xbf16>, vector<16x16xf32> -> vector<16x16xf32>
    %232 = tpu.concatenate %180, %197, %214, %231 in 1 : vector<16x16xf32>, vector<16x16xf32>, vector<16x16xf32>, vector<16x16xf32> -> vector<16x64xf32>
    %c592 = arith.constant 592 : index
    %c0_96 = arith.constant 0 : index
    %233 = vector.load %arg11[%c592, %c0_96] : memref<1136x256xbf16, #tpu.memory_space<vmem>>, vector<64x64xbf16>
    %234 = arith.truncf %232 : vector<16x64xf32> to vector<16x64xbf16>
    %cst_97 = arith.constant dense<0.000000e+00> : vector<16x64xf32>
    %235 = tpu.matmul %234, %233, %cst_97 {dimension_numbers = #tpu.dot_dimension_numbers<[1], [0], [0], [1], [0, 0, 1, 1], [], []>} : vector<16x64xbf16>, vector<64x64xbf16>, vector<16x64xf32> -> vector<16x64xf32>
    %c15 = arith.constant 15 : index
    %c0_98 = arith.constant 0 : index
    %236 = vector.load %arg10[%c15, %c0_98] : memref<32x128xf32, #tpu.memory_space<vmem>>, vector<1x64xf32>
    %237 = vector.broadcast %236 : vector<1x64xf32> to vector<16x64xf32>
    %238 = arith.addf %235, %237 : vector<16x64xf32>
    %239 = arith.addf %132, %238 : vector<16x64xf32>
    %cst_99 = arith.constant dense<0.000000e+00> : vector<16xf32>
    %240 = vector.multi_reduction <add>, %239, %cst_99 [1] : vector<16x64xf32> to vector<16xf32>
    %241 = vector.shape_cast %240 : vector<16xf32> to vector<16x1xf32>
    %cst_100 = arith.constant 6.400000e+01 : f32
    %242 = vector.broadcast %cst_100 : f32 to vector<16x1xf32>
    %243 = arith.divf %241, %242 : vector<16x1xf32>
    %244 = vector.broadcast %243 : vector<16x1xf32> to vector<16x64xf32>
    %245 = arith.subf %239, %244 : vector<16x64xf32>
    %246 = arith.mulf %245, %245 : vector<16x64xf32>
    %cst_101 = arith.constant dense<0.000000e+00> : vector<16xf32>
    %247 = vector.multi_reduction <add>, %246, %cst_101 [1] : vector<16x64xf32> to vector<16xf32>
    %248 = vector.shape_cast %247 : vector<16xf32> to vector<16x1xf32>
    %cst_102 = arith.constant 6.400000e+01 : f32
    %249 = vector.broadcast %cst_102 : f32 to vector<16x1xf32>
    %250 = arith.divf %248, %249 : vector<16x1xf32>
    %cst_103 = arith.constant 9.99999974E-6 : f32
    %251 = vector.broadcast %cst_103 : f32 to vector<16x1xf32>
    %252 = arith.addf %250, %251 : vector<16x1xf32>
    %253 = math.rsqrt %252 : vector<16x1xf32>
    %254 = vector.broadcast %253 : vector<16x1xf32> to vector<16x64xf32>
    %255 = arith.mulf %245, %254 : vector<16x64xf32>
    %c16 = arith.constant 16 : index
    %c0_104 = arith.constant 0 : index
    %256 = vector.load %arg10[%c16, %c0_104] : memref<32x128xf32, #tpu.memory_space<vmem>>, vector<1x64xf32>
    %257 = vector.broadcast %256 : vector<1x64xf32> to vector<16x64xf32>
    %258 = arith.mulf %255, %257 : vector<16x64xf32>
    %c17 = arith.constant 17 : index
    %c0_105 = arith.constant 0 : index
    %259 = vector.load %arg10[%c17, %c0_105] : memref<32x128xf32, #tpu.memory_space<vmem>>, vector<1x64xf32>
    %260 = vector.broadcast %259 : vector<1x64xf32> to vector<16x64xf32>
    %261 = arith.addf %258, %260 : vector<16x64xf32>
    %c656 = arith.constant 656 : index
    %c0_106 = arith.constant 0 : index
    %262 = vector.load %arg11[%c656, %c0_106] : memref<1136x256xbf16, #tpu.memory_space<vmem>>, vector<64x64xbf16>
    %263 = arith.truncf %261 : vector<16x64xf32> to vector<16x64xbf16>
    %cst_107 = arith.constant dense<0.000000e+00> : vector<16x64xf32>
    %264 = tpu.matmul %263, %262, %cst_107 {dimension_numbers = #tpu.dot_dimension_numbers<[1], [0], [0], [1], [0, 0, 1, 1], [], []>} : vector<16x64xbf16>, vector<64x64xbf16>, vector<16x64xf32> -> vector<16x64xf32>
    %c720 = arith.constant 720 : index
    %c0_108 = arith.constant 0 : index
    %265 = vector.load %arg11[%c720, %c0_108] : memref<1136x256xbf16, #tpu.memory_space<vmem>>, vector<32x128xbf16>
    %266 = arith.truncf %3 : vector<16x32xf32> to vector<16x32xbf16>
    %cst_109 = arith.constant dense<0.000000e+00> : vector<16x128xf32>
    %267 = tpu.matmul %266, %265, %cst_109 {dimension_numbers = #tpu.dot_dimension_numbers<[1], [0], [0], [1], [0, 0, 1, 1], [], []>} : vector<16x32xbf16>, vector<32x128xbf16>, vector<16x128xf32> -> vector<16x128xf32>
    %268 = vector.extract_strided_slice %267 {offsets = [0, 0], sizes = [16, 64], strides = [1, 1]} : vector<16x128xf32> to vector<16x64xf32>
    %269 = vector.extract_strided_slice %267 {offsets = [0, 64], sizes = [16, 64], strides = [1, 1]} : vector<16x128xf32> to vector<16x64xf32>
    %270 = arith.truncf %264 : vector<16x64xf32> to vector<16x64xbf16>
    %271 = arith.truncf %268 : vector<16x64xf32> to vector<16x64xbf16>
    %272 = arith.truncf %269 : vector<16x64xf32> to vector<16x64xbf16>
    %273 = vector.extract_strided_slice %270 {offsets = [0, 0], sizes = [16, 16], strides = [1, 1]} : vector<16x64xbf16> to vector<16x16xbf16>
    %274 = vector.extract_strided_slice %271 {offsets = [0, 0], sizes = [16, 16], strides = [1, 1]} : vector<16x64xbf16> to vector<16x16xbf16>
    %cst_110 = arith.constant dense<0.000000e+00> : vector<16x16xf32>
    %275 = tpu.matmul %273, %274, %cst_110 {dimension_numbers = #tpu.dot_dimension_numbers<[1], [1], [0], [0], [0, 0, 1, 0], [], []>} : vector<16x16xbf16>, vector<16x16xbf16>, vector<16x16xf32> -> vector<16x16xf32>
    %276 = arith.addf %275, %8 : vector<16x16xf32>
    %cst_111 = arith.constant dense<0xFF800000> : vector<16xf32>
    %277 = vector.multi_reduction <maximumf>, %276, %cst_111 [1] : vector<16x16xf32> to vector<16xf32>
    %278 = vector.shape_cast %277 : vector<16xf32> to vector<16x1xf32>
    %279 = vector.broadcast %278 : vector<16x1xf32> to vector<16x16xf32>
    %280 = arith.subf %276, %279 : vector<16x16xf32>
    %281 = math.exp %280 : vector<16x16xf32>
    %cst_112 = arith.constant dense<0.000000e+00> : vector<16xf32>
    %282 = vector.multi_reduction <add>, %281, %cst_112 [1] : vector<16x16xf32> to vector<16xf32>
    %283 = vector.shape_cast %282 : vector<16xf32> to vector<16x1xf32>
    %284 = tpu.reciprocal %283 {approx = true} : vector<16x1xf32> -> vector<16x1xf32>
    %285 = vector.broadcast %284 : vector<16x1xf32> to vector<16x16xf32>
    %286 = arith.mulf %281, %285 : vector<16x16xf32>
    %287 = arith.truncf %286 : vector<16x16xf32> to vector<16x16xbf16>
    %288 = vector.extract_strided_slice %272 {offsets = [0, 0], sizes = [16, 16], strides = [1, 1]} : vector<16x64xbf16> to vector<16x16xbf16>
    %cst_113 = arith.constant dense<0.000000e+00> : vector<16x16xf32>
    %289 = tpu.matmul %287, %288, %cst_113 {dimension_numbers = #tpu.dot_dimension_numbers<[1], [0], [0], [1], [0, 0, 1, 1], [], []>} : vector<16x16xbf16>, vector<16x16xbf16>, vector<16x16xf32> -> vector<16x16xf32>
    %290 = vector.extract_strided_slice %270 {offsets = [0, 16], sizes = [16, 16], strides = [1, 1]} : vector<16x64xbf16> to vector<16x16xbf16>
    %291 = vector.extract_strided_slice %271 {offsets = [0, 16], sizes = [16, 16], strides = [1, 1]} : vector<16x64xbf16> to vector<16x16xbf16>
    %cst_114 = arith.constant dense<0.000000e+00> : vector<16x16xf32>
    %292 = tpu.matmul %290, %291, %cst_114 {dimension_numbers = #tpu.dot_dimension_numbers<[1], [1], [0], [0], [0, 0, 1, 0], [], []>} : vector<16x16xbf16>, vector<16x16xbf16>, vector<16x16xf32> -> vector<16x16xf32>
    %293 = arith.addf %292, %8 : vector<16x16xf32>
    %cst_115 = arith.constant dense<0xFF800000> : vector<16xf32>
    %294 = vector.multi_reduction <maximumf>, %293, %cst_115 [1] : vector<16x16xf32> to vector<16xf32>
    %295 = vector.shape_cast %294 : vector<16xf32> to vector<16x1xf32>
    %296 = vector.broadcast %295 : vector<16x1xf32> to vector<16x16xf32>
    %297 = arith.subf %293, %296 : vector<16x16xf32>
    %298 = math.exp %297 : vector<16x16xf32>
    %cst_116 = arith.constant dense<0.000000e+00> : vector<16xf32>
    %299 = vector.multi_reduction <add>, %298, %cst_116 [1] : vector<16x16xf32> to vector<16xf32>
    %300 = vector.shape_cast %299 : vector<16xf32> to vector<16x1xf32>
    %301 = tpu.reciprocal %300 {approx = true} : vector<16x1xf32> -> vector<16x1xf32>
    %302 = vector.broadcast %301 : vector<16x1xf32> to vector<16x16xf32>
    %303 = arith.mulf %298, %302 : vector<16x16xf32>
    %304 = arith.truncf %303 : vector<16x16xf32> to vector<16x16xbf16>
    %305 = vector.extract_strided_slice %272 {offsets = [0, 16], sizes = [16, 16], strides = [1, 1]} : vector<16x64xbf16> to vector<16x16xbf16>
    %cst_117 = arith.constant dense<0.000000e+00> : vector<16x16xf32>
    %306 = tpu.matmul %304, %305, %cst_117 {dimension_numbers = #tpu.dot_dimension_numbers<[1], [0], [0], [1], [0, 0, 1, 1], [], []>} : vector<16x16xbf16>, vector<16x16xbf16>, vector<16x16xf32> -> vector<16x16xf32>
    %307 = vector.extract_strided_slice %270 {offsets = [0, 32], sizes = [16, 16], strides = [1, 1]} : vector<16x64xbf16> to vector<16x16xbf16>
    %308 = vector.extract_strided_slice %271 {offsets = [0, 32], sizes = [16, 16], strides = [1, 1]} : vector<16x64xbf16> to vector<16x16xbf16>
    %cst_118 = arith.constant dense<0.000000e+00> : vector<16x16xf32>
    %309 = tpu.matmul %307, %308, %cst_118 {dimension_numbers = #tpu.dot_dimension_numbers<[1], [1], [0], [0], [0, 0, 1, 0], [], []>} : vector<16x16xbf16>, vector<16x16xbf16>, vector<16x16xf32> -> vector<16x16xf32>
    %310 = arith.addf %309, %8 : vector<16x16xf32>
    %cst_119 = arith.constant dense<0xFF800000> : vector<16xf32>
    %311 = vector.multi_reduction <maximumf>, %310, %cst_119 [1] : vector<16x16xf32> to vector<16xf32>
    %312 = vector.shape_cast %311 : vector<16xf32> to vector<16x1xf32>
    %313 = vector.broadcast %312 : vector<16x1xf32> to vector<16x16xf32>
    %314 = arith.subf %310, %313 : vector<16x16xf32>
    %315 = math.exp %314 : vector<16x16xf32>
    %cst_120 = arith.constant dense<0.000000e+00> : vector<16xf32>
    %316 = vector.multi_reduction <add>, %315, %cst_120 [1] : vector<16x16xf32> to vector<16xf32>
    %317 = vector.shape_cast %316 : vector<16xf32> to vector<16x1xf32>
    %318 = tpu.reciprocal %317 {approx = true} : vector<16x1xf32> -> vector<16x1xf32>
    %319 = vector.broadcast %318 : vector<16x1xf32> to vector<16x16xf32>
    %320 = arith.mulf %315, %319 : vector<16x16xf32>
    %321 = arith.truncf %320 : vector<16x16xf32> to vector<16x16xbf16>
    %322 = vector.extract_strided_slice %272 {offsets = [0, 32], sizes = [16, 16], strides = [1, 1]} : vector<16x64xbf16> to vector<16x16xbf16>
    %cst_121 = arith.constant dense<0.000000e+00> : vector<16x16xf32>
    %323 = tpu.matmul %321, %322, %cst_121 {dimension_numbers = #tpu.dot_dimension_numbers<[1], [0], [0], [1], [0, 0, 1, 1], [], []>} : vector<16x16xbf16>, vector<16x16xbf16>, vector<16x16xf32> -> vector<16x16xf32>
    %324 = vector.extract_strided_slice %270 {offsets = [0, 48], sizes = [16, 16], strides = [1, 1]} : vector<16x64xbf16> to vector<16x16xbf16>
    %325 = vector.extract_strided_slice %271 {offsets = [0, 48], sizes = [16, 16], strides = [1, 1]} : vector<16x64xbf16> to vector<16x16xbf16>
    %cst_122 = arith.constant dense<0.000000e+00> : vector<16x16xf32>
    %326 = tpu.matmul %324, %325, %cst_122 {dimension_numbers = #tpu.dot_dimension_numbers<[1], [1], [0], [0], [0, 0, 1, 0], [], []>} : vector<16x16xbf16>, vector<16x16xbf16>, vector<16x16xf32> -> vector<16x16xf32>
    %327 = arith.addf %326, %8 : vector<16x16xf32>
    %cst_123 = arith.constant dense<0xFF800000> : vector<16xf32>
    %328 = vector.multi_reduction <maximumf>, %327, %cst_123 [1] : vector<16x16xf32> to vector<16xf32>
    %329 = vector.shape_cast %328 : vector<16xf32> to vector<16x1xf32>
    %330 = vector.broadcast %329 : vector<16x1xf32> to vector<16x16xf32>
    %331 = arith.subf %327, %330 : vector<16x16xf32>
    %332 = math.exp %331 : vector<16x16xf32>
    %cst_124 = arith.constant dense<0.000000e+00> : vector<16xf32>
    %333 = vector.multi_reduction <add>, %332, %cst_124 [1] : vector<16x16xf32> to vector<16xf32>
    %334 = vector.shape_cast %333 : vector<16xf32> to vector<16x1xf32>
    %335 = tpu.reciprocal %334 {approx = true} : vector<16x1xf32> -> vector<16x1xf32>
    %336 = vector.broadcast %335 : vector<16x1xf32> to vector<16x16xf32>
    %337 = arith.mulf %332, %336 : vector<16x16xf32>
    %338 = arith.truncf %337 : vector<16x16xf32> to vector<16x16xbf16>
    %339 = vector.extract_strided_slice %272 {offsets = [0, 48], sizes = [16, 16], strides = [1, 1]} : vector<16x64xbf16> to vector<16x16xbf16>
    %cst_125 = arith.constant dense<0.000000e+00> : vector<16x16xf32>
    %340 = tpu.matmul %338, %339, %cst_125 {dimension_numbers = #tpu.dot_dimension_numbers<[1], [0], [0], [1], [0, 0, 1, 1], [], []>} : vector<16x16xbf16>, vector<16x16xbf16>, vector<16x16xf32> -> vector<16x16xf32>
    %341 = tpu.concatenate %289, %306, %323, %340 in 1 : vector<16x16xf32>, vector<16x16xf32>, vector<16x16xf32>, vector<16x16xf32> -> vector<16x64xf32>
    %c752 = arith.constant 752 : index
    %c0_126 = arith.constant 0 : index
    %342 = vector.load %arg11[%c752, %c0_126] : memref<1136x256xbf16, #tpu.memory_space<vmem>>, vector<64x64xbf16>
    %343 = arith.truncf %341 : vector<16x64xf32> to vector<16x64xbf16>
    %cst_127 = arith.constant dense<0.000000e+00> : vector<16x64xf32>
    %344 = tpu.matmul %343, %342, %cst_127 {dimension_numbers = #tpu.dot_dimension_numbers<[1], [0], [0], [1], [0, 0, 1, 1], [], []>} : vector<16x64xbf16>, vector<64x64xbf16>, vector<16x64xf32> -> vector<16x64xf32>
    %c18 = arith.constant 18 : index
    %c0_128 = arith.constant 0 : index
    %345 = vector.load %arg10[%c18, %c0_128] : memref<32x128xf32, #tpu.memory_space<vmem>>, vector<1x64xf32>
    %346 = vector.broadcast %345 : vector<1x64xf32> to vector<16x64xf32>
    %347 = arith.addf %344, %346 : vector<16x64xf32>
    %348 = arith.addf %239, %347 : vector<16x64xf32>
    %cst_129 = arith.constant dense<0.000000e+00> : vector<16xf32>
    %349 = vector.multi_reduction <add>, %348, %cst_129 [1] : vector<16x64xf32> to vector<16xf32>
    %350 = vector.shape_cast %349 : vector<16xf32> to vector<16x1xf32>
    %cst_130 = arith.constant 6.400000e+01 : f32
    %351 = vector.broadcast %cst_130 : f32 to vector<16x1xf32>
    %352 = arith.divf %350, %351 : vector<16x1xf32>
    %353 = vector.broadcast %352 : vector<16x1xf32> to vector<16x64xf32>
    %354 = arith.subf %348, %353 : vector<16x64xf32>
    %355 = arith.mulf %354, %354 : vector<16x64xf32>
    %cst_131 = arith.constant dense<0.000000e+00> : vector<16xf32>
    %356 = vector.multi_reduction <add>, %355, %cst_131 [1] : vector<16x64xf32> to vector<16xf32>
    %357 = vector.shape_cast %356 : vector<16xf32> to vector<16x1xf32>
    %cst_132 = arith.constant 6.400000e+01 : f32
    %358 = vector.broadcast %cst_132 : f32 to vector<16x1xf32>
    %359 = arith.divf %357, %358 : vector<16x1xf32>
    %cst_133 = arith.constant 9.99999974E-6 : f32
    %360 = vector.broadcast %cst_133 : f32 to vector<16x1xf32>
    %361 = arith.addf %359, %360 : vector<16x1xf32>
    %362 = math.rsqrt %361 : vector<16x1xf32>
    %363 = vector.broadcast %362 : vector<16x1xf32> to vector<16x64xf32>
    %364 = arith.mulf %354, %363 : vector<16x64xf32>
    %c19 = arith.constant 19 : index
    %c0_134 = arith.constant 0 : index
    %365 = vector.load %arg10[%c19, %c0_134] : memref<32x128xf32, #tpu.memory_space<vmem>>, vector<1x64xf32>
    %366 = vector.broadcast %365 : vector<1x64xf32> to vector<16x64xf32>
    %367 = arith.mulf %364, %366 : vector<16x64xf32>
    %c20 = arith.constant 20 : index
    %c0_135 = arith.constant 0 : index
    %368 = vector.load %arg10[%c20, %c0_135] : memref<32x128xf32, #tpu.memory_space<vmem>>, vector<1x64xf32>
    %369 = vector.broadcast %368 : vector<1x64xf32> to vector<16x64xf32>
    %370 = arith.addf %367, %369 : vector<16x64xf32>
    %c816 = arith.constant 816 : index
    %c0_136 = arith.constant 0 : index
    %371 = vector.load %arg11[%c816, %c0_136] : memref<1136x256xbf16, #tpu.memory_space<vmem>>, vector<64x256xbf16>
    %372 = arith.truncf %370 : vector<16x64xf32> to vector<16x64xbf16>
    %cst_137 = arith.constant dense<0.000000e+00> : vector<16x256xf32>
    %373 = tpu.matmul %372, %371, %cst_137 {dimension_numbers = #tpu.dot_dimension_numbers<[1], [0], [0], [1], [0, 0, 1, 1], [], []>} : vector<16x64xbf16>, vector<64x256xbf16>, vector<16x256xf32> -> vector<16x256xf32>
    %374 = vector.extract_strided_slice %373 {offsets = [0, 0], sizes = [16, 128], strides = [1, 1]} : vector<16x256xf32> to vector<16x128xf32>
    %c21 = arith.constant 21 : index
    %c0_138 = arith.constant 0 : index
    %375 = vector.load %arg10[%c21, %c0_138] : memref<32x128xf32, #tpu.memory_space<vmem>>, vector<1x128xf32>
    %376 = vector.broadcast %375 : vector<1x128xf32> to vector<16x128xf32>
    %377 = arith.addf %374, %376 : vector<16x128xf32>
    %378 = vector.extract_strided_slice %373 {offsets = [0, 128], sizes = [16, 128], strides = [1, 1]} : vector<16x256xf32> to vector<16x128xf32>
    %c22 = arith.constant 22 : index
    %c0_139 = arith.constant 0 : index
    %379 = vector.load %arg10[%c22, %c0_139] : memref<32x128xf32, #tpu.memory_space<vmem>>, vector<1x128xf32>
    %380 = vector.broadcast %379 : vector<1x128xf32> to vector<16x128xf32>
    %381 = arith.addf %378, %380 : vector<16x128xf32>
    %cst_140 = arith.constant 4.471500e-02 : f32
    %382 = vector.broadcast %cst_140 : f32 to vector<16x128xf32>
    %383 = arith.mulf %382, %381 : vector<16x128xf32>
    %384 = arith.mulf %383, %381 : vector<16x128xf32>
    %385 = arith.mulf %384, %381 : vector<16x128xf32>
    %386 = arith.addf %381, %385 : vector<16x128xf32>
    %cst_141 = arith.constant 0.797884583 : f32
    %387 = vector.broadcast %cst_141 : f32 to vector<16x128xf32>
    %388 = arith.mulf %387, %386 : vector<16x128xf32>
    %cst_142 = arith.constant 2.000000e+00 : f32
    %389 = vector.broadcast %cst_142 : f32 to vector<16x128xf32>
    %390 = arith.mulf %389, %388 : vector<16x128xf32>
    %391 = arith.negf %390 : vector<16x128xf32>
    %392 = math.exp %391 : vector<16x128xf32>
    %cst_143 = arith.constant 1.000000e+00 : f32
    %393 = vector.broadcast %cst_143 : f32 to vector<16x128xf32>
    %394 = arith.addf %393, %392 : vector<16x128xf32>
    %395 = arith.divf %393, %394 : vector<16x128xf32>
    %cst_144 = arith.constant 2.000000e+00 : f32
    %396 = vector.broadcast %cst_144 : f32 to vector<16x128xf32>
    %397 = arith.mulf %396, %395 : vector<16x128xf32>
    %cst_145 = arith.constant 1.000000e+00 : f32
    %398 = vector.broadcast %cst_145 : f32 to vector<16x128xf32>
    %399 = arith.subf %397, %398 : vector<16x128xf32>
    %cst_146 = arith.constant 5.000000e-01 : f32
    %400 = vector.broadcast %cst_146 : f32 to vector<16x128xf32>
    %401 = arith.mulf %400, %381 : vector<16x128xf32>
    %cst_147 = arith.constant 1.000000e+00 : f32
    %402 = vector.broadcast %cst_147 : f32 to vector<16x128xf32>
    %403 = arith.addf %402, %399 : vector<16x128xf32>
    %404 = arith.mulf %401, %403 : vector<16x128xf32>
    %405 = arith.mulf %377, %404 : vector<16x128xf32>
    %c880 = arith.constant 880 : index
    %c0_148 = arith.constant 0 : index
    %406 = vector.load %arg11[%c880, %c0_148] : memref<1136x256xbf16, #tpu.memory_space<vmem>>, vector<128x64xbf16>
    %407 = arith.truncf %405 : vector<16x128xf32> to vector<16x128xbf16>
    %cst_149 = arith.constant dense<0.000000e+00> : vector<16x64xf32>
    %408 = tpu.matmul %407, %406, %cst_149 {dimension_numbers = #tpu.dot_dimension_numbers<[1], [0], [0], [1], [0, 0, 1, 1], [], []>} : vector<16x128xbf16>, vector<128x64xbf16>, vector<16x64xf32> -> vector<16x64xf32>
    %409 = arith.addf %348, %408 : vector<16x64xf32>
    %c23 = arith.constant 23 : index
    %c0_150 = arith.constant 0 : index
    %410 = vector.load %arg10[%c23, %c0_150] : memref<32x128xf32, #tpu.memory_space<vmem>>, vector<1x64xf32>
    %411 = vector.broadcast %410 : vector<1x64xf32> to vector<16x64xf32>
    %412 = arith.addf %409, %411 : vector<16x64xf32>
    %c1008 = arith.constant 1008 : index
    %c0_151 = arith.constant 0 : index
    %413 = vector.load %arg11[%c1008, %c0_151] : memref<1136x256xbf16, #tpu.memory_space<vmem>>, vector<64x64xbf16>
    %414 = arith.truncf %412 : vector<16x64xf32> to vector<16x64xbf16>
    %cst_152 = arith.constant dense<0.000000e+00> : vector<16x64xf32>
    %415 = tpu.matmul %414, %413, %cst_152 {dimension_numbers = #tpu.dot_dimension_numbers<[1], [0], [0], [1], [0, 0, 1, 1], [], []>} : vector<16x64xbf16>, vector<64x64xbf16>, vector<16x64xf32> -> vector<16x64xf32>
    %c24 = arith.constant 24 : index
    %c0_153 = arith.constant 0 : index
    %416 = vector.load %arg10[%c24, %c0_153] : memref<32x128xf32, #tpu.memory_space<vmem>>, vector<1x64xf32>
    %417 = vector.broadcast %416 : vector<1x64xf32> to vector<16x64xf32>
    %418 = arith.addf %415, %417 : vector<16x64xf32>
    %419 = arith.addf %418, %108 : vector<16x64xf32>
    %cst_154 = arith.constant dense<0.000000e+00> : vector<8x64xf32>
    %420 = tpu.matmul %5, %419, %cst_154 {dimension_numbers = #tpu.dot_dimension_numbers<[1], [0], [0], [1], [0, 0, 1, 1], [], []>} : vector<8x16xf32>, vector<16x64xf32>, vector<8x64xf32> -> vector<8x64xf32>
    %cst_155 = arith.constant dense<0.000000e+00> : vector<8x64xf32>
    %421 = tpu.matmul %420, %6, %cst_155 {dimension_numbers = #tpu.dot_dimension_numbers<[1], [0], [0], [1], [0, 0, 1, 1], [], []>} : vector<8x64xf32>, vector<64x64xf32>, vector<8x64xf32> -> vector<8x64xf32>
    %cst_156 = arith.constant dense<0.000000e+00> : vector<16x64xf32>
    %422 = tpu.matmul %4, %421, %cst_156 {dimension_numbers = #tpu.dot_dimension_numbers<[1], [0], [0], [1], [0, 0, 1, 1], [], []>} : vector<16x8xf32>, vector<8x64xf32>, vector<16x64xf32> -> vector<16x64xf32>
    %423 = arith.subf %419, %422 : vector<16x64xf32>
    %424 = arith.mulf %423, %423 : vector<16x64xf32>
    %cst_157 = arith.constant dense<0.000000e+00> : vector<8x64xf32>
    %425 = tpu.matmul %5, %424, %cst_157 {dimension_numbers = #tpu.dot_dimension_numbers<[1], [0], [0], [1], [0, 0, 1, 1], [], []>} : vector<8x16xf32>, vector<16x64xf32>, vector<8x64xf32> -> vector<8x64xf32>
    %cst_158 = arith.constant dense<0.000000e+00> : vector<8x64xf32>
    %426 = tpu.matmul %425, %6, %cst_158 {dimension_numbers = #tpu.dot_dimension_numbers<[1], [0], [0], [1], [0, 0, 1, 1], [], []>} : vector<8x64xf32>, vector<64x64xf32>, vector<8x64xf32> -> vector<8x64xf32>
    %cst_159 = arith.constant 9.99999974E-6 : f32
    %427 = vector.broadcast %cst_159 : f32 to vector<8x64xf32>
    %428 = arith.addf %426, %427 : vector<8x64xf32>
    %429 = math.rsqrt %428 : vector<8x64xf32>
    %cst_160 = arith.constant dense<0.000000e+00> : vector<16x64xf32>
    %430 = tpu.matmul %4, %429, %cst_160 {dimension_numbers = #tpu.dot_dimension_numbers<[1], [0], [0], [1], [0, 0, 1, 1], [], []>} : vector<16x8xf32>, vector<8x64xf32>, vector<16x64xf32> -> vector<16x64xf32>
    %431 = arith.mulf %423, %430 : vector<16x64xf32>
    %c25 = arith.constant 25 : index
    %c0_161 = arith.constant 0 : index
    %432 = vector.load %arg10[%c25, %c0_161] : memref<32x128xf32, #tpu.memory_space<vmem>>, vector<1x64xf32>
    %433 = vector.broadcast %432 : vector<1x64xf32> to vector<16x64xf32>
    %434 = arith.mulf %431, %433 : vector<16x64xf32>
    %c26 = arith.constant 26 : index
    %c0_162 = arith.constant 0 : index
    %435 = vector.load %arg10[%c26, %c0_162] : memref<32x128xf32, #tpu.memory_space<vmem>>, vector<1x64xf32>
    %436 = vector.broadcast %435 : vector<1x64xf32> to vector<16x64xf32>
    %437 = arith.addf %434, %436 : vector<16x64xf32>
    %438 = arith.negf %437 : vector<16x64xf32>
    %439 = math.exp %438 : vector<16x64xf32>
    %cst_163 = arith.constant 1.000000e+00 : f32
    %440 = vector.broadcast %cst_163 : f32 to vector<16x64xf32>
    %441 = arith.addf %440, %439 : vector<16x64xf32>
    %442 = arith.divf %440, %441 : vector<16x64xf32>
    %443 = arith.mulf %437, %442 : vector<16x64xf32>
    %c1072 = arith.constant 1072 : index
    %c0_164 = arith.constant 0 : index
    %444 = vector.load %arg11[%c1072, %c0_164] : memref<1136x256xbf16, #tpu.memory_space<vmem>>, vector<64x128xbf16>
    %445 = arith.truncf %443 : vector<16x64xf32> to vector<16x64xbf16>
    %cst_165 = arith.constant dense<0.000000e+00> : vector<16x128xf32>
    %446 = tpu.matmul %445, %444, %cst_165 {dimension_numbers = #tpu.dot_dimension_numbers<[1], [0], [0], [1], [0, 0, 1, 1], [], []>} : vector<16x64xbf16>, vector<64x128xbf16>, vector<16x128xf32> -> vector<16x128xf32>
    %c27 = arith.constant 27 : index
    %c0_166 = arith.constant 0 : index
    %447 = vector.load %arg10[%c27, %c0_166] : memref<32x128xf32, #tpu.memory_space<vmem>>, vector<1x128xf32>
    %448 = vector.broadcast %447 : vector<1x128xf32> to vector<16x128xf32>
    %449 = arith.addf %446, %448 : vector<16x128xf32>
    %c0_167 = arith.constant 0 : index
    %c0_168 = arith.constant 0 : index
    %450 = vector.load %arg12[%c0_167, %c0_168] : memref<16x128xf32, #tpu.memory_space<vmem>>, vector<16x128xf32>
    tpu.vector_store %arg12[%c0_167, %c0_168], %449 {strides = array<i32>} : memref<16x128xf32, #tpu.memory_space<vmem>>, vector<16x128xf32>,
    return
  }
  func.func @transform_0(%arg0: i32) -> (i32, i32) {
    %c0_i32 = arith.constant 0 : i32
    %c0_i32_0 = arith.constant 0 : i32
    %c0_i32_1 = arith.constant 0 : i32
    return %c0_i32, %c0_i32_0 : i32, i32
  }
  func.func @transform_1(%arg0: i32) -> (i32, i32) {
    %c0_i32 = arith.constant 0 : i32
    %c0_i32_0 = arith.constant 0 : i32
    %c0_i32_1 = arith.constant 0 : i32
    return %c0_i32, %c0_i32_0 : i32, i32
  }
  func.func @transform_2(%arg0: i32) -> (i32, i32) {
    %c0_i32 = arith.constant 0 : i32
    %c0_i32_0 = arith.constant 0 : i32
    %c0_i32_1 = arith.constant 0 : i32
    return %c0_i32, %c0_i32_0 : i32, i32
  }
  func.func @transform_3(%arg0: i32) -> (i32, i32) {
    %c0_i32 = arith.constant 0 : i32
    %c0_i32_0 = arith.constant 0 : i32
    %c0_i32_1 = arith.constant 0 : i32
    return %c0_i32, %c0_i32_0 : i32, i32
  }
  func.func @transform_4(%arg0: i32) -> (i32, i32) {
    %c0_i32 = arith.constant 0 : i32
    %c0_i32_0 = arith.constant 0 : i32
    %c0_i32_1 = arith.constant 0 : i32
    return %c0_i32, %c0_i32_0 : i32, i32
  }
  func.func @transform_5(%arg0: i32) -> (i32, i32) {
    %c0_i32 = arith.constant 0 : i32
    %c0_i32_0 = arith.constant 0 : i32
    %c0_i32_1 = arith.constant 0 : i32
    return %c0_i32, %c0_i32_0 : i32, i32
  }
  func.func @transform_6(%arg0: i32) -> (i32, i32) {
    %c0_i32 = arith.constant 0 : i32
    %c0_i32_0 = arith.constant 0 : i32
    %c0_i32_1 = arith.constant 0 : i32
    return %c0_i32, %c0_i32_0 : i32, i32
  }
  func.func @transform_7(%arg0: i32) -> (i32, i32) {
    %c0_i32 = arith.constant 0 : i32
    %c0_i32_0 = arith.constant 0 : i32
    %c0_i32_1 = arith.constant 0 : i32
    return %c0_i32, %c0_i32_0 : i32, i32
  }
  func.func @transform_8(%arg0: i32) -> (i32, i32) {
    %c0_i32 = arith.constant 0 : i32
    %c0_i32_0 = arith.constant 0 : i32
    %c0_i32_1 = arith.constant 0 : i32
    return %c0_i32, %c0_i32_0 : i32, i32
  }
  func.func @transform_9(%arg0: i32) -> (i32, i32) {
    %c0_i32 = arith.constant 0 : i32
    %c0_i32_0 = arith.constant 0 : i32
    %c0_i32_1 = arith.constant 0 : i32
    return %c0_i32, %c0_i32_0 : i32, i32
  }
  func.func @transform_10(%arg0: i32) -> (i32, i32) {
    %c0_i32 = arith.constant 0 : i32
    %c0_i32_0 = arith.constant 0 : i32
    %c0_i32_1 = arith.constant 0 : i32
    return %c0_i32, %c0_i32_0 : i32, i32
  }
  func.func @transform_11(%arg0: i32) -> (i32, i32) {
    %c0_i32 = arith.constant 0 : i32
    %c0_i32_0 = arith.constant 0 : i32
    %c0_i32_1 = arith.constant 0 : i32
    return %c0_i32, %c0_i32_0 : i32, i32
  }
}

</mosaic_0001>

<bundles_post_ra>
// kernel: unet_forward.1
= control target key start
LH: loop header
LB: loop body
LE: loop exit
PB: predicated region body
PF: predicated region fallthrough
CT: control target
= control target key end

     0   :  { %16 = vsyncpa [#allocation3], 0  ;;  %s6933_s0 = inlined_call_operand.vmem [shape: f32[16,16], index: 0, kind: input, shape index: {}]   ;;  %s6934_s1 = inlined_call_operand.vmem [shape: f32[8,64], index: 1, kind: input, shape index: {}]   ;;  %s6935_s2 = inlined_call_operand.hbm [shape: f32[16,64], index: 2, kind: input, shape index: {}]   ;;  %s6936_s3 = inlined_call_operand.vmem [shape: f32[16,32], index: 3, kind: input, shape index: {}]   ;;  %s6937_s4 = inlined_call_operand.vmem [shape: f32[16,8], index: 4, kind: input, shape index: {}]   ;;  %s6938_s5 = inlined_call_operand.hbm [shape: f32[8,16], index: 5, kind: input, shape index: {}]   ;;  %s6939_s6 = inlined_call_operand.vmem [shape: f32[64,64], index: 6, kind: input, shape index: {}]   ;;  %s6940_s7 = inlined_call_operand.hbm [shape: f32[16,16], index: 7, kind: input, shape index: {}]   ;;  %s6941_s8 = inlined_call_operand.hbm [shape: f32[16,16], index: 8, kind: input, shape index: {}]   ;;  %s6942_s9 = inlined_call_operand.hbm [shape: f32[32,128], index: 9, kind: input, shape index: {}]   ;;  %s6943_s10 = inlined_call_operand.hbm [shape: bf16[1136,256], index: 10, kind: input, shape index: {}]   ;;  %s6944_s11 = inlined_call_operand.vmem [shape: f32[16,128], index: 11, kind: output, shape index: {}]  }
   0x1   :  { %17 = vsyncpa [#allocation5], 0 }
   0x2   :  { %18 = vsyncpa [#allocation8], 0 }
   0x3   :  { %19 = vsyncpa [#allocation11], 0  ;;  %s6178_s17 = smov [#allocation4]   ;;  %s6038_s21 = scalar_lea.hbm %s6938_s5, 128 }
   0x4   :  { %s46_s18 = sshll.u32 %s6178_s17, 4  ;;  %p6039_p0 = scmp.ne.s32.totalorder %s6938_s5, %s6038_s21  ;;  %s47_s18 = int_to_ptr.vmem [resolvable:$true] %s46_s18 }
   0x5   :  { %p6042_p1 = scmp.lt.u32.totalorder %s6038_s21, %s6938_s5 }
   0x7   :  { %p6044_p2 = pnand %p6042_p1, %p6039_p0 }
   0x9   :  { %6047 = shalt.err (!%p6044_p2)
}
   0xa   :  { %s6048_s26 = scalar_lea.vmem %s47_s18, 128  ;;  %p6053_p4 = scmp.lt.s32.totalorder %s47_s18, %s47_s18 }
   0xb   :  { %p6049_p3 = scmp.ne.s32.totalorder %s47_s18, %s6048_s26  ;;  %p6054_p5 = scmp.lt.s32.totalorder %s6048_s26, %s6048_s26 }
   0xd   :  { %p6055_p6 = por %p6054_p5, %p6053_p4 }
   0xf   :  { %p6056_p7 = pnand %p6055_p6, %p6049_p3 }
  0x11   :  { %6059 = shalt.err (!%p6056_p7)
}
  0x12   :  { %49 = dma.hbm_to_vmem [thread:$0]  %s6938_s5, 128, %s47_s18, [#allocation5]  }
  0x13   :  { %s6179_s29 = smov [#allocation7]   ;;  %s6180_s12 = smov [#allocation2]  }
  0x14   :  { %s69_s30 = sshll.u32 %s6179_s29, 4  ;;  %s29_s13 = sshll.u32 %s6180_s12, 4  ;;  %s70_s30 = int_to_ptr.vmem [resolvable:$true] %s69_s30  ;;  %s30_s13 = int_to_ptr.vmem [resolvable:$true] %s29_s13 }
  0x15   :  { %s6060_s16 = scalar_lea.hbm %s6941_s8, 256 }
  0x16   :  { %p6061_p8 = scmp.ne.s32.totalorder %s6941_s8, %s6060_s16  ;;  %p6064_p9 = scmp.lt.u32.totalorder %s6060_s16, %s6941_s8 }
  0x18   :  { %p6066_p10 = pnand %p6064_p9, %p6061_p8 }
  0x1a   :  { %6069 = shalt.err (!%p6066_p10)
}
  0x1b   :  { %s6070_s5 = scalar_lea.vmem %s70_s30, 256  ;;  %p6075_p12 = scmp.lt.s32.totalorder %s70_s30, %s70_s30 }
  0x1c   :  { %p6071_p11 = scmp.ne.s32.totalorder %s70_s30, %s6070_s5  ;;  %p6076_p13 = scmp.lt.s32.totalorder %s6070_s5, %s6070_s5 }
  0x1e   :  { %p6077_p0 = por %p6076_p13, %p6075_p12 }
  0x20   :  { %p6078_p1 = pnand %p6077_p0, %p6071_p11 }
  0x22   :  { %6081 = shalt.err (!%p6078_p1)
}
  0x23   :  { %s6181_s18 = smov 128   ;;  %s6182_s22 = smov 8  }
  0x24   :  { %75 = dma.hbm_to_vmem [thread:$0]  %s6941_s8, 256, %s70_s30, [#allocation8], %s6181_s18, %s6181_s18, %s6182_s22  }
  0x25   :  { %s6082_s27 = scalar_lea.hbm %s6935_s2, 256 }
  0x26   :  { %p6083_p2 = scmp.ne.s32.totalorder %s6935_s2, %s6082_s27  ;;  %p6086_p3 = scmp.lt.u32.totalorder %s6082_s27, %s6935_s2 }
  0x28   :  { %p6088_p4 = pnand %p6086_p3, %p6083_p2 }
  0x2a   :  { %6091 = shalt.err (!%p6088_p4)
}
  0x2b   :  { %s6092_s15 = scalar_lea.vmem %s30_s13, 256  ;;  %p6097_p6 = scmp.lt.s32.totalorder %s30_s13, %s30_s13 }
  0x2c   :  { %p6093_p5 = scmp.ne.s32.totalorder %s30_s13, %s6092_s15  ;;  %p6098_p7 = scmp.lt.s32.totalorder %s6092_s15, %s6092_s15 }
  0x2e   :  { %p6099_p8 = por %p6098_p7, %p6097_p6 }
  0x30   :  { %p6100_p9 = pnand %p6099_p8, %p6093_p5 }
  0x32   :  { %6103 = shalt.err (!%p6100_p9)
}
  0x33   :  { %35 = dma.hbm_to_vmem [thread:$0]  %s6935_s2, 256, %s30_s13, [#allocation3], %s6181_s18, %s6181_s18, %s6182_s22  }
  0x34   :  { %s6183_s16 = smov [#allocation6]   ;;  %s6184_s19 = smov [#allocation9]  }
  0x35   :  { %s57_s17 = sshll.u32 %s6183_s16, 4  ;;  %s81_s20 = sshll.u32 %s6184_s19, 4  ;;  %s58_s17 = int_to_ptr.vmem [resolvable:$true] %s57_s17  ;;  %s82_s20 = int_to_ptr.vmem [resolvable:$true] %s81_s20 }
  0x36   :  { %s6104_s23 = scalar_lea.hbm %s6940_s7, 256 }
  0x37   :  { %p6105_p10 = scmp.ne.s32.totalorder %s6940_s7, %s6104_s23  ;;  %p6108_p11 = scmp.lt.u32.totalorder %s6104_s23, %s6940_s7 }
  0x39   :  { %p6110_p12 = pnand %p6108_p11, %p6105_p10 }
  0x3b   :  { %6113 = shalt.err (!%p6110_p12)
}
  0x3c   :  { %s6114_s2 = scalar_lea.vmem %s58_s17, 256  ;;  %p6119_p0 = scmp.lt.s32.totalorder %s58_s17, %s58_s17 }
  0x3d   :  { %p6115_p13 = scmp.ne.s32.totalorder %s58_s17, %s6114_s2  ;;  %p6120_p1 = scmp.lt.s32.totalorder %s6114_s2, %s6114_s2 }
  0x3f   :  { %p6121_p2 = por %p6120_p1, %p6119_p0 }
  0x41   :  { %p6122_p3 = pnand %p6121_p2, %p6115_p13 }
  0x43   :  { %6125 = shalt.err (!%p6122_p3)
}
  0x44   :  { %63 = dma.hbm_to_vmem [thread:$0]  %s6940_s7, 256, %s58_s17, [#allocation5], %s6181_s18, %s6181_s18, %s6182_s22  }
  0x45   :  { %s6126_s14 = scalar_lea.hbm %s6942_s9, 512 }
  0x46   :  { %p6127_p4 = scmp.ne.s32.totalorder %s6942_s9, %s6126_s14  ;;  %p6130_p5 = scmp.lt.u32.totalorder %s6126_s14, %s6942_s9 }
  0x48   :  { %p6132_p6 = pnand %p6130_p5, %p6127_p4 }
  0x4a   :  { %6135 = shalt.err (!%p6132_p6)
}
  0x4b   :  { %s6136_s19 = scalar_lea.vmem %s82_s20, 512  ;;  %p6141_p8 = scmp.lt.s32.totalorder %s82_s20, %s82_s20 }
  0x4c   :  { %p6137_p7 = scmp.ne.s32.totalorder %s82_s20, %s6136_s19  ;;  %p6142_p9 = scmp.lt.s32.totalorder %s6136_s19, %s6136_s19 }
  0x4e   :  { %p6143_p10 = por %p6142_p9, %p6141_p8 }
  0x50   :  { %p6144_p11 = pnand %p6143_p10, %p6137_p7 }
  0x52   :  { %6147 = shalt.err (!%p6144_p11)
}
  0x53   :  { %87 = dma.hbm_to_vmem [thread:$0]  %s6942_s9, 512, %s82_s20, [#allocation8], %s6181_s18, %s6181_s18, %s6182_s22  }
  0x54   :  { %s6185_s21 = smov [#allocation10]   ;;  %s6148_s25 = scalar_lea.hbm %s6943_s10, 18176 }
  0x55   :  { %s93_s5 = sshll.u32 %s6185_s21, 4  ;;  %p6149_p12 = scmp.ne.s32.totalorder %s6943_s10, %s6148_s25  ;;  %s94_s5 = int_to_ptr.vmem [resolvable:$true] %s93_s5 }
  0x56   :  { %p6152_p13 = scmp.lt.u32.totalorder %s6148_s25, %s6943_s10 }
  0x58   :  { %p6154_p0 = pnand %p6152_p13, %p6149_p12 }
  0x5a   :  { %6157 = shalt.err (!%p6154_p0)
}
  0x5b   :  { %s6158_s28 = scalar_lea.vmem %s94_s5, 18176  ;;  %p6163_p2 = scmp.lt.s32.totalorder %s94_s5, %s94_s5 }
  0x5c   :  { %p6159_p1 = scmp.ne.s32.totalorder %s94_s5, %s6158_s28  ;;  %p6164_p3 = scmp.lt.s32.totalorder %s6158_s28, %s6158_s28 }
  0x5e   :  { %p6165_p4 = por %p6164_p3, %p6163_p2 }
  0x60   :  { %p6166_p5 = pnand %p6165_p4, %p6159_p1 }
  0x62   :  { %6169 = shalt.err (!%p6166_p5)
}
  0x63   :  { %99 = dma.hbm_to_vmem [thread:$0]  %s6943_s10, 18176, %s94_s5, [#allocation11], %s6181_s18, %s6181_s18, %s6182_s22  }
  0x64   :  { %6170 = dma.done.wait [#allocation3], 256  }
  0x65   :  { %6171 = vsyncadd [#allocation3], 4294967040 }
  0x66   :  { %6172 = dma.done.wait [#allocation5], 384  }
  0x67   :  { %6173 = vsyncadd [#allocation5], 4294966912 }
  0x68   :  { %6174 = dma.done.wait [#allocation8], 768  }
  0x69   :  { %6175 = vsyncadd [#allocation8], 4294966528 }
  0x6a   :  { %6176 = dma.done.wait [#allocation11], 18176  }
  0x6b   :  { %6177 = vsyncadd [#allocation11], 4294949120  ;;  %v6186_v0 = vmov 0.0   ;;  %vm6187_vm0 = vmmov 0   ;;  %v5824_v1 = vld [vmem:[#allocation10] ss:$8 sps:$4 sm:$0xff]  }
  0x6c   :  { %5124 = vmatprep.subr.bf16.mxu0 %v6186_v0  ;;  %5132 = vmatprep.mubr.msk.bf16.mxu0 %vm6187_vm0, %v6186_v0  ;;  %v5825_v2 = vld [vmem:[#allocation10 + $0x10] ss:$8 sps:$4 sm:$0xff]   ;;  %v5826_v3 = vld [vmem:[#allocation10 + $0x20] ss:$8 sps:$4 sm:$0xff]   ;;  %vm179_vm1 = vcmask 523264   ;;  %vm361_vm2 = vcmask 130048  }
  0x6d   :  { %5136 = vmatprep.subr.bf16.mxu1 %v6186_v0  ;;  %5152 = vmatprep.mubr.msk.bf16.mxu1 %vm6187_vm0, %v6186_v0  ;;  %v5827_v4 = vld [vmem:[#allocation10 + $0x30] ss:$8 sps:$4 sm:$0xff]   ;;  %v121_v5 = vld [vmem:[%s6934_s1] sm:$0xff]  ;;  %v6188_v19 = vmov 0.0|0.0   ;;  %v132_v24 = vld [vmem:[%s6939_s6 + $0x18] sm:$0xff]  ;;  %vm554_vm3 = vcmask 64512  }
  0x6e   :  { %5125 = vmatpush3.bf16.msra.mxu0 %v5824_v1  ;;  %v5828_v6 = vld [vmem:[#allocation10 + $0xc0] ss:$8 sps:$4 sm:$0xff]   ;;  %v149_v7 = vpack.c.bf16 %v121_v5, %v121_v5  ;;  %v120_v9 = vld [vmem:[%s6933_s0 + $0x8] sm:$0xff]  ;;  %v131_v22 = vld [vmem:[%s6939_s6 + $0x10] sm:$0xff]  ;;  %s6190_s9 = smov 48   ;;  %s6191_s20 = smov 64  }
  0x6f   :  { %5126 = vmatprep.subr.bf16.mxu0 %v6186_v0  ;;  %v119_v8 = vld [vmem:[%s6933_s0] sm:$0xff]  ;;  %v5830_v12 = vld [vmem:[#allocation10 + $0x50] ss:$8 sps:$4 sm:$0xff]   ;;  %v6393_v25 = vpack.c.bf16 %v132_v24, %v131_v22  ;;  %v4710_v26 = vld [vmem:[#allocation9] ss:$0 sm:$0xff]  ;;  %s6192_s10 = smov 112  }
  0x70   :  { %v349_v10 = vpack.c.bf16 %v120_v9, %v119_v8  ;;  %v5829_v11 = vld [vmem:[#allocation10 + $0x40] ss:$8 sps:$4 sm:$0xff]   ;;  %v5832_v14 = vld [vmem:[#allocation10 + $0x70] ss:$8 sps:$4 sm:$0xff]   ;;  %s6193_s18 = smov 96   ;;  %s6194_s22 = smov 32  }
  0x71   :  { %5137 = vmatpush3.bf16.msra.mxu1 %v5829_v11  ;;  %v5831_v13 = vld [vmem:[#allocation10 + $0x60] ss:$8 sps:$4 sm:$0xff]   ;;  %v5834_v16 = vld [vmem:[#allocation10 + $0x90] ss:$8 sps:$4 sm:$0xff]   ;;  %s6195_s29 = smov 80   ;;  %s6196_s12 = smov 16  }
  0x72   :  { %5127 = vmatpush3.bf16.msra.mxu0 %v5825_v2  ;;  %5138 = vmatprep.subr.bf16.mxu1 %v6186_v0  ;;  %v5833_v15 = vld [vmem:[#allocation10 + $0x80] ss:$8 sps:$4 sm:$0xff]   ;;  %v5836_v18 = vld [vmem:[#allocation10 + $0xb0] ss:$8 sps:$4 sm:$0xff]   ;;  %vm2897_vm4 = vcmask 261120   ;;  %vm2900_vm5 = vcmask 392192  }
  0x73   :  { %5128 = vmatprep.subr.bf16.mxu0 %v6186_v0  ;;  %v5835_v17 = vld [vmem:[#allocation10 + $0xa0] ss:$8 sps:$4 sm:$0xff]   ;;  %v130_v21 = vld [vmem:[%s6939_s6 + $0x8] sm:$0xff]  ;;  %v6406_v50 = vld [vmem:[#allocation4] sm:$0xff] }
  0x74   :  { %v129_v20 = vld [vmem:[%s6939_s6] sm:$0xff]  ;;  %v4727_v39 = vld [vmem:[#allocation9 + $0x2] ss:$0 sm:$0xff]  ;;  %v123_v43 = vld [vmem:[#allocation2 + $0x8] sm:$0xff] }
  0x75   :  { %5139 = vmatpush3.bf16.msra.mxu1 %v5830_v12  ;;  %v6387_v23 = vpack.c.bf16 %v130_v21, %v129_v20  ;;  %v122_v42 = vld [vmem:[#allocation2] sm:$0xff]  ;;  %v134_v52 = vld [vmem:[%s6939_s6 + $0x28] sm:$0xff]  ;;  %v135_v54 = vld [vmem:[%s6939_s6 + $0x30] sm:$0xff] }
  0x76   :  { %5129 = vmatpush3.bf16.msra.mxu0 %v5826_v3  ;;  %5140 = vmatprep.subr.bf16.mxu1 %v6186_v0  ;;  %v133_v51 = vld [vmem:[%s6939_s6 + $0x20] sm:$0xff]  ;;  %v136_v55 = vld [vmem:[%s6939_s6 + $0x38] sm:$0xff]  ;;  %v6442_v2 = vld [vmem:[%s6937_s4 + $0x8] sm:$0xff] }
  0x77   :  { %5130 = vmatprep.subr.bf16.mxu0 %v6186_v0  ;;  %v6416_v53 = vpack.c.bf16 %v134_v52, %v133_v51  ;;  %v6426_v56 = vpack.c.bf16 %v136_v55, %v135_v54  ;;  %v6433_v63 = vld [vmem:[%s6937_s4] sm:$0xff]  ;;  %v4717_v11 = vld [vmem:[#allocation9 + $0x1] ss:$0 sm:$0xff]  ;;  %v5841_v24 = vld [vmem:[#allocation10 + $0x150] ss:$8 sps:$4 sm:$0xff]  }
  0x78   :  { %v5840_v22 = vld [vmem:[#allocation10 + $0x140] ss:$8 sps:$4 sm:$0xff]   ;;  %v4739_v54 = vld [vmem:[#allocation9 + $0x4] ss:$0 sm:$0xff] }
  0x79   :  { %5141 = vmatpush3.bf16.msra.mxu1 %v5831_v13 }
  0x7a   :  { %5131 = vmatpush3.bf16.msra.mxu0 %v5827_v4  ;;  %5142 = vmatprep.subr.bf16.mxu1 %v6186_v0 }
  0x7b   :  { %5156 = vmatprep.subr.bf16.mxu0 %v6186_v0 }
  0x7d   :  { %5133 = vmatmul.mubr.msk.bf16.vlgmr.msra.gmra.mrb[0].mxu0 %vm179_vm1, %v149_v7  ;;  %5143 = vmatpush3.bf16.msra.mxu1 %v5832_v14  ;;  %v5837_v14 = vld [vmem:[#allocation10 + $0x110] ss:$8 sps:$4 sm:$0xff]  }
  0x7e   :  { %5157 = vmatpush3.bf16.msra.mxu0 %v5828_v6  ;;  %5158 = vmatprep.mubr.msk.bf16.mxu0 %vm6187_vm0, %v6186_v0 }
  0x7f   :  { %5144 = vmatprep.subr.bf16.mxu1 %v6186_v0  ;;  %5658 = vmatprep.subr.bf16.mxu0 %v6188_v19 }
  0x81   :  { %5145 = vmatpush3.bf16.msra.mxu1 %v5833_v15 }
  0x82   :  { %5146 = vmatprep.subr.bf16.mxu1 %v6186_v0 }
  0x85   :  { %5159 = vmatmul.mubr.msk.bf16.vlgmr.msra.gmra.mrb[4].mxu0 %vm361_vm2, %v349_v10  ;;  %5147 = vmatpush3.bf16.msra.mxu1 %v5834_v16 }
  0x86   :  { %5185 = vmatprep.mubr.msk.f32.mxu0 %vm6187_vm0, %v6186_v0  ;;  %5148 = vmatprep.subr.bf16.mxu1 %v6186_v0 }
  0x87   :  { %5660 = vmatpush3.bf16.msra.mxu0 %v6387_v23 }
  0x88   :  { %5661 = vmatprep.subr.bf16.mxu0 %v6188_v19 }
  0x89   :  { %5149 = vmatpush3.bf16.msra.mxu1 %v5835_v17  ;;  %v5838_v17 = vld [vmem:[#allocation10 + $0x120] ss:$8 sps:$4 sm:$0xff]  }
  0x8a   :  { %5150 = vmatprep.subr.bf16.mxu1 %v6186_v0 }
  0x8b   :  { %5663 = vmatpush3.bf16.msra.mxu0 %v6393_v25 }
  0x8c   :  { %5664 = vmatprep.subr.bf16.mxu0 %v6188_v19 }
  0x8d   :  { %5151 = vmatpush3.bf16.msra.mxu1 %v5836_v18  ;;  %v5839_v18 = vld [vmem:[#allocation10 + $0x130] ss:$8 sps:$4 sm:$0xff]  }
  0x8e   :  { %5655 = vmatprep.subr.bf16.mxu1 %v6188_v19 }
  0x8f   :  { %5666 = vmatpush3.bf16.msra.mxu0 %v6416_v53 }
  0x90   :  { %5667 = vmatprep.subr.bf16.mxu0 %v6188_v19 }
  0x93   :  { %5669 = vmatpush3.bf16.msra.mxu0 %v6426_v56 }
 0x150   :  { %v217_v27 = vpop.f32.mrb[0].mxu0 }
 0x151   :  { %v218_v28 = vadd.f32 %v4710_v26, %v217_v27  ;;  %v5134_v29 = vpop.f32.mrb[1].mxu0  ;;  %v5842_v26 = vld [vmem:[#allocation10 + $0x160] ss:$8 sps:$4 sm:$0xff]   ;;  %v5843_v27 = vld [vmem:[#allocation10 + $0x170] ss:$8 sps:$4 sm:$0xff]  }
 0x152   :  { %v220_v30 = vpop.f32.mrb[2].mxu0  ;;  %v5844_v29 = vld [vmem:[#allocation10 + $0x180] ss:$8 sps:$4 sm:$0xff]  }
 0x153   :  { %v4716_v31 = vmul.f32 -1.442695, %v218_v28  ;;  %v5135_v32 = vpop.f32.mrb[3].mxu0 }
 0x155   :  { %5911 = vpow2.f32 %v4716_v31 }
 0x158   :  { %v399_v33 = vpop.f32.mrb[4].mxu0 }
 0x159   :  { %v5160_v34 = vpop.f32.mrb[5].mxu0  ;;  %v400_v40 = vadd.f32 %v4727_v39, %v399_v33 }
 0x15a   :  { %v402_v35 = vpop.f32.mrb[6].mxu0 }
 0x15b   :  { %v5161_v36 = vpop.f32.mrb[7].mxu0  ;;  %v403_v41 = vadd.f32 %v4727_v39, %v402_v35  ;;  %v6398_v44 = vadd.f32 %v400_v40, %v122_v42  ;;  %v5848_v39 = vld [vmem:[#allocation10 + $0x100] ss:$8 sps:$4 sm:$0xff]   ;;  %v4748_v40 = vld [vmem:[#allocation9 + $0x6] ss:$0 sm:$0xff] }
 0x15c   :  { %v5845_v36 = vld [vmem:[#allocation10 + $0xd0] ss:$8 sps:$4 sm:$0xff]  }
 0x15d   :  { %v6400_v45 = vadd.f32 %v403_v41, %v123_v43 }
 0x15f   :  { %v5912_v37 = vpop.eup %5911  ;;  %v5656_v48 = vpack.c.bf16 %v6400_v45, %v6398_v44 }
 0x160   :  { %v226_v38 = vadd.f32 1.0, %v5912_v37  ;;  %v5846_v37 = vld [vmem:[#allocation10 + $0xe0] ss:$8 sps:$4 sm:$0xff]  }
 0x162   :  { %5913 = vrcp.f32 %v226_v38  ;;  %v5847_v38 = vld [vmem:[#allocation10 + $0xf0] ss:$8 sps:$4 sm:$0xff]  }
 0x16c   :  { %v5914_v46 = vpop.eup %5913 }
 0x16d   :  { %v229_v47 = vmul.f32 %v5914_v46, %v218_v28 }
 0x16f   :  { %v246_v49 = vpack.c.bf16 %v229_v47, %v229_v47 }
 0x171   :  { %5153 = vmatmul.mubr.bf16.vlgmr.msra.gmra.mrb[0].mxu1 %v246_v49  ;;  %v4738_v49 = vld [vmem:[#allocation9 + $0x3] ss:$0 sm:$0xff] }
 0x172   :  { %5657 = vmatpush3.bf16.msra.mxu1 %v5656_v48  ;;  %5166 = vmatprep.mubr.msk.f32.mxu1 %vm6187_vm0, %v6186_v0 }
 0x179   :  { %5167 = vmatmul.mubr.msk.f32.vlgmr.msra.gmra.mrb[4].mxu1 %vm361_vm2, %v6406_v50 }
 0x17a   :  { %5190 = vmatprep.mubr.msk.f32.mxu1 %vm554_vm3, %v6433_v63 }
 0x244   :  { %v334_v57 = vpop.f32.mrb[0].mxu1 }
 0x245   :  { %v5154_v58 = vpop.f32.mrb[1].mxu1  ;;  %v335_v12 = vadd.f32 %v4717_v11, %v334_v57 }
 0x246   :  { %v337_v59 = vpop.f32.mrb[2].mxu1 }
 0x247   :  { %v5155_v60 = vpop.f32.mrb[3].mxu1  ;;  %v4726_v13 = vmul.f32 -1.442695, %v335_v12 }
 0x249   :  { %5915 = vpow2.f32 %v4726_v13 }
 0x24c   :  { %v477_v61 = vpop.f32.mrb[4].mxu1 }
 0x24d   :  { %v5168_v62 = vpop.f32.mrb[5].mxu1  ;;  %5186 = vmatmul.mubr.msk.f32.vlgmr.msra.gmra.mrb[8].mxu0 %vm179_vm1, %v477_v61 }
 0x24e   :  { %5221 = vmatprep.mubr.msk.f32.mxu0 %vm554_vm3, %v6433_v63 }
 0x253   :  { %v5916_v20 = vpop.eup %5915 }
 0x254   :  { %v343_v21 = vadd.f32 1.0, %v5916_v20 }
 0x256   :  { %5917 = vrcp.f32 %v343_v21 }
 0x260   :  { %v5918_v28 = vpop.eup %5917 }
 0x261   :  { %v346_v30 = vmul.f32 %v5918_v28, %v335_v12 }
 0x263   :  { %v987_v31 = vpack.c.bf16 %v346_v30, %v346_v30 }
 0x320   :  { %v550_v1 = vpop.f32.mrb[8].mxu0 }
 0x321   :  { %v5187_v3 = vpop.f32.mrb[9].mxu0  ;;  %5188 = vmatprep.subr.mxu1 %v550_v1 }
 0x322   :  { %5189 = vmatpush3.msra.mxu1 %v550_v1 }
 0x323   :  { %5191 = vmatmul.mubr.msk.f32.vlgmr.msra.gmra.mrb[6].mxu1 %vm554_vm3, %v6442_v2  ;;  %5670 = vmatprep.subr.bf16.mxu1 %v6188_v19 }
 0x324   :  { %5197 = vmatprep.mubr.msk.f32.mxu1 %vm6187_vm0, %v6186_v0 }
 0x3f6   :  { %v5192_v4 = vpop.f32.mrb[6].mxu1 }
 0x3f7   :  { %v6450_v5 = vsub.f32 %v6400_v45, %v5192_v4  ;;  %v627_v6 = vpop.f32.mrb[7].mxu1 }
 0x3f8   :  { %v6453_v7 = vsub.f32 %v6398_v44, %v627_v6 }
 0x3f9   :  { %v639_v8 = vmul.f32 %v6450_v5, %v6450_v5 }
 0x3fa   :  { %v638_v9 = vmul.f32 %v6453_v7, %v6453_v7 }
 0x3fc   :  { %v5671_v10 = vpack.c.bf16 %v639_v8, %v638_v9 }
 0x3fe   :  { %5672 = vmatpush3.bf16.msra.mxu1 %v5671_v10 }
 0x3ff   :  { %5673 = vmatprep.subr.bf16.mxu1 %v6188_v19 }
 0x401   :  { %5198 = vmatmul.mubr.msk.f32.vlgmr.msra.gmra.mrb[8].mxu1 %vm361_vm2, %v6406_v50 }
 0x402   :  { %5675 = vmatpush3.bf16.msra.mxu1 %v6387_v23  ;;  %5216 = vmatprep.mubr.msk.f32.mxu1 %vm6187_vm0, %v6186_v0 }
 0x403   :  { %5676 = vmatprep.subr.bf16.mxu1 %v6188_v19 }
 0x406   :  { %5678 = vmatpush3.bf16.msra.mxu1 %v6393_v25 }
 0x407   :  { %5679 = vmatprep.subr.bf16.mxu1 %v6188_v19 }
 0x40a   :  { %5681 = vmatpush3.bf16.msra.mxu1 %v6416_v53 }
 0x40b   :  { %5682 = vmatprep.subr.bf16.mxu1 %v6188_v19 }
 0x40e   :  { %5684 = vmatpush3.bf16.msra.mxu1 %v6426_v56 }
 0x40f   :  { %5236 = vmatprep.subr.bf16.mxu1 %v6186_v0 }
 0x4d4   :  { %v706_v15 = vpop.f32.mrb[8].mxu1 }
 0x4d5   :  { %v5199_v16 = vpop.f32.mrb[9].mxu1  ;;  %5217 = vmatmul.mubr.msk.f32.vlgmr.msra.gmra.mrb[10].mxu1 %vm179_vm1, %v706_v15  ;;  %v4742_v15 = vld [vmem:[#allocation9 + $0x5] ss:$0 sm:$0xff] }
 0x4d6   :  { %5237 = vmatpush3.bf16.msra.mxu1 %v5837_v14  ;;  %5252 = vmatprep.mubr.msk.bf16.mxu1 %vm6187_vm0, %v6186_v0 }
 0x4d7   :  { %5238 = vmatprep.subr.bf16.mxu1 %v6186_v0 }
 0x4da   :  { %5239 = vmatpush3.bf16.msra.mxu1 %v5838_v17 }
 0x4db   :  { %5240 = vmatprep.subr.bf16.mxu1 %v6186_v0 }
 0x4de   :  { %5241 = vmatpush3.bf16.msra.mxu1 %v5839_v18 }
 0x4df   :  { %5242 = vmatprep.subr.bf16.mxu1 %v6186_v0 }
 0x4e2   :  { %5243 = vmatpush3.bf16.msra.mxu1 %v5840_v22 }
 0x4e3   :  { %5244 = vmatprep.subr.bf16.mxu1 %v6186_v0 }
 0x4e6   :  { %5245 = vmatpush3.bf16.msra.mxu1 %v5841_v24 }
 0x4e7   :  { %5246 = vmatprep.subr.bf16.mxu1 %v6186_v0 }
 0x4ea   :  { %5247 = vmatpush3.bf16.msra.mxu1 %v5842_v26 }
 0x4eb   :  { %5248 = vmatprep.subr.bf16.mxu1 %v6186_v0 }
 0x4ee   :  { %5249 = vmatpush3.bf16.msra.mxu1 %v5843_v27 }
 0x4ef   :  { %5250 = vmatprep.subr.bf16.mxu1 %v6186_v0 }
 0x4f2   :  { %5251 = vmatpush3.bf16.msra.mxu1 %v5844_v29 }
 0x4f3   :  { %5700 = vmatprep.subr.bf16.mxu1 %v6188_v19 }
 0x4f5   :  { %5253 = vmatmul.mubr.bf16.vlgmr.msra.gmra.mrb[12].mxu1 %v987_v31 }
 0x4f6   :  { %5296 = vmatprep.mubr.msk.f32.mxu1 %vm6187_vm0, %v6186_v0 }
 0x5a8   :  { %v779_v32 = vpop.f32.mrb[10].mxu1 }
 0x5a9   :  { %v780_v33 = vadd.f32 1e-05, %v779_v32  ;;  %v5218_v34 = vpop.f32.mrb[11].mxu1 }
 0x5ab   :  { %5919 = vrsqrt.f32 %v780_v33 }
 0x5b5   :  { %v5920_v35 = vpop.eup %5919 }
 0x5b6   :  { %5219 = vmatprep.subr.mxu0 %v5920_v35 }
 0x5b7   :  { %5220 = vmatpush3.msra.mxu0 %v5920_v35 }
 0x5b8   :  { %5222 = vmatmul.mubr.msk.f32.vlgmr.msra.gmra.mrb[10].mxu0 %vm554_vm3, %v6442_v2  ;;  %5224 = vmatprep.subr.bf16.mxu0 %v6186_v0 }
 0x5b9   :  { %5225 = vmatpush3.bf16.msra.mxu0 %v5845_v36  ;;  %5232 = vmatprep.mubr.msk.bf16.mxu0 %vm6187_vm0, %v6186_v0 }
 0x5ba   :  { %5226 = vmatprep.subr.bf16.mxu0 %v6186_v0 }
 0x5bd   :  { %5227 = vmatpush3.bf16.msra.mxu0 %v5846_v37 }
 0x5be   :  { %5228 = vmatprep.subr.bf16.mxu0 %v6186_v0 }
 0x5c1   :  { %5229 = vmatpush3.bf16.msra.mxu0 %v5847_v38 }
 0x5c2   :  { %5230 = vmatprep.subr.bf16.mxu0 %v6186_v0 }
 0x5c5   :  { %5231 = vmatpush3.bf16.msra.mxu0 %v5848_v39 }
 0x5c8   :  { %v1075_v41 = vpop.f32.mrb[12].mxu1 }
 0x5c9   :  { %v1076_v42 = vadd.f32 %v4748_v40, %v1075_v41  ;;  %v5254_v43 = vpop.f32.mrb[13].mxu1 }
 0x5ca   :  { %v1078_v46 = vpop.f32.mrb[14].mxu1  ;;  %v5849_v43 = vld [vmem:[#allocation10 + $0x190] ss:$8 sps:$4 sm:$0xff]  }
 0x5cb   :  { %v5255_v47 = vpop.f32.mrb[15].mxu1  ;;  %5256 = vmatprep.subr.mxu0 %v1076_v42  ;;  %v5850_v46 = vld [vmem:[#allocation10 + $0x1a0] ss:$8 sps:$4 sm:$0xff]  }
 0x5cc   :  { %v5851_v47 = vld [vmem:[#allocation10 + $0x1b0] ss:$8 sps:$4 sm:$0xff]  }
 0x68b   :  { %v5223_v48 = vpop.f32.mrb[10].mxu0 }
 0x68c   :  { %v860_v51 = vmul.f32 %v5223_v48, %v6450_v5  ;;  %v850_v52 = vpop.f32.mrb[11].mxu0  ;;  %v5852_v48 = vld [vmem:[#allocation10 + $0x1c0] ss:$8 sps:$4 sm:$0xff]  }
 0x68d   :  { %v859_v55 = vmul.f32 %v850_v52, %v6453_v7 }
 0x68e   :  { %v867_v57 = vmul.f32 %v4738_v49, %v860_v51  ;;  %v4767_v51 = vld [vmem:[#allocation9 + $0x7] ss:$0 sm:$0xff] }
 0x68f   :  { %v866_v58 = vmul.f32 %v4738_v49, %v859_v55  ;;  %v4768_v55 = vld [vmem:[#allocation9 + $0x8] ss:$0 sm:$0xff] }
 0x690   :  { %v874_v59 = vadd.f32 %v4739_v54, %v867_v57 }
 0x691   :  { %v873_v60 = vadd.f32 %v4739_v54, %v866_v58 }
 0x692   :  { %v4741_v61 = vmul.f32 -1.442695, %v874_v59 }
 0x693   :  { %v4740_v62 = vmul.f32 -1.442695, %v873_v60 }
 0x694   :  { %5921 = vpow2.f32 %v4741_v61 }
 0x695   :  { %5923 = vpow2.f32 %v4740_v62 }
 0x69e   :  { %v5922_v1 = vpop.eup %5921 }
 0x69f   :  { %v5924_v3 = vpop.eup %5923  ;;  %v882_v4 = vadd.f32 1.0, %v5922_v1 }
 0x6a0   :  { %v881_v6 = vadd.f32 1.0, %v5924_v3 }
 0x6a1   :  { %5925 = vrcp.f32 %v882_v4 }
 0x6a2   :  { %5927 = vrcp.f32 %v881_v6 }
 0x6ab   :  { %v5926_v8 = vpop.eup %5925 }
 0x6ac   :  { %v5928_v5 = vpop.eup %5927  ;;  %v888_v9 = vmul.f32 %v5926_v8, %v874_v59 }
 0x6ad   :  { %v887_v10 = vmul.f32 %v5928_v5, %v873_v60 }
 0x6af   :  { %v897_v11 = vpack.c.bf16 %v888_v9, %v887_v10 }
 0x6b1   :  { %5233 = vmatmul.mubr.msk.bf16.vlgmr.msra.gmra.mrb[12].mxu0 %vm179_vm1, %v897_v11 }
 0x6b2   :  { %5257 = vmatpush3.msra.mxu0 %v1076_v42  ;;  %5258 = vmatprep.mubr.msk.f32.mxu0 %vm554_vm3, %v6433_v63 }
 0x6b3   :  { %5685 = vmatprep.subr.bf16.mxu0 %v6188_v19 }
 0x6b9   :  { %5259 = vmatmul.mubr.msk.f32.vlgmr.msra.gmra.mrb[16].mxu0 %vm554_vm3, %v6442_v2 }
 0x6ba   :  { %5265 = vmatprep.mubr.msk.f32.mxu0 %vm6187_vm0, %v6186_v0 }
 0x784   :  { %v964_v7 = vpop.f32.mrb[12].mxu0 }
 0x785   :  { %v5234_v12 = vpop.f32.mrb[13].mxu0  ;;  %v965_v17 = vadd.f32 %v4742_v15, %v964_v7 }
 0x786   :  { %v967_v13 = vpop.f32.mrb[14].mxu0  ;;  %v4771_v12 = vld [vmem:[#allocation9 + $0x9] ss:$0 sm:$0xff] }
 0x787   :  { %v5235_v14 = vpop.f32.mrb[15].mxu0  ;;  %v968_v16 = vadd.f32 %v4742_v15, %v967_v13 }
 0x78c   :  { %v5260_v18 = vpop.f32.mrb[16].mxu0 }
 0x78d   :  { %v1157_v20 = vadd.f32 %v5260_v18, %v968_v16  ;;  %v1147_v21 = vpop.f32.mrb[17].mxu0 }
 0x78e   :  { %v1156_v22 = vadd.f32 %v1147_v21, %v965_v17 }
 0x790   :  { %v5686_v24 = vpack.c.bf16 %v1157_v20, %v1156_v22 }
 0x792   :  { %5687 = vmatpush3.bf16.msra.mxu0 %v5686_v24 }
 0x793   :  { %5688 = vmatprep.subr.bf16.mxu0 %v6188_v19 }
 0x795   :  { %5266 = vmatmul.mubr.msk.f32.vlgmr.msra.gmra.mrb[18].mxu0 %vm361_vm2, %v6406_v50 }
 0x796   :  { %5690 = vmatpush3.bf16.msra.mxu0 %v6387_v23  ;;  %5284 = vmatprep.mubr.msk.f32.mxu0 %vm6187_vm0, %v6186_v0 }
 0x797   :  { %5691 = vmatprep.subr.bf16.mxu0 %v6188_v19 }
 0x79a   :  { %5693 = vmatpush3.bf16.msra.mxu0 %v6393_v25 }
 0x79b   :  { %5694 = vmatprep.subr.bf16.mxu0 %v6188_v19 }
 0x79e   :  { %5696 = vmatpush3.bf16.msra.mxu0 %v6416_v53 }
 0x79f   :  { %5697 = vmatprep.subr.bf16.mxu0 %v6188_v19 }
 0x7a2   :  { %5699 = vmatpush3.bf16.msra.mxu0 %v6426_v56 }
 0x868   :  { %v1224_v26 = vpop.f32.mrb[18].mxu0 }
 0x869   :  { %v5267_v27 = vpop.f32.mrb[19].mxu0  ;;  %5285 = vmatmul.mubr.msk.f32.vlgmr.msra.gmra.mrb[20].mxu0 %vm179_vm1, %v1224_v26 }
 0x86a   :  { %5289 = vmatprep.mubr.msk.f32.mxu0 %vm554_vm3, %v6433_v63 }
 0x93c   :  { %v1297_v28 = vpop.f32.mrb[20].mxu0 }
 0x93d   :  { %v5286_v29 = vpop.f32.mrb[21].mxu0  ;;  %5287 = vmatprep.subr.mxu0 %v1297_v28 }
 0x93e   :  { %5288 = vmatpush3.msra.mxu0 %v1297_v28 }
 0x93f   :  { %5290 = vmatmul.mubr.msk.f32.vlgmr.msra.gmra.mrb[22].mxu0 %vm554_vm3, %v6442_v2  ;;  %5703 = vmatprep.subr.bf16.mxu0 %v6188_v19 }
 0x940   :  { %5705 = vmatpush3.bf16.msra.mxu0 %v6387_v23  ;;  %5315 = vmatprep.mubr.msk.f32.mxu0 %vm6187_vm0, %v6186_v0 }
 0x941   :  { %5706 = vmatprep.subr.bf16.mxu0 %v6188_v19 }
 0x944   :  { %5708 = vmatpush3.bf16.msra.mxu0 %v6393_v25 }
 0x945   :  { %5709 = vmatprep.subr.bf16.mxu0 %v6188_v19 }
 0x948   :  { %5711 = vmatpush3.bf16.msra.mxu0 %v6416_v53 }
 0x949   :  { %5712 = vmatprep.subr.bf16.mxu0 %v6188_v19 }
 0x94c   :  { %5714 = vmatpush3.bf16.msra.mxu0 %v6426_v56 }
 0x94d   :  { %5715 = vmatprep.subr.bf16.mxu0 %v6188_v19 }
 0xa12   :  { %v5291_v30 = vpop.f32.mrb[22].mxu0 }
 0xa13   :  { %v1377_v31 = vsub.f32 %v1157_v20, %v5291_v30  ;;  %v1367_v32 = vpop.f32.mrb[23].mxu0 }
 0xa14   :  { %v1376_v33 = vsub.f32 %v1156_v22, %v1367_v32 }
 0xa15   :  { %v1379_v34 = vmul.f32 %v1377_v31, %v1377_v31 }
 0xa16   :  { %v1378_v35 = vmul.f32 %v1376_v33, %v1376_v33 }
 0xa18   :  { %v5701_v36 = vpack.c.bf16 %v1379_v34, %v1378_v35 }
 0xa1a   :  { %5702 = vmatpush3.bf16.msra.mxu1 %v5701_v36 }
 0xa1d   :  { %5297 = vmatmul.mubr.msk.f32.vlgmr.msra.gmra.mrb[16].mxu1 %vm361_vm2, %v6406_v50 }
 0xa1e   :  { %5320 = vmatprep.mubr.msk.f32.mxu1 %vm554_vm3, %v6433_v63 }
 0xaf0   :  { %v1446_v37 = vpop.f32.mrb[16].mxu1 }
 0xaf1   :  { %v5298_v38 = vpop.f32.mrb[17].mxu1  ;;  %5316 = vmatmul.mubr.msk.f32.vlgmr.msra.gmra.mrb[24].mxu0 %vm179_vm1, %v1446_v37 }
 0xaf2   :  { %5339 = vmatprep.mubr.msk.f32.mxu0 %vm6187_vm0, %v6186_v0  ;;  %v5853_v38 = vld [vmem:[#allocation10 + $0x1d0] ss:$8 sps:$4 sm:$0xff]  }
 0xbc4   :  { %v1519_v39 = vpop.f32.mrb[24].mxu0 }
 0xbc5   :  { %v1520_v40 = vadd.f32 1e-05, %v1519_v39  ;;  %v5317_v41 = vpop.f32.mrb[25].mxu0  ;;  %v5854_v39 = vld [vmem:[#allocation10 + $0x1e0] ss:$8 sps:$4 sm:$0xff]  }
 0xbc6   :  { %v5856_v41 = vld [vmem:[#allocation10 + $0x200] ss:$8 sps:$4 sm:$0xff]  }
 0xbc7   :  { %5929 = vrsqrt.f32 %v1520_v40  ;;  %v5855_v40 = vld [vmem:[#allocation10 + $0x1f0] ss:$8 sps:$4 sm:$0xff]  }
 0xbd1   :  { %v5930_v42 = vpop.eup %5929 }
 0xbd2   :  { %5318 = vmatprep.subr.mxu1 %v5930_v42 }
 0xbd3   :  { %5319 = vmatpush3.msra.mxu1 %v5930_v42  ;;  %v4785_v42 = vld [vmem:[#allocation9 + $0xa] ss:$0 sm:$0xff] }
 0xbd4   :  { %5321 = vmatmul.mubr.msk.f32.vlgmr.msra.gmra.mrb[18].mxu1 %vm554_vm3, %v6442_v2  ;;  %5323 = vmatprep.subr.bf16.mxu1 %v6186_v0 }
 0xbd5   :  { %5331 = vmatprep.mubr.msk.bf16.mxu1 %vm6187_vm0, %v6186_v0  ;;  %5324 = vmatpush3.bf16.msra.mxu1 %v5849_v43 }
 0xbd6   :  { %5325 = vmatprep.subr.bf16.mxu1 %v6186_v0 }
 0xbd9   :  { %5326 = vmatpush3.bf16.msra.mxu1 %v5850_v46 }
 0xbda   :  { %5327 = vmatprep.subr.bf16.mxu1 %v6186_v0 }
 0xbdd   :  { %5328 = vmatpush3.bf16.msra.mxu1 %v5851_v47  ;;  %v4786_v47 = vld [vmem:[#allocation9 + $0xb] ss:$0 sm:$0xff] }
 0xbde   :  { %5329 = vmatprep.subr.bf16.mxu1 %v6186_v0 }
 0xbe1   :  { %5330 = vmatpush3.bf16.msra.mxu1 %v5852_v48 }
 0xca7   :  { %v5322_v49 = vpop.f32.mrb[18].mxu1 }
 0xca8   :  { %v1600_v52 = vmul.f32 %v5322_v49, %v1377_v31  ;;  %v1590_v54 = vpop.f32.mrb[19].mxu1 }
 0xca9   :  { %v1599_v57 = vmul.f32 %v1590_v54, %v1376_v33 }
 0xcaa   :  { %v1607_v58 = vmul.f32 %v4767_v51, %v1600_v52 }
 0xcab   :  { %v1606_v59 = vmul.f32 %v4767_v51, %v1599_v57  ;;  %v4787_v57 = vld [vmem:[#allocation9 + $0xc] ss:$0 sm:$0xff] }
 0xcac   :  { %v1614_v60 = vadd.f32 %v4768_v55, %v1607_v58 }
 0xcad   :  { %v1613_v61 = vadd.f32 %v4768_v55, %v1606_v59 }
 0xcae   :  { %v4770_v62 = vmul.f32 -1.442695, %v1614_v60 }
 0xcaf   :  { %v4769_v1 = vmul.f32 -1.442695, %v1613_v61 }
 0xcb0   :  { %5931 = vpow2.f32 %v4770_v62 }
 0xcb1   :  { %5933 = vpow2.f32 %v4769_v1 }
 0xcba   :  { %v5932_v3 = vpop.eup %5931 }
 0xcbb   :  { %v5934_v4 = vpop.eup %5933  ;;  %v1622_v6 = vadd.f32 1.0, %v5932_v3 }
 0xcbc   :  { %v1621_v8 = vadd.f32 1.0, %v5934_v4 }
 0xcbd   :  { %5935 = vrcp.f32 %v1622_v6 }
 0xcbe   :  { %5937 = vrcp.f32 %v1621_v8 }
 0xcc7   :  { %v5936_v5 = vpop.eup %5935 }
 0xcc8   :  { %v5938_v9 = vpop.eup %5937  ;;  %v1628_v10 = vmul.f32 %v5936_v5, %v1614_v60 }
 0xcc9   :  { %v1627_v11 = vmul.f32 %v5938_v9, %v1613_v61 }
 0xccb   :  { %v1637_v7 = vpack.c.bf16 %v1628_v10, %v1627_v11 }
 0xccd   :  { %5332 = vmatmul.mubr.msk.bf16.vlgmr.msra.gmra.mrb[20].mxu1 %vm179_vm1, %v1637_v7 }
 0xcce   :  { %5363 = vmatprep.mubr.msk.f32.mxu1 %vm554_vm3, %v6433_v63 }
 0xda0   :  { %v1704_v13 = vpop.f32.mrb[20].mxu1 }
 0xda1   :  { %v1705_v14 = vadd.f32 %v4771_v12, %v1704_v13  ;;  %v5333_v15 = vpop.f32.mrb[21].mxu1 }
 0xda2   :  { %v1707_v16 = vpop.f32.mrb[22].mxu1  ;;  %v5859_v15 = vld [vmem:[#allocation10 + $0x214] ss:$8 sps:$4 sm:$0xff]  }
 0xda3   :  { %v1708_v17 = vadd.f32 %v4771_v12, %v1707_v16  ;;  %v5334_v18 = vpop.f32.mrb[23].mxu1  ;;  %v6550_v20 = vadd.f32 %v1705_v14, %v6398_v44  ;;  %v5857_v16 = vld [vmem:[#allocation10 + $0x210] ss:$8 sps:$4 sm:$0xff]  }
 0xda4   :  { %v5860_v18 = vld [vmem:[#allocation10 + $0x220] ss:$8 sps:$4 sm:$0xff]  }
 0xda5   :  { %v6553_v21 = vadd.f32 %v1708_v17, %v6400_v45  ;;  %v5862_v17 = vld [vmem:[#allocation10 + $0x224] ss:$8 sps:$4 sm:$0xff]  }
 0xda7   :  { %v5716_v22 = vpack.c.bf16 %v6553_v21, %v6550_v20 }
 0xda9   :  { %5717 = vmatpush3.bf16.msra.mxu0 %v5716_v22  ;;  %v5865_v22 = vld [vmem:[#allocation10 + $0x234] ss:$8 sps:$4 sm:$0xff]  }
 0xdaa   :  { %5718 = vmatprep.subr.bf16.mxu0 %v6188_v19 }
 0xdac   :  { %5340 = vmatmul.mubr.msk.f32.vlgmr.msra.gmra.mrb[26].mxu0 %vm361_vm2, %v6406_v50 }
 0xdad   :  { %5720 = vmatpush3.bf16.msra.mxu0 %v6387_v23  ;;  %5358 = vmatprep.mubr.msk.f32.mxu0 %vm6187_vm0, %v6186_v0 }
 0xdae   :  { %5721 = vmatprep.subr.bf16.mxu0 %v6188_v19 }
 0xdb1   :  { %5723 = vmatpush3.bf16.msra.mxu0 %v6393_v25 }
 0xdb2   :  { %5724 = vmatprep.subr.bf16.mxu0 %v6188_v19 }
 0xdb5   :  { %5726 = vmatpush3.bf16.msra.mxu0 %v6416_v53 }
 0xdb6   :  { %5727 = vmatprep.subr.bf16.mxu0 %v6188_v19 }
 0xdb9   :  { %5729 = vmatpush3.bf16.msra.mxu0 %v6426_v56 }
 0xe7f   :  { %v1779_v44 = vpop.f32.mrb[26].mxu0 }
 0xe80   :  { %v5341_v45 = vpop.f32.mrb[27].mxu0  ;;  %5359 = vmatmul.mubr.msk.f32.vlgmr.msra.gmra.mrb[28].mxu0 %vm179_vm1, %v1779_v44  ;;  %v5863_v44 = vld [vmem:[#allocation10 + $0x230] ss:$8 sps:$4 sm:$0xff]  }
 0xe81   :  { %5394 = vmatprep.mubr.msk.f32.mxu0 %vm554_vm3, %v6433_v63  ;;  %v5866_v45 = vld [vmem:[#allocation10 + $0x240] ss:$8 sps:$4 sm:$0xff]  }
 0xf53   :  { %v1852_v24 = vpop.f32.mrb[28].mxu0 }
 0xf54   :  { %v5360_v26 = vpop.f32.mrb[29].mxu0  ;;  %5361 = vmatprep.subr.mxu1 %v1852_v24 }
 0xf55   :  { %5362 = vmatpush3.msra.mxu1 %v1852_v24  ;;  %v5868_v24 = vld [vmem:[#allocation10 + $0x244] ss:$8 sps:$4 sm:$0xff]   ;;  %v6189_v26 = vmov 0  }
 0xf56   :  { %5364 = vmatmul.mubr.msk.f32.vlgmr.msra.gmra.mrb[24].mxu1 %vm554_vm3, %v6442_v2  ;;  %5730 = vmatprep.subr.bf16.mxu1 %v6188_v19 }
 0xf57   :  { %5370 = vmatprep.mubr.msk.f32.mxu1 %vm6187_vm0, %v6186_v0 }
0x1029   :  { %v5365_v27 = vpop.f32.mrb[24].mxu1 }
0x102a   :  { %v1932_v28 = vsub.f32 %v6553_v21, %v5365_v27  ;;  %v1922_v29 = vpop.f32.mrb[25].mxu1 }
0x102b   :  { %v1931_v30 = vsub.f32 %v6550_v20, %v1922_v29 }
0x102c   :  { %v1934_v31 = vmul.f32 %v1932_v28, %v1932_v28 }
0x102d   :  { %v1933_v63 = vmul.f32 %v1931_v30, %v1931_v30 }
0x102f   :  { %v5731_v32 = vpack.c.bf16 %v1934_v31, %v1933_v63 }
0x1031   :  { %5732 = vmatpush3.bf16.msra.mxu1 %v5731_v32 }
0x1032   :  { %5733 = vmatprep.subr.bf16.mxu1 %v6188_v19 }
0x1034   :  { %5371 = vmatmul.mubr.msk.f32.vlgmr.msra.gmra.mrb[26].mxu1 %vm361_vm2, %v6406_v50 }
0x1035   :  { %5735 = vmatpush3.bf16.msra.mxu1 %v6387_v23  ;;  %5389 = vmatprep.mubr.msk.f32.mxu1 %vm6187_vm0, %v6186_v0 }
0x1036   :  { %5736 = vmatprep.subr.bf16.mxu1 %v6188_v19 }
0x1039   :  { %5738 = vmatpush3.bf16.msra.mxu1 %v6393_v25 }
0x103a   :  { %5739 = vmatprep.subr.bf16.mxu1 %v6188_v19 }
0x103d   :  { %5741 = vmatpush3.bf16.msra.mxu1 %v6416_v53 }
0x103e   :  { %5742 = vmatprep.subr.bf16.mxu1 %v6188_v19 }
0x1041   :  { %5744 = vmatpush3.bf16.msra.mxu1 %v6426_v56 }
0x1042   :  { %2345 = vmatprep.subr.bf16.mxu1 %v5859_v15 }
0x1107   :  { %v2001_v33 = vpop.f32.mrb[26].mxu1 }
0x1108   :  { %v5372_v34 = vpop.f32.mrb[27].mxu1  ;;  %5390 = vmatmul.mubr.msk.f32.vlgmr.msra.gmra.mrb[28].mxu1 %vm179_vm1, %v2001_v33 }
0x1109   :  { %2346 = vmatpush1.bf16.msra.mxu1 %v5857_v16  ;;  %2377 = vmatprep.mubr.bf16.mxu1 %v6189_v26  ;;  %v4793_v34 = vld [vmem:[#allocation9 + $0xd] ss:$0 sm:$0xff] }
0x110a   :  { %2347 = vmatprep.subr.bf16.mxu1 %v5862_v17 }
0x110d   :  { %2348 = vmatpush1.bf16.msra.mxu1 %v5860_v18 }
0x110e   :  { %2349 = vmatprep.subr.bf16.mxu1 %v5865_v22 }
0x1111   :  { %2350 = vmatpush1.bf16.msra.mxu1 %v5863_v44 }
0x1112   :  { %2351 = vmatprep.subr.bf16.mxu1 %v5868_v24 }
0x1115   :  { %2352 = vmatpush1.bf16.msra.mxu1 %v5866_v45 }
0x1116   :  { %5421 = vmatprep.subr.bf16.mxu1 %v6186_v0 }
0x11db   :  { %v2074_v50 = vpop.f32.mrb[28].mxu1 }
0x11dc   :  { %v2075_v35 = vadd.f32 1e-06, %v2074_v50  ;;  %v5391_v36 = vpop.f32.mrb[29].mxu1 }
0x11de   :  { %5939 = vrsqrt.f32 %v2075_v35 }
0x11e8   :  { %v5940_v37 = vpop.eup %5939 }
0x11e9   :  { %5392 = vmatprep.subr.mxu0 %v5940_v37 }
0x11ea   :  { %5393 = vmatpush3.msra.mxu0 %v5940_v37  ;;  %v4794_v37 = vld [vmem:[#allocation9 + $0xe] ss:$0 sm:$0xff] }
0x11eb   :  { %5395 = vmatmul.mubr.msk.f32.vlgmr.msra.gmra.mrb[30].mxu0 %vm554_vm3, %v6442_v2  ;;  %5397 = vmatprep.subr.bf16.mxu0 %v6186_v0 }
0x11ec   :  { %5398 = vmatpush3.bf16.msra.mxu0 %v5853_v38  ;;  %5405 = vmatprep.mubr.msk.bf16.mxu0 %vm6187_vm0, %v6186_v0 }
0x11ed   :  { %5399 = vmatprep.subr.bf16.mxu0 %v6186_v0 }
0x11f0   :  { %5400 = vmatpush3.bf16.msra.mxu0 %v5854_v39 }
0x11f1   :  { %5401 = vmatprep.subr.bf16.mxu0 %v6186_v0 }
0x11f4   :  { %5402 = vmatpush3.bf16.msra.mxu0 %v5855_v40 }
0x11f5   :  { %5403 = vmatprep.subr.bf16.mxu0 %v6186_v0 }
0x11f8   :  { %5404 = vmatpush3.bf16.msra.mxu0 %v5856_v41 }
0x11f9   :  { %5409 = vmatprep.subr.bf16.mxu0 %v6186_v0 }
0x12be   :  { %v5396_v2 = vpop.f32.mrb[30].mxu0 }
0x12bf   :  { %v2155_v43 = vmul.f32 %v5396_v2, %v1932_v28  ;;  %v2145_v46 = vpop.f32.mrb[31].mxu0 }
0x12c0   :  { %v2154_v48 = vmul.f32 %v2145_v46, %v1931_v30 }
0x12c1   :  { %v2162_v49 = vmul.f32 %v4785_v42, %v2155_v43 }
0x12c2   :  { %v2161_v51 = vmul.f32 %v4785_v42, %v2154_v48 }
0x12c3   :  { %v2169_v52 = vadd.f32 %v4786_v47, %v2162_v49 }
0x12c4   :  { %v2168_v54 = vadd.f32 %v4786_v47, %v2161_v51 }
0x12c6   :  { %v2178_v55 = vpack.c.bf16 %v2169_v52, %v2168_v54 }
0x12c8   :  { %5406 = vmatmul.mubr.msk.bf16.vlgmr.msra.gmra.mrb[32].mxu0 %vm179_vm1, %v2178_v55 }
0x12c9   :  { %5411 = vmatprep.mubr.msk.bf16.mxu0 %vm6187_vm0, %v6186_v0 }
0x139b   :  { %v2245_v58 = vpop.f32.mrb[32].mxu0 }
0x139c   :  { %v6604_v59 = vadd.f32 %v4787_v57, %v2245_v58  ;;  %v5407_v60 = vpop.f32.mrb[33].mxu0 }
0x139d   :  { %v2248_v61 = vpop.f32.mrb[34].mxu0 }
0x139e   :  { %v6606_v62 = vadd.f32 %v4787_v57, %v2248_v61  ;;  %v5408_v1 = vpop.f32.mrb[35].mxu0  ;;  %v2252_v3 = vsel %vm179_vm1, %v6604_v59, 0.0 }
0x139f   :  { %2253 = vadd.xlane.f32.xlu0 %v2252_v3 }
0x13a0   :  { %v2255_v4 = vsel %vm179_vm1, %v6606_v62, 0.0 }
0x13a3   :  { %2256 = vadd.xlane.f32.xlu0 %v2255_v4  ;;  %v137_v4 = vld [vmem:[#allocation6] sm:$0xff] }
0x142c   :  { %v2254_v6 = vpop.xlane.xlu0 %2253 }
0x142d   :  { %v2259_v8 = vmul.f32 0.015625, %v2254_v6 }
0x142f   :  { %v2261_v5 = vsub.f32 %v6604_v59, %v2259_v8 }
0x1430   :  { %v2257_v9 = vpop.xlane.xlu0 %2256 }
0x1431   :  { %v2260_v10 = vmul.f32 0.015625, %v2257_v9  ;;  %v2263_v11 = vmul.f32 %v2261_v5, %v2261_v5 }
0x1433   :  { %v2262_v7 = vsub.f32 %v6606_v62, %v2260_v10  ;;  %v2265_v12 = vsel %vm179_vm1, %v2263_v11, 0.0 }
0x1434   :  { %2266 = vadd.xlane.f32.xlu1 %v2265_v12 }
0x1435   :  { %v2264_v13 = vmul.f32 %v2262_v7, %v2262_v7 }
0x1437   :  { %v2268_v14 = vsel %vm179_vm1, %v2264_v13, 0.0 }
0x1438   :  { %2269 = vadd.xlane.f32.xlu1 %v2268_v14 }
0x14c1   :  { %v2267_v27 = vpop.xlane.xlu1 %2266 }
0x14c2   :  { %v2271_v28 = vmul.f32 0.015625, %v2267_v27 }
0x14c4   :  { %v2273_v29 = vadd.f32 1e-05, %v2271_v28 }
0x14c5   :  { %v2270_v30 = vpop.xlane.xlu1 %2269 }
0x14c6   :  { %5941 = vrsqrt.f32 %v2273_v29  ;;  %v2272_v31 = vmul.f32 0.015625, %v2270_v30 }
0x14c8   :  { %v2274_v63 = vadd.f32 1e-05, %v2272_v31 }
0x14ca   :  { %5943 = vrsqrt.f32 %v2274_v63 }
0x14d0   :  { %v5942_v32 = vpop.eup %5941 }
0x14d1   :  { %v2277_v33 = vmul.f32 %v5942_v32, %v2261_v5  ;;  %v138_v5 = vld [vmem:[#allocation6 + $0x8] sm:$0xff] }
0x14d3   :  { %v2284_v35 = vmul.f32 %v4793_v34, %v2277_v33 }
0x14d4   :  { %v5944_v50 = vpop.eup %5943 }
0x14d5   :  { %v2278_v36 = vmul.f32 %v5944_v50, %v2262_v7  ;;  %v2291_v39 = vadd.f32 %v4794_v37, %v2284_v35 }
0x14d7   :  { %v2285_v38 = vmul.f32 %v4793_v34, %v2278_v36 }
0x14d9   :  { %v2292_v40 = vadd.f32 %v4794_v37, %v2285_v38 }
0x14db   :  { %v2301_v41 = vpack.c.bf16 %v2292_v40, %v2291_v39 }
0x14dd   :  { %4803 = vmatmul.mubr.msk.bf16.vlgmr.msra.gmra.mrb[32].mxu1 %vm179_vm1, %v2301_v41 }
0x14de   :  { %5423 = vmatprep.mubr.msk.bf16.mxu1 %vm6187_vm0, %v6186_v0 }
0x15b0   :  { %v2379_v2 = vpop.f32.mrb[32].mxu1 }
0x15b1   :  { %v2381_v42 = vpop.f32.mrb[33].mxu1 }
0x15b2   :  { %v2383_v43 = vpop.f32.mrb[34].mxu1 }
0x15b3   :  { %v2388_v46 = vpack.c.bf16 %v2383_v43, %v2379_v2  ;;  %v2385_v47 = vpop.f32.mrb[35].mxu1 }
0x15b4   :  { %v6621_v48 = vpack.c.bf16 %v2385_v47, %v2381_v42 }
0x15b5   :  { %2509 = vrot.lane.b32.xlu1 %v2388_v46, %s6190_s9  ;;  %2391 = vrot.lane.b32.xlu0 %v2388_v46, %s6191_s20 }
0x15b9   :  { %2507 = vrot.lane.b32.xlu1 %v2388_v46, %s6192_s10  ;;  %2629 = vrot.lane.b32.xlu0 %v2388_v46, %s6193_s18 }
0x15bd   :  { %2631 = vrot.lane.b32.xlu1 %v2388_v46, %s6194_s22  ;;  %2750 = vrot.lane.b32.xlu0 %v2388_v46, %s6195_s29 }
0x15c1   :  { %2752 = vrot.lane.b32.xlu1 %v2388_v46, %s6196_s12 }
0x1627   :  { %v2510_v49 = vpop.permute.xlu1 %2509  ;;  %v2392_v51 = vpop.permute.xlu0 %2391 }
0x1628   :  { %v2515_v52 = vsel %vm361_vm2, %v2510_v49, 0  ;;  %v2397_v54 = vsel %vm361_vm2, %v2392_v51, 0 }
0x1629   :  { %5410 = vmatpush3.bf16.xpose.msra.mxu0 %v2397_v54  ;;  %5422 = vmatpush3.bf16.xpose.msra.mxu1 %v2515_v52 }
0x162a   :  { %5415 = vmatprep.subr.bf16.mxu0 %v6186_v0  ;;  %5433 = vmatprep.subr.bf16.mxu1 %v6186_v0 }
0x162b   :  { %v2508_v55 = vpop.permute.xlu1 %2507  ;;  %v2630_v61 = vpop.permute.xlu0 %2629 }
0x162f   :  { %v2632_v57 = vpop.permute.xlu1 %2631  ;;  %v2751_v3 = vpop.permute.xlu0 %2750 }
0x1630   :  { %v2637_v58 = vsel %vm361_vm2, %v2632_v57, 0  ;;  %5412 = vmatmul.mubr.msk.bf16.vlgmr.msra.gmra.mrb[36].mxu0 %vm361_vm2, %v2388_v46  ;;  %5424 = vmatmul.mubr.msk.bf16.vlgmr.msra.gmra.mrb[36].mxu1 %vm361_vm2, %v2508_v55 }
0x1631   :  { %5416 = vmatpush3.bf16.msra.mxu0 %v6621_v48  ;;  %5434 = vmatpush3.bf16.xpose.msra.mxu1 %v2637_v58 }
0x1632   :  { %5435 = vmatprep.mubr.msk.bf16.mxu1 %vm6187_vm0, %v6186_v0  ;;  %5445 = vmatprep.subr.bf16.mxu1 %v6186_v0 }
0x1633   :  { %5417 = vmatprep.mubr.msk.bf16.mxu0 %vm6187_vm0, %v6186_v0  ;;  %5427 = vmatprep.subr.bf16.mxu0 %v6186_v0  ;;  %v2753_v60 = vpop.permute.xlu1 %2752 }
0x1634   :  { %v2758_v1 = vsel %vm361_vm2, %v2753_v60, 0 }
0x1638   :  { %5436 = vmatmul.mubr.msk.bf16.vlgmr.msra.gmra.mrb[40].mxu1 %vm361_vm2, %v2630_v61 }
0x1639   :  { %5446 = vmatpush3.bf16.xpose.msra.mxu1 %v2758_v1  ;;  %5447 = vmatprep.mubr.msk.bf16.mxu1 %vm6187_vm0, %v6186_v0 }
0x163a   :  { %5457 = vmatprep.subr.bf16.mxu1 %v6186_v0 }
0x1640   :  { %5448 = vmatmul.mubr.msk.bf16.vlgmr.msra.gmra.mrb[44].mxu1 %vm361_vm2, %v2751_v3 }
0x1641   :  { %5465 = vmatprep.mubr.msk.bf16.mxu1 %vm6187_vm0, %v6186_v0 }
0x1703   :  { %v2433_v6 = vpop.f32.mrb[36].mxu0  ;;  %v2551_v8 = vpop.f32.mrb[36].mxu1 }
0x1704   :  { %v2434_v9 = vadd.f32 %v2433_v6, %v137_v4  ;;  %v5413_v10 = vpop.f32.mrb[37].mxu0  ;;  %v5425_v11 = vpop.f32.mrb[37].mxu1  ;;  %v6653_v17 = vadd.f32 %v2551_v8, %v137_v4 }
0x1705   :  { %v2436_v7 = vpop.f32.mrb[38].mxu0  ;;  %v2554_v12 = vpop.f32.mrb[38].mxu1 }
0x1706   :  { %v2437_v13 = vadd.f32 %v2436_v7, %v138_v5  ;;  %v5414_v14 = vpop.f32.mrb[39].mxu0  ;;  %v5426_v15 = vpop.f32.mrb[39].mxu1  ;;  %v2440_v16 = vsel %vm361_vm2, %v2434_v9, -inf  ;;  %v2555_v44 = vadd.f32 %v2554_v12, %v138_v5  ;;  %v2558_v27 = vsel %vm361_vm2, %v6653_v17, -inf }
0x1707   :  { %2441 = vmax.xlane.f32.xlu1 %v2440_v16 }
0x1708   :  { %v2443_v18 = vsel %vm361_vm2, %v2437_v13, -inf  ;;  %v2561_v63 = vsel %vm361_vm2, %v2555_v44, -inf }
0x1709   :  { %2444 = vmax.xlane.f32.xlu0 %v2443_v18 }
0x170b   :  { %v2673_v22 = vpop.f32.mrb[40].mxu1 }
0x170c   :  { %v6656_v45 = vadd.f32 %v2673_v22, %v137_v4  ;;  %v5437_v24 = vpop.f32.mrb[41].mxu1 }
0x170d   :  { %2559 = vmax.xlane.f32.xlu0 %v2558_v27  ;;  %v2676_v28 = vpop.f32.mrb[42].mxu1 }
0x170e   :  { %v5438_v29 = vpop.f32.mrb[43].mxu1  ;;  %v2680_v30 = vsel %vm361_vm2, %v6656_v45, -inf  ;;  %v2677_v31 = vadd.f32 %v2676_v28, %v138_v5 }
0x170f   :  { %2681 = vmax.xlane.f32.xlu1 %v2680_v30 }
0x1710   :  { %v2683_v50 = vsel %vm361_vm2, %v2677_v31, -inf }
0x1711   :  { %2562 = vmax.xlane.f32.xlu0 %v2561_v63 }
0x1713   :  { %v2794_v32 = vpop.f32.mrb[44].mxu1 }
0x1714   :  { %v2795_v33 = vadd.f32 %v2794_v32, %v137_v4  ;;  %v5449_v34 = vpop.f32.mrb[45].mxu1 }
0x1715   :  { %2684 = vmax.xlane.f32.xlu0 %v2683_v50  ;;  %v2797_v35 = vpop.f32.mrb[46].mxu1 }
0x1716   :  { %v2798_v36 = vadd.f32 %v2797_v35, %v138_v5  ;;  %v5450_v37 = vpop.f32.mrb[47].mxu1  ;;  %v2801_v38 = vsel %vm361_vm2, %v2795_v33, -inf }
0x1717   :  { %2802 = vmax.xlane.f32.xlu1 %v2801_v38 }
0x1718   :  { %v2804_v39 = vsel %vm361_vm2, %v2798_v36, -inf }
0x1719   :  { %2805 = vmax.xlane.f32.xlu0 %v2804_v39 }
0x1794   :  { %v2442_v40 = vpop.xlane.xlu1 %2441 }
0x1795   :  { %v2446_v41 = vsub.f32 %v2434_v9, %v2442_v40 }
0x1796   :  { %v2445_v2 = vpop.xlane.xlu0 %2444 }
0x1797   :  { %v2448_v42 = vmul.f32 1.442695, %v2446_v41  ;;  %v2447_v43 = vsub.f32 %v2437_v13, %v2445_v2 }
0x1799   :  { %5945 = vpow2.f32 %v2448_v42  ;;  %v2450_v46 = vmul.f32 1.442695, %v2447_v43 }
0x179a   :  { %v2560_v47 = vpop.xlane.xlu0 %2559 }
0x179b   :  { %5947 = vpow2.f32 %v2450_v46  ;;  %v2564_v12 = vsub.f32 %v6653_v17, %v2560_v47 }
0x179c   :  { %v2682_v13 = vpop.xlane.xlu1 %2681 }
0x179d   :  { %v2566_v14 = vmul.f32 1.442695, %v2564_v12  ;;  %v2686_v15 = vsub.f32 %v6656_v45, %v2682_v13  ;;  %v5870_v12 = vld [vmem:[#allocation10 + $0x260] ss:$8 sps:$4 sm:$0xff]  }
0x179e   :  { %v2563_v49 = vpop.xlane.xlu0 %2562 }
0x179f   :  { %v2565_v51 = vsub.f32 %v2555_v44, %v2563_v49  ;;  %v2688_v18 = vmul.f32 1.442695, %v2686_v15  ;;  %v5871_v15 = vld [vmem:[#allocation10 + $0x270] ss:$8 sps:$4 sm:$0xff]  }
0x17a1   :  { %v2568_v52 = vmul.f32 1.442695, %v2565_v51 }
0x17a2   :  { %v2685_v54 = vpop.xlane.xlu0 %2684 }
0x17a3   :  { %v5946_v55 = vpop.eup %5945  ;;  %5949 = vpow2.f32 %v2568_v52  ;;  %v2687_v57 = vsub.f32 %v2677_v31, %v2685_v54 }
0x17a4   :  { %v2452_v58 = vsel %vm361_vm2, %v5946_v55, 0.0  ;;  %v2803_v16 = vpop.xlane.xlu1 %2802 }
0x17a5   :  { %v5948_v60 = vpop.eup %5947  ;;  %v2690_v61 = vmul.f32 1.442695, %v2687_v57  ;;  %2453 = vadd.xlane.f32.xlu1 %v2452_v58  ;;  %v2807_v22 = vsub.f32 %v2795_v33, %v2803_v16 }
0x17a6   :  { %v2806_v1 = vpop.xlane.xlu0 %2805  ;;  %v2455_v3 = vsel %vm361_vm2, %v5948_v60, 0.0 }
0x17a7   :  { %5951 = vpow2.f32 %v2690_v61  ;;  %v2808_v4 = vsub.f32 %v2798_v36, %v2806_v1  ;;  %2456 = vadd.xlane.f32.xlu0 %v2455_v3  ;;  %v2809_v44 = vmul.f32 1.442695, %v2807_v22  ;;  %v5872_v22 = vld [vmem:[#allocation10 + $0x280] ss:$8 sps:$4 sm:$0xff]  }
0x17a9   :  { %v2811_v6 = vmul.f32 1.442695, %v2808_v4 }
0x17ab   :  { %5953 = vpow2.f32 %v2811_v6 }
0x17ac   :  { %5955 = vpow2.f32 %v2566_v14 }
0x17ad   :  { %v5950_v8 = vpop.eup %5949  ;;  %5957 = vpow2.f32 %v2688_v18 }
0x17ae   :  { %v2573_v5 = vsel %vm361_vm2, %v5950_v8, 0.0  ;;  %5959 = vpow2.f32 %v2809_v44 }
0x17af   :  { %2574 = vadd.xlane.f32.xlu0 %v2573_v5 }
0x17b1   :  { %v6669_v9 = vpop.eup %5951 }
0x17b2   :  { %v2695_v10 = vsel %vm361_vm2, %v6669_v9, 0.0 }
0x17b3   :  { %2696 = vadd.xlane.f32.xlu0 %v2695_v10 }
0x17b5   :  { %v6673_v11 = vpop.eup %5953 }
0x17b6   :  { %2582 = vrot.lane.b32.xlu1 %v6621_v48, %s6192_s10  ;;  %v2816_v7 = vsel %vm361_vm2, %v6673_v11, 0.0  ;;  %v5956_v24 = vpop.eup %5955 }
0x17b7   :  { %2817 = vadd.xlane.f32.xlu0 %v2816_v7  ;;  %v2570_v27 = vsel %vm361_vm2, %v5956_v24, 0.0  ;;  %v5958_v28 = vpop.eup %5957 }
0x17b8   :  { %v2692_v17 = vsel %vm361_vm2, %v5958_v28, 0.0  ;;  %v5960_v29 = vpop.eup %5959 }
0x17b9   :  { %v2813_v45 = vsel %vm361_vm2, %v5960_v29, 0.0 }
0x17cd   :  { %2703 = vrot.lane.b32.xlu0 %v6621_v48, %s6193_s18 }
0x17da   :  { %2571 = vadd.xlane.f32.xlu1 %v2570_v27 }
0x17de   :  { %2693 = vadd.xlane.f32.xlu1 %v2692_v17 }
0x17e2   :  { %2814 = vadd.xlane.f32.xlu1 %v2813_v45 }
0x17f3   :  { %2824 = vrot.lane.b32.xlu1 %v6621_v48, %s6195_s29 }
0x1832   :  { %v2454_v30 = vpop.xlane.xlu1 %2453 }
0x1833   :  { %5961 = vrcp.f32 %v2454_v30 }
0x1834   :  { %v2457_v31 = vpop.xlane.xlu0 %2456 }
0x1835   :  { %5963 = vrcp.f32 %v2457_v31 }
0x1836   :  { %v2583_v35 = vpop.permute.xlu1 %2582 }
0x183c   :  { %v2575_v36 = vpop.xlane.xlu0 %2574 }
0x183d   :  { %v5962_v63 = vpop.eup %5961  ;;  %5965 = vrcp.f32 %v2575_v36 }
0x183e   :  { %v2460_v33 = vmul.f32 %v5962_v63, %v5946_v55 }
0x183f   :  { %v5964_v32 = vpop.eup %5963 }
0x1840   :  { %v2461_v34 = vmul.f32 %v5964_v32, %v5948_v60  ;;  %v2697_v37 = vpop.xlane.xlu0 %2696 }
0x1842   :  { %v2462_v50 = vpack.c.bf16 %v2461_v34, %v2460_v33 }
0x1844   :  { %5418 = vmatmul.mubr.msk.bf16.vlgmr.msra.gmra.mrb[40].mxu0 %vm361_vm2, %v2462_v50  ;;  %v2818_v40 = vpop.xlane.xlu0 %2817 }
0x1845   :  { %5428 = vmatpush3.bf16.msra.mxu0 %v2583_v35  ;;  %5429 = vmatprep.mubr.msk.bf16.mxu0 %vm6187_vm0, %v6186_v0 }
0x1846   :  { %5439 = vmatprep.subr.bf16.mxu0 %v6186_v0 }
0x1847   :  { %v5966_v39 = vpop.eup %5965 }
0x1848   :  { %v2579_v42 = vmul.f32 %v5966_v39, %v5950_v8  ;;  %v2704_v49 = vpop.permute.xlu0 %2703 }
0x1867   :  { %v2572_v48 = vpop.xlane.xlu1 %2571 }
0x1868   :  { %5967 = vrcp.f32 %v2572_v48 }
0x186b   :  { %v2694_v38 = vpop.xlane.xlu1 %2693 }
0x186c   :  { %5969 = vrcp.f32 %v2694_v38 }
0x186d   :  { %5971 = vrcp.f32 %v2697_v37 }
0x186f   :  { %v2815_v41 = vpop.xlane.xlu1 %2814 }
0x1870   :  { %5973 = vrcp.f32 %v2815_v41 }
0x1871   :  { %5975 = vrcp.f32 %v2818_v40 }
0x1872   :  { %v5968_v2 = vpop.eup %5967 }
0x1873   :  { %v2578_v43 = vmul.f32 %v5968_v2, %v5956_v24  ;;  %v2825_v58 = vpop.permute.xlu1 %2824 }
0x1875   :  { %v2580_v46 = vpack.c.bf16 %v2579_v42, %v2578_v43  ;;  %v4812_v43 = vld [vmem:[#allocation9 + $0xf] ss:$0 sm:$0xff] }
0x1876   :  { %v5970_v47 = vpop.eup %5969 }
0x1877   :  { %5430 = vmatmul.mubr.msk.bf16.vlgmr.msra.gmra.mrb[44].mxu0 %vm361_vm2, %v2580_v46  ;;  %v5972_v51 = vpop.eup %5971  ;;  %v2700_v52 = vmul.f32 %v5970_v47, %v5958_v28 }
0x1878   :  { %5440 = vmatpush3.bf16.msra.mxu0 %v2704_v49  ;;  %5441 = vmatprep.mubr.msk.bf16.mxu0 %vm6187_vm0, %v6186_v0  ;;  %v2701_v54 = vmul.f32 %v5972_v51, %v6669_v9  ;;  %v5869_v9 = vld [vmem:[#allocation10 + $0x250] ss:$8 sps:$4 sm:$0xff]  }
0x1879   :  { %5451 = vmatprep.subr.bf16.mxu0 %v6186_v0  ;;  %5458 = vmatpush3.bf16.msra.mxu1 %v5869_v9 }
0x187a   :  { %v2702_v55 = vpack.c.bf16 %v2701_v54, %v2700_v52  ;;  %v5974_v57 = vpop.eup %5973  ;;  %5459 = vmatprep.subr.bf16.mxu1 %v6186_v0 }
0x187b   :  { %v5976_v60 = vpop.eup %5975  ;;  %v2821_v61 = vmul.f32 %v5974_v57, %v5960_v29 }
0x187c   :  { %v2822_v1 = vmul.f32 %v5976_v60, %v6673_v11 }
0x187d   :  { %5460 = vmatpush3.bf16.msra.mxu1 %v5870_v12  ;;  %v5875_v12 = vld [vmem:[#allocation10 + $0x290] ss:$8 sps:$4 sm:$0xff]  }
0x187e   :  { %v2823_v3 = vpack.c.bf16 %v2822_v1, %v2821_v61  ;;  %5461 = vmatprep.subr.bf16.mxu1 %v6186_v0 }
0x187f   :  { %5442 = vmatmul.mubr.msk.bf16.vlgmr.msra.gmra.mrb[48].mxu0 %vm361_vm2, %v2702_v55 }
0x1880   :  { %5452 = vmatpush3.bf16.msra.mxu0 %v2825_v58  ;;  %5453 = vmatprep.mubr.msk.bf16.mxu0 %vm6187_vm0, %v6186_v0 }
0x1881   :  { %5469 = vmatprep.subr.bf16.mxu0 %v6186_v0  ;;  %5462 = vmatpush3.bf16.msra.mxu1 %v5871_v15  ;;  %v5876_v15 = vld [vmem:[#allocation10 + $0x2a0] ss:$8 sps:$4 sm:$0xff]  }
0x1882   :  { %5463 = vmatprep.subr.bf16.mxu1 %v6186_v0 }
0x1885   :  { %5464 = vmatpush3.bf16.msra.mxu1 %v5872_v22 }
0x1886   :  { %5481 = vmatprep.subr.bf16.mxu1 %v6186_v0 }
0x1887   :  { %5454 = vmatmul.mubr.msk.bf16.vlgmr.msra.gmra.mrb[52].mxu0 %vm361_vm2, %v2823_v3 }
0x1888   :  { %5477 = vmatprep.mubr.msk.bf16.mxu0 %vm6187_vm0, %v6186_v0  ;;  %5470 = vmatpush3.bf16.msra.mxu0 %v5875_v12 }
0x1889   :  { %5471 = vmatprep.subr.bf16.mxu0 %v6186_v0 }
0x188c   :  { %5472 = vmatpush3.bf16.msra.mxu0 %v5876_v15 }
0x188d   :  { %5473 = vmatprep.subr.bf16.mxu0 %v6186_v0 }
0x1917   :  { %v2500_v4 = vpop.f32.mrb[40].mxu0 }
0x1918   :  { %v5419_v6 = vpop.f32.mrb[41].mxu0 }
0x1919   :  { %v2503_v8 = vpop.f32.mrb[42].mxu0 }
0x191a   :  { %v5420_v5 = vpop.f32.mrb[43].mxu0 }
0x194a   :  { %v2622_v10 = vpop.f32.mrb[44].mxu0 }
0x194b   :  { %v5431_v7 = vpop.f32.mrb[45].mxu0 }
0x194c   :  { %v2625_v13 = vpop.f32.mrb[46].mxu0  ;;  %v5874_v7 = vld [vmem:[#allocation10 + $0x2e0] ss:$8 sps:$4 sm:$0xff]  }
0x194d   :  { %v5794_v14 = vpack.i.bf16 %v2625_v13, %v2622_v10  ;;  %v5432_v11 = vpop.f32.mrb[47].mxu0  ;;  %v5873_v10 = vld [vmem:[#allocation10 + $0x2d0] ss:$8 sps:$4 sm:$0xff]   ;;  %v124_v13 = vld [vmem:[%s6936_s3] sm:$0xff] }
0x194f   :  { %5795 = vrot.lane.b32.xlu1 %v5794_v14, %s6196_s12  ;;  %v125_v14 = vld [vmem:[%s6936_s3 + $0x8] sm:$0xff] }
0x1950   :  { %v3108_v11 = vpack.c.bf16 %v125_v14, %v124_v13 }
0x1952   :  { %v2743_v16 = vpop.f32.mrb[48].mxu0 }
0x1953   :  { %v5443_v18 = vpop.f32.mrb[49].mxu0 }
0x1954   :  { %v2746_v44 = vpop.f32.mrb[50].mxu0  ;;  %v5878_v18 = vld [vmem:[#allocation10 + $0x2c0] ss:$8 sps:$4 sm:$0xff]  }
0x1955   :  { %v5799_v24 = vpack.i.bf16 %v2746_v44, %v2743_v16  ;;  %v5444_v27 = vpop.f32.mrb[51].mxu0  ;;  %v5877_v16 = vld [vmem:[#allocation10 + $0x2b0] ss:$8 sps:$4 sm:$0xff]  }
0x1956   :  { %5474 = vmatpush3.bf16.msra.mxu0 %v5877_v16 }
0x1957   :  { %5800 = vrot.lane.b32.xlu1 %v5799_v24, %s6194_s22  ;;  %5475 = vmatprep.subr.bf16.mxu0 %v6186_v0 }
0x195a   :  { %v2864_v28 = vpop.f32.mrb[52].mxu0  ;;  %5476 = vmatpush3.bf16.msra.mxu0 %v5878_v18 }
0x195b   :  { %v5455_v17 = vpop.f32.mrb[53].mxu0  ;;  %5489 = vmatprep.subr.bf16.mxu0 %v6186_v0 }
0x195c   :  { %v2867_v29 = vpop.f32.mrb[54].mxu0 }
0x195d   :  { %v5804_v45 = vpack.i.bf16 %v2867_v29, %v2864_v28  ;;  %v5456_v30 = vpop.f32.mrb[55].mxu0 }
0x195e   :  { %v4818_v30 = vld [vmem:[#allocation9 + $0x10] ss:$0 sm:$0xff] }
0x195f   :  { %5805 = vrot.lane.b32.xlu0 %v5804_v45, %s6190_s9 }
0x19c1   :  { %v5796_v31 = vpop.permute.xlu1 %5795 }
0x19c2   :  { %v5798_v32 = vunpack.i.h.bf16 %v5796_v31  ;;  %v5797_v33 = vunpack.i.l.bf16 %v5796_v31 }
0x19c4   :  { %v2896_v36 = vsel %vm361_vm2, %v2503_v8, %v5798_v32  ;;  %v2895_v48 = vsel %vm361_vm2, %v2500_v4, %v5797_v33  ;;  %v4819_v33 = vld [vmem:[#allocation9 + $0x11] ss:$0 sm:$0xff] }
0x19c9   :  { %v5801_v63 = vpop.permute.xlu1 %5800 }
0x19ca   :  { %v5803_v34 = vunpack.i.h.bf16 %v5801_v63  ;;  %v5802_v50 = vunpack.i.l.bf16 %v5801_v63 }
0x19cc   :  { %v2899_v39 = vsel %vm2897_vm4, %v2896_v36, %v5803_v34  ;;  %v2898_v40 = vsel %vm2897_vm4, %v2895_v48, %v5802_v50 }
0x19d1   :  { %v5806_v35 = vpop.permute.xlu0 %5805 }
0x19d2   :  { %v5808_v37 = vunpack.i.h.bf16 %v5806_v35  ;;  %v5807_v38 = vunpack.i.l.bf16 %v5806_v35 }
0x19d4   :  { %v2902_v41 = vsel %vm2900_vm5, %v2899_v39, %v5808_v37  ;;  %v2901_v2 = vsel %vm2900_vm5, %v2898_v40, %v5807_v38 }
0x19d5   :  { %v2911_v42 = vpack.c.bf16 %v2902_v41, %v2901_v2 }
0x19d7   :  { %5466 = vmatmul.mubr.msk.bf16.vlgmr.msra.gmra.mrb[48].mxu1 %vm179_vm1, %v2911_v42 }
0x19d8   :  { %5485 = vmatprep.mubr.msk.bf16.mxu1 %vm6187_vm0, %v6186_v0  ;;  %5482 = vmatpush3.bf16.msra.mxu1 %v5873_v10 }
0x19d9   :  { %5483 = vmatprep.subr.bf16.mxu1 %v6186_v0 }
0x19dc   :  { %5484 = vmatpush3.bf16.msra.mxu1 %v5874_v7 }
0x19dd   :  { %5495 = vmatprep.subr.bf16.mxu1 %v6186_v0 }
0x19df   :  { %5486 = vmatmul.mubr.msk.bf16.vlgmr.msra.gmra.mrb[52].mxu1 %vm2897_vm4, %v3108_v11 }
0x19e0   :  { %5497 = vmatprep.mubr.msk.bf16.mxu1 %vm6187_vm0, %v6186_v0 }
0x1aaa   :  { %v2978_v46 = vpop.f32.mrb[48].mxu1 }
0x1aab   :  { %v2979_v47 = vadd.f32 %v4812_v43, %v2978_v46  ;;  %v5467_v49 = vpop.f32.mrb[49].mxu1 }
0x1aac   :  { %v2981_v51 = vpop.f32.mrb[50].mxu1 }
0x1aad   :  { %v6722_v52 = vadd.f32 %v2979_v47, %v6604_v59  ;;  %v2982_v54 = vadd.f32 %v4812_v43, %v2981_v51  ;;  %v5468_v55 = vpop.f32.mrb[51].mxu1 }
0x1aaf   :  { %v6725_v57 = vadd.f32 %v2982_v54, %v6606_v62  ;;  %v2987_v58 = vsel %vm179_vm1, %v6722_v52, 0.0 }
0x1ab0   :  { %2988 = vadd.xlane.f32.xlu1 %v2987_v58 }
0x1ab1   :  { %v2990_v60 = vsel %vm179_vm1, %v6725_v57, 0.0 }
0x1ab2   :  { %2991 = vadd.xlane.f32.xlu0 %v2990_v60  ;;  %v3158_v48 = vpop.f32.mrb[52].mxu1 }
0x1ab3   :  { %v5487_v37 = vpop.f32.mrb[53].mxu1 }
0x1ab4   :  { %v3161_v38 = vpop.f32.mrb[54].mxu1 }
0x1ab5   :  { %v6753_v39 = vpack.c.bf16 %v3161_v38, %v3158_v48  ;;  %v5488_v40 = vpop.f32.mrb[55].mxu1 }
0x1ab7   :  { %v3171_v41 = vsel %vm361_vm2, %v6753_v39, 0 }
0x1ac1   :  { %3288 = vrot.lane.b32.xlu1 %v6753_v39, %s6192_s10 }
0x1ac5   :  { %3409 = vrot.lane.b32.xlu1 %v6753_v39, %s6193_s18 }
0x1b3d   :  { %v2989_v61 = vpop.xlane.xlu1 %2988 }
0x1b3e   :  { %v2993_v1 = vmul.f32 0.015625, %v2989_v61 }
0x1b3f   :  { %v2992_v3 = vpop.xlane.xlu0 %2991 }
0x1b40   :  { %v2995_v4 = vsub.f32 %v6722_v52, %v2993_v1  ;;  %v2994_v59 = vmul.f32 0.015625, %v2992_v3 }
0x1b41   :  { %v3289_v49 = vpop.permute.xlu1 %3288 }
0x1b42   :  { %v2996_v6 = vsub.f32 %v6725_v57, %v2994_v59  ;;  %v2997_v8 = vmul.f32 %v2995_v4, %v2995_v4  ;;  %v3294_v51 = vsel %vm361_vm2, %v3289_v49, 0 }
0x1b44   :  { %v2999_v62 = vsel %vm179_vm1, %v2997_v8, 0.0  ;;  %v2998_v5 = vmul.f32 %v2996_v6, %v2996_v6 }
0x1b45   :  { %3000 = vadd.xlane.f32.xlu0 %v2999_v62  ;;  %v3410_v54 = vpop.permute.xlu1 %3409 }
0x1b46   :  { %v3002_v9 = vsel %vm179_vm1, %v2998_v5, 0.0  ;;  %v3415_v60 = vsel %vm361_vm2, %v3410_v54, 0 }
0x1b49   :  { %3003 = vadd.xlane.f32.xlu0 %v3002_v9 }
0x1bd2   :  { %v3001_v22 = vpop.xlane.xlu0 %3000 }
0x1bd3   :  { %v3005_v44 = vmul.f32 0.015625, %v3001_v22 }
0x1bd5   :  { %v3007_v24 = vadd.f32 1e-05, %v3005_v44 }
0x1bd6   :  { %v3004_v27 = vpop.xlane.xlu0 %3003 }
0x1bd7   :  { %5977 = vrsqrt.f32 %v3007_v24  ;;  %v3006_v28 = vmul.f32 0.015625, %v3004_v27 }
0x1bd9   :  { %v3008_v17 = vadd.f32 1e-05, %v3006_v28 }
0x1bdb   :  { %5979 = vrsqrt.f32 %v3008_v17 }
0x1be1   :  { %v5978_v29 = vpop.eup %5977 }
0x1be2   :  { %v3011_v45 = vmul.f32 %v5978_v29, %v2995_v4  ;;  %v139_v4 = vld [vmem:[#allocation7] sm:$0xff] }
0x1be4   :  { %v3018_v63 = vmul.f32 %v4818_v30, %v3011_v45 }
0x1be5   :  { %v5980_v31 = vpop.eup %5979 }
0x1be6   :  { %v3012_v32 = vmul.f32 %v5980_v31, %v2996_v6  ;;  %v3025_v50 = vadd.f32 %v4819_v33, %v3018_v63  ;;  %v140_v6 = vld [vmem:[#allocation7 + $0x8] sm:$0xff] }
0x1be8   :  { %v3019_v34 = vmul.f32 %v4818_v30, %v3012_v32 }
0x1bea   :  { %v3026_v35 = vadd.f32 %v4819_v33, %v3019_v34 }
0x1bec   :  { %v3035_v36 = vpack.c.bf16 %v3026_v35, %v3025_v50 }
0x1bee   :  { %5478 = vmatmul.mubr.msk.bf16.vlgmr.msra.gmra.mrb[56].mxu0 %vm179_vm1, %v3035_v36 }
0x1bef   :  { %5491 = vmatprep.mubr.msk.bf16.mxu0 %vm6187_vm0, %v6186_v0  ;;  %5490 = vmatpush3.bf16.xpose.msra.mxu0 %v3171_v41 }
0x1bf0   :  { %5501 = vmatprep.subr.bf16.mxu0 %v6186_v0 }
0x1cc1   :  { %v3097_v2 = vpop.f32.mrb[56].mxu0 }
0x1cc2   :  { %v5479_v42 = vpop.f32.mrb[57].mxu0 }
0x1cc3   :  { %v3100_v43 = vpop.f32.mrb[58].mxu0 }
0x1cc4   :  { %v3165_v46 = vpack.c.bf16 %v3100_v43, %v3097_v2  ;;  %v5480_v47 = vpop.f32.mrb[59].mxu0 }
0x1cc6   :  { %3407 = vrot.lane.b32.xlu1 %v3165_v46, %s6193_s18  ;;  %3286 = vrot.lane.b32.xlu0 %v3165_v46, %s6192_s10 }
0x1cc7   :  { %5492 = vmatmul.mubr.msk.bf16.vlgmr.msra.gmra.mrb[60].mxu0 %vm361_vm2, %v3165_v46 }
0x1cc8   :  { %5502 = vmatpush3.bf16.xpose.msra.mxu0 %v3294_v51  ;;  %5503 = vmatprep.mubr.msk.bf16.mxu0 %vm6187_vm0, %v6186_v0 }
0x1cc9   :  { %5513 = vmatprep.subr.bf16.mxu0 %v6186_v0 }
0x1cca   :  { %3530 = vrot.lane.b32.xlu1 %v6753_v39, %s6195_s29  ;;  %3528 = vrot.lane.b32.xlu0 %v3165_v46, %s6195_s29 }
0x1d38   :  { %v3408_v55 = vpop.permute.xlu1 %3407  ;;  %v3287_v58 = vpop.permute.xlu0 %3286 }
0x1d39   :  { %5504 = vmatmul.mubr.msk.bf16.vlgmr.msra.gmra.mrb[64].mxu0 %vm361_vm2, %v3287_v58 }
0x1d3a   :  { %5514 = vmatpush3.bf16.xpose.msra.mxu0 %v3415_v60  ;;  %5515 = vmatprep.mubr.msk.bf16.mxu0 %vm6187_vm0, %v6186_v0 }
0x1d3b   :  { %5525 = vmatprep.subr.bf16.mxu0 %v6186_v0 }
0x1d3c   :  { %v3531_v61 = vpop.permute.xlu1 %3530  ;;  %v3529_v3 = vpop.permute.xlu0 %3528 }
0x1d3d   :  { %v3536_v1 = vsel %vm361_vm2, %v3531_v61, 0 }
0x1d41   :  { %5516 = vmatmul.mubr.msk.bf16.vlgmr.msra.gmra.mrb[68].mxu0 %vm361_vm2, %v3408_v55 }
0x1d42   :  { %5526 = vmatpush3.bf16.xpose.msra.mxu0 %v3536_v1  ;;  %5527 = vmatprep.mubr.msk.bf16.mxu0 %vm6187_vm0, %v6186_v0 }
0x1d43   :  { %5537 = vmatprep.subr.bf16.mxu0 %v6186_v0 }
0x1d49   :  { %5528 = vmatmul.mubr.msk.bf16.vlgmr.msra.gmra.mrb[72].mxu0 %vm361_vm2, %v3529_v3 }
0x1d4a   :  { %5545 = vmatprep.mubr.msk.bf16.mxu0 %vm6187_vm0, %v6186_v0 }
0x1d9a   :  { %v3207_v59 = vpop.f32.mrb[60].mxu0 }
0x1d9b   :  { %v3208_v8 = vadd.f32 %v3207_v59, %v139_v4  ;;  %v5493_v62 = vpop.f32.mrb[61].mxu0 }
0x1d9c   :  { %v3210_v5 = vpop.f32.mrb[62].mxu0 }
0x1d9d   :  { %v3211_v9 = vadd.f32 %v3210_v5, %v140_v6  ;;  %v5494_v10 = vpop.f32.mrb[63].mxu0  ;;  %v3214_v7 = vsel %vm361_vm2, %v3208_v8, -inf }
0x1d9e   :  { %3215 = vmax.xlane.f32.xlu1 %v3214_v7 }
0x1d9f   :  { %v3217_v12 = vsel %vm361_vm2, %v3211_v9, -inf }
0x1da0   :  { %3218 = vmax.xlane.f32.xlu0 %v3217_v12 }
0x1e0c   :  { %v3330_v13 = vpop.f32.mrb[64].mxu0 }
0x1e0d   :  { %v3331_v14 = vadd.f32 %v3330_v13, %v139_v4  ;;  %v5505_v11 = vpop.f32.mrb[65].mxu0 }
0x1e0e   :  { %v3333_v15 = vpop.f32.mrb[66].mxu0 }
0x1e0f   :  { %v3334_v16 = vadd.f32 %v3333_v15, %v140_v6  ;;  %v5506_v18 = vpop.f32.mrb[67].mxu0  ;;  %v3337_v22 = vsel %vm361_vm2, %v3331_v14, -inf }
0x1e10   :  { %3338 = vmax.xlane.f32.xlu0 %v3337_v22 }
0x1e11   :  { %v3340_v44 = vsel %vm361_vm2, %v3334_v16, -inf }
0x1e14   :  { %3341 = vmax.xlane.f32.xlu0 %v3340_v44  ;;  %v3451_v24 = vpop.f32.mrb[68].mxu0 }
0x1e15   :  { %v3452_v27 = vadd.f32 %v3451_v24, %v139_v4  ;;  %v5517_v28 = vpop.f32.mrb[69].mxu0 }
0x1e16   :  { %v3454_v17 = vpop.f32.mrb[70].mxu0 }
0x1e17   :  { %v3455_v29 = vadd.f32 %v3454_v17, %v140_v6  ;;  %v5518_v45 = vpop.f32.mrb[71].mxu0  ;;  %v3458_v30 = vsel %vm361_vm2, %v3452_v27, -inf }
0x1e18   :  { %3459 = vmax.xlane.f32.xlu1 %v3458_v30 }
0x1e19   :  { %v3461_v31 = vsel %vm361_vm2, %v3455_v29, -inf }
0x1e1a   :  { %3462 = vmax.xlane.f32.xlu0 %v3461_v31 }
0x1e1c   :  { %v3572_v63 = vpop.f32.mrb[72].mxu0 }
0x1e1d   :  { %v3573_v32 = vadd.f32 %v3572_v63, %v139_v4  ;;  %v5529_v33 = vpop.f32.mrb[73].mxu0 }
0x1e1e   :  { %v3575_v34 = vpop.f32.mrb[74].mxu0 }
0x1e1f   :  { %v3576_v50 = vadd.f32 %v3575_v34, %v140_v6  ;;  %v5530_v35 = vpop.f32.mrb[75].mxu0  ;;  %v3579_v36 = vsel %vm361_vm2, %v3573_v32, -inf }
0x1e20   :  { %3580 = vmax.xlane.f32.xlu1 %v3579_v36 }
0x1e21   :  { %v3582_v48 = vsel %vm361_vm2, %v3576_v50, -inf }
0x1e22   :  { %3583 = vmax.xlane.f32.xlu0 %v3582_v48 }
0x1e2b   :  { %v3216_v2 = vpop.xlane.xlu1 %3215 }
0x1e2c   :  { %v3220_v43 = vsub.f32 %v3208_v8, %v3216_v2 }
0x1e2d   :  { %v3219_v37 = vpop.xlane.xlu0 %3218 }
0x1e2e   :  { %v3221_v38 = vsub.f32 %v3211_v9, %v3219_v37  ;;  %v3222_v46 = vmul.f32 1.442695, %v3220_v43 }
0x1e30   :  { %v3224_v40 = vmul.f32 1.442695, %v3221_v38 }
0x1e31   :  { %3238 = vrot.lane.b32.xlu1 %v6753_v39, %s6191_s20 }
0x1e32   :  { %5981 = vpow2.f32 %v3224_v40 }
0x1e33   :  { %5983 = vpow2.f32 %v3222_v46 }
0x1e3c   :  { %v6795_v41 = vpop.eup %5981 }
0x1e3d   :  { %v3229_v42 = vsel %vm361_vm2, %v6795_v41, 0.0  ;;  %v5984_v47 = vpop.eup %5983 }
0x1e3e   :  { %3230 = vadd.xlane.f32.xlu0 %v3229_v42  ;;  %v3226_v49 = vsel %vm361_vm2, %v5984_v47, 0.0 }
0x1e55   :  { %3227 = vadd.xlane.f32.xlu1 %v3226_v49 }
0x1e9d   :  { %v3339_v51 = vpop.xlane.xlu0 %3338 }
0x1e9e   :  { %v3343_v54 = vsub.f32 %v3331_v14, %v3339_v51 }
0x1ea0   :  { %v3345_v55 = vmul.f32 1.442695, %v3343_v54 }
0x1ea1   :  { %v3342_v58 = vpop.xlane.xlu0 %3341 }
0x1ea2   :  { %5985 = vpow2.f32 %v3345_v55  ;;  %v3344_v60 = vsub.f32 %v3334_v16, %v3342_v58 }
0x1ea4   :  { %v3347_v61 = vmul.f32 1.442695, %v3344_v60 }
0x1ea5   :  { %v3460_v1 = vpop.xlane.xlu1 %3459 }
0x1ea6   :  { %5987 = vpow2.f32 %v3347_v61  ;;  %v3464_v3 = vsub.f32 %v3452_v27, %v3460_v1 }
0x1ea7   :  { %v3463_v4 = vpop.xlane.xlu0 %3462 }
0x1ea8   :  { %v3466_v59 = vmul.f32 1.442695, %v3464_v3  ;;  %v3465_v6 = vsub.f32 %v3455_v29, %v3463_v4 }
0x1eaa   :  { %5989 = vpow2.f32 %v3466_v59  ;;  %v3468_v8 = vmul.f32 1.442695, %v3465_v6 }
0x1eac   :  { %v5986_v62 = vpop.eup %5985  ;;  %5991 = vpow2.f32 %v3468_v8 }
0x1ead   :  { %v3581_v5 = vpop.xlane.xlu1 %3580  ;;  %v3349_v9 = vsel %vm361_vm2, %v5986_v62, 0.0 }
0x1eae   :  { %v3585_v10 = vsub.f32 %v3573_v32, %v3581_v5  ;;  %3350 = vadd.xlane.f32.xlu1 %v3349_v9  ;;  %v5879_v5 = vld [vmem:[#allocation10 + $0x2f0] ss:$8 sps:$4 sm:$0xff]  }
0x1eaf   :  { %v3584_v7 = vpop.xlane.xlu0 %3583  ;;  %5538 = vmatpush3.bf16.msra.mxu0 %v5879_v5  ;;  %v5885_v5 = vld [vmem:[#allocation10 + $0x334] ss:$8 sps:$4 sm:$0xff]  }
0x1eb0   :  { %v5988_v12 = vpop.eup %5987  ;;  %v3587_v13 = vmul.f32 1.442695, %v3585_v10  ;;  %v3586_v14 = vsub.f32 %v3576_v50, %v3584_v7  ;;  %5539 = vmatprep.subr.bf16.mxu0 %v6186_v0  ;;  %v5880_v7 = vld [vmem:[#allocation10 + $0x300] ss:$8 sps:$4 sm:$0xff]  }
0x1eb1   :  { %v3239_v11 = vpop.permute.xlu1 %3238  ;;  %v3352_v15 = vsel %vm361_vm2, %v5988_v12, 0.0 }
0x1eb2   :  { %5993 = vpow2.f32 %v3587_v13  ;;  %v3589_v16 = vmul.f32 1.442695, %v3586_v14  ;;  %5496 = vmatpush3.bf16.msra.mxu1 %v3239_v11  ;;  %3353 = vadd.xlane.f32.xlu0 %v3352_v15  ;;  %v5881_v11 = vld [vmem:[#allocation10 + $0x310] ss:$8 sps:$4 sm:$0xff]  }
0x1eb3   :  { %5507 = vmatprep.subr.bf16.mxu1 %v6186_v0  ;;  %5540 = vmatpush3.bf16.msra.mxu0 %v5880_v7  ;;  %v5886_v7 = vld [vmem:[#allocation10 + $0x340] ss:$8 sps:$4 sm:$0xff]  }
0x1eb4   :  { %v5990_v18 = vpop.eup %5989  ;;  %5995 = vpow2.f32 %v3589_v16  ;;  %5541 = vmatprep.subr.bf16.mxu0 %v6186_v0  ;;  %v5882_v16 = vld [vmem:[#allocation10 + $0x320] ss:$8 sps:$4 sm:$0xff]  }
0x1eb5   :  { %v3470_v22 = vsel %vm361_vm2, %v5990_v18, 0.0 }
0x1eb6   :  { %v5992_v44 = vpop.eup %5991  ;;  %3471 = vadd.xlane.f32.xlu1 %v3470_v22 }
0x1eb7   :  { %v3473_v24 = vsel %vm361_vm2, %v5992_v44, 0.0  ;;  %5542 = vmatpush3.bf16.msra.mxu0 %v5881_v11  ;;  %v5894_v11 = vld [vmem:[#allocation10 + $0x364] ss:$8 sps:$4 sm:$0xff]  }
0x1eb8   :  { %3474 = vadd.xlane.f32.xlu0 %v3473_v24  ;;  %5543 = vmatprep.subr.bf16.mxu0 %v6186_v0 }
0x1ebb   :  { %5544 = vmatpush3.bf16.msra.mxu0 %v5882_v16 }
0x1ebc   :  { %v5994_v27 = vpop.eup %5993  ;;  %5549 = vmatprep.subr.bf16.mxu0 %v6186_v0 }
0x1ebd   :  { %v3591_v28 = vsel %vm361_vm2, %v5994_v27, 0.0 }
0x1ebe   :  { %v5996_v17 = vpop.eup %5995  ;;  %3592 = vadd.xlane.f32.xlu1 %v3591_v28 }
0x1ebf   :  { %v3594_v29 = vsel %vm361_vm2, %v5996_v17, 0.0 }
0x1ec0   :  { %3595 = vadd.xlane.f32.xlu0 %v3594_v29 }
0x1ecb   :  { %v3231_v45 = vpop.xlane.xlu0 %3230 }
0x1ecc   :  { %5997 = vrcp.f32 %v3231_v45 }
0x1ecf   :  { %3481 = vrot.lane.b32.xlu1 %v6753_v39, %s6194_s22 }
0x1ed3   :  { %3602 = vrot.lane.b32.xlu1 %v6753_v39, %s6196_s12 }
0x1ed6   :  { %3360 = vrot.lane.b32.xlu0 %v6753_v39, %s6190_s9  ;;  %v5998_v31 = vpop.eup %5997 }
0x1ed7   :  { %v3235_v32 = vmul.f32 %v5998_v31, %v6795_v41 }
0x1ee2   :  { %v3228_v30 = vpop.xlane.xlu1 %3227 }
0x1ee3   :  { %5999 = vrcp.f32 %v3228_v30 }
0x1eed   :  { %v6000_v63 = vpop.eup %5999 }
0x1eee   :  { %v3234_v33 = vmul.f32 %v6000_v63, %v5984_v47 }
0x1ef0   :  { %v3236_v34 = vpack.c.bf16 %v3235_v32, %v3234_v33 }
0x1ef2   :  { %5498 = vmatmul.mubr.msk.bf16.vlgmr.msra.gmra.mrb[56].mxu1 %vm361_vm2, %v3236_v34 }
0x1ef3   :  { %5509 = vmatprep.mubr.msk.bf16.mxu1 %vm6187_vm0, %v6186_v0 }
0x1f3b   :  { %v3351_v35 = vpop.xlane.xlu1 %3350 }
0x1f3f   :  { %v3354_v50 = vpop.xlane.xlu0 %3353 }
0x1f40   :  { %6001 = vrcp.f32 %v3354_v50 }
0x1f41   :  { %6003 = vrcp.f32 %v3351_v35 }
0x1f43   :  { %v3472_v36 = vpop.xlane.xlu1 %3471 }
0x1f45   :  { %v3475_v39 = vpop.xlane.xlu0 %3474 }
0x1f46   :  { %6005 = vrcp.f32 %v3475_v39 }
0x1f47   :  { %6007 = vrcp.f32 %v3472_v36 }
0x1f4a   :  { %v6002_v48 = vpop.eup %6001 }
0x1f4b   :  { %v6004_v38 = vpop.eup %6003  ;;  %v3358_v40 = vmul.f32 %v6002_v48, %v5988_v12  ;;  %v3593_v41 = vpop.xlane.xlu1 %3592 }
0x1f4c   :  { %v3357_v2 = vmul.f32 %v6004_v38, %v5986_v62 }
0x1f4d   :  { %v3596_v37 = vpop.xlane.xlu0 %3595 }
0x1f4e   :  { %6009 = vrcp.f32 %v3596_v37  ;;  %v3359_v43 = vpack.c.bf16 %v3358_v40, %v3357_v2  ;;  %v4836_v2 = vld [vmem:[#allocation9 + $0x12] ss:$0 sm:$0xff] }
0x1f4f   :  { %6011 = vrcp.f32 %v3593_v41  ;;  %v3482_v47 = vpop.permute.xlu1 %3481 }
0x1f50   :  { %v6006_v46 = vpop.eup %6005 }
0x1f51   :  { %v3361_v42 = vpop.permute.xlu0 %3360  ;;  %v6008_v49 = vpop.eup %6007  ;;  %v3479_v51 = vmul.f32 %v6006_v46, %v5992_v44 }
0x1f52   :  { %5508 = vmatpush3.bf16.msra.mxu1 %v3361_v42  ;;  %v3478_v54 = vmul.f32 %v6008_v49, %v5990_v18 }
0x1f53   :  { %5519 = vmatprep.subr.bf16.mxu1 %v6186_v0  ;;  %v3603_v60 = vpop.permute.xlu1 %3602 }
0x1f54   :  { %v3480_v55 = vpack.c.bf16 %v3479_v51, %v3478_v54 }
0x1f55   :  { %5510 = vmatmul.mubr.msk.bf16.vlgmr.msra.gmra.mrb[60].mxu1 %vm361_vm2, %v3359_v43 }
0x1f56   :  { %5520 = vmatpush3.bf16.msra.mxu1 %v3482_v47  ;;  %5521 = vmatprep.mubr.msk.bf16.mxu1 %vm6187_vm0, %v6186_v0 }
0x1f57   :  { %5531 = vmatprep.subr.bf16.mxu1 %v6186_v0 }
0x1f58   :  { %v6010_v58 = vpop.eup %6009 }
0x1f59   :  { %v6012_v61 = vpop.eup %6011  ;;  %v3600_v1 = vmul.f32 %v6010_v58, %v5996_v17 }
0x1f5a   :  { %v3599_v3 = vmul.f32 %v6012_v61, %v5994_v27 }
0x1f5c   :  { %v3601_v4 = vpack.c.bf16 %v3600_v1, %v3599_v3 }
0x1f5d   :  { %5522 = vmatmul.mubr.msk.bf16.vlgmr.msra.gmra.mrb[64].mxu1 %vm361_vm2, %v3480_v55 }
0x1f5e   :  { %5532 = vmatpush3.bf16.msra.mxu1 %v3603_v60  ;;  %5533 = vmatprep.mubr.msk.bf16.mxu1 %vm6187_vm0, %v6186_v0 }
0x1f5f   :  { %3855 = vmatprep.subr.bf16.mxu1 %v5885_v5 }
0x1f65   :  { %5534 = vmatmul.mubr.msk.bf16.vlgmr.msra.gmra.mrb[68].mxu1 %vm361_vm2, %v3601_v4 }
0x1f66   :  { %3887 = vmatprep.mubr.bf16.mxu1 %v6189_v26 }
0x1fc5   :  { %v3278_v59 = vpop.f32.mrb[56].mxu1 }
0x1fc6   :  { %v5499_v6 = vpop.f32.mrb[57].mxu1 }
0x1fc7   :  { %v3281_v8 = vpop.f32.mrb[58].mxu1 }
0x1fc8   :  { %v5500_v62 = vpop.f32.mrb[59].mxu1 }
0x2028   :  { %v3400_v9 = vpop.f32.mrb[60].mxu1 }
0x2029   :  { %v5511_v10 = vpop.f32.mrb[61].mxu1 }
0x202a   :  { %v3403_v12 = vpop.f32.mrb[62].mxu1  ;;  %v5888_v10 = vld [vmem:[#allocation10 + $0x344] ss:$8 sps:$4 sm:$0xff]  }
0x202b   :  { %v5809_v13 = vpack.i.bf16 %v3403_v12, %v3400_v9  ;;  %v5512_v14 = vpop.f32.mrb[63].mxu1  ;;  %v5883_v9 = vld [vmem:[#allocation10 + $0x330] ss:$8 sps:$4 sm:$0xff]   ;;  %v5891_v12 = vld [vmem:[#allocation10 + $0x354] ss:$8 sps:$4 sm:$0xff]  }
0x202c   :  { %3856 = vmatpush1.bf16.msra.mxu1 %v5883_v9  ;;  %v5892_v14 = vld [vmem:[#allocation10 + $0x360] ss:$8 sps:$4 sm:$0xff]  }
0x202d   :  { %5810 = vrot.lane.b32.xlu1 %v5809_v13, %s6196_s12  ;;  %3857 = vmatprep.subr.bf16.mxu1 %v5888_v10  ;;  %v5889_v13 = vld [vmem:[#allocation10 + $0x350] ss:$8 sps:$4 sm:$0xff]  }
0x2030   :  { %v3521_v26 = vpop.f32.mrb[64].mxu1  ;;  %3858 = vmatpush1.bf16.msra.mxu1 %v5886_v7 }
0x2031   :  { %v5523_v15 = vpop.f32.mrb[65].mxu1  ;;  %3859 = vmatprep.subr.bf16.mxu1 %v5891_v12 }
0x2032   :  { %v3524_v18 = vpop.f32.mrb[66].mxu1 }
0x2033   :  { %v5814_v22 = vpack.i.bf16 %v3524_v18, %v3521_v26  ;;  %v5524_v44 = vpop.f32.mrb[67].mxu1 }
0x2034   :  { %3860 = vmatpush1.bf16.msra.mxu1 %v5889_v13 }
0x2035   :  { %5815 = vrot.lane.b32.xlu0 %v5814_v22, %s6194_s22  ;;  %3861 = vmatprep.subr.bf16.mxu1 %v5894_v11 }
0x2038   :  { %v3642_v24 = vpop.f32.mrb[68].mxu1  ;;  %3862 = vmatpush1.bf16.msra.mxu1 %v5892_v14 }
0x2039   :  { %v5535_v27 = vpop.f32.mrb[69].mxu1  ;;  %5569 = vmatprep.subr.bf16.mxu1 %v6186_v0 }
0x203a   :  { %v3645_v28 = vpop.f32.mrb[70].mxu1 }
0x203b   :  { %v5819_v17 = vpack.i.bf16 %v3645_v28, %v3642_v24  ;;  %v5536_v29 = vpop.f32.mrb[71].mxu1  ;;  %v4842_v28 = vld [vmem:[#allocation9 + $0x13] ss:$0 sm:$0xff] }
0x203d   :  { %5820 = vrot.lane.b32.xlu1 %v5819_v17, %s6190_s9 }
0x209f   :  { %v5811_v45 = vpop.permute.xlu1 %5810 }
0x20a0   :  { %v5813_v31 = vunpack.i.h.bf16 %v5811_v45  ;;  %v5812_v63 = vunpack.i.l.bf16 %v5811_v45 }
0x20a2   :  { %v3674_v50 = vsel %vm361_vm2, %v3281_v8, %v5813_v31  ;;  %v3673_v35 = vsel %vm361_vm2, %v3278_v59, %v5812_v63 }
0x20a7   :  { %v5816_v30 = vpop.permute.xlu0 %5815 }
0x20a8   :  { %v5818_v32 = vunpack.i.h.bf16 %v5816_v30  ;;  %v5817_v33 = vunpack.i.l.bf16 %v5816_v30  ;;  %v4843_v30 = vld [vmem:[#allocation9 + $0x14] ss:$0 sm:$0xff] }
0x20aa   :  { %v3676_v48 = vsel %vm2897_vm4, %v3674_v50, %v5818_v32  ;;  %v3675_v37 = vsel %vm2897_vm4, %v3673_v35, %v5817_v33  ;;  %v5896_v50 = vld [vmem:[#allocation10 + $0x380] ss:$8 sps:$4 sm:$0xff]   ;;  %v5897_v35 = vld [vmem:[#allocation10 + $0x390] ss:$8 sps:$4 sm:$0xff]  }
0x20af   :  { %v5821_v34 = vpop.permute.xlu1 %5820 }
0x20b0   :  { %v5823_v39 = vunpack.i.h.bf16 %v5821_v34  ;;  %v5822_v36 = vunpack.i.l.bf16 %v5821_v34  ;;  %v5895_v34 = vld [vmem:[#allocation10 + $0x370] ss:$8 sps:$4 sm:$0xff]  }
0x20b2   :  { %v3678_v38 = vsel %vm2900_vm5, %v3676_v48, %v5823_v39  ;;  %v3677_v40 = vsel %vm2900_vm5, %v3675_v37, %v5822_v36  ;;  %v5898_v39 = vld [vmem:[#allocation10 + $0x3a0] ss:$8 sps:$4 sm:$0xff]   ;;  %v5899_v36 = vld [vmem:[#allocation10 + $0x3b0] ss:$8 sps:$4 sm:$0xff]  }
0x20b3   :  { %v3687_v41 = vpack.c.bf16 %v3678_v38, %v3677_v40  ;;  %v5900_v48 = vld [vmem:[#allocation10 + $0x3c0] ss:$8 sps:$4 sm:$0xff]   ;;  %v5901_v37 = vld [vmem:[#allocation10 + $0x3d0] ss:$8 sps:$4 sm:$0xff]  }
0x20b4   :  { %v5902_v38 = vld [vmem:[#allocation10 + $0x3e0] ss:$8 sps:$4 sm:$0xff]   ;;  %v5903_v40 = vld [vmem:[#allocation10 + $0x3f0] ss:$8 sps:$4 sm:$0xff]  }
0x20b5   :  { %5546 = vmatmul.mubr.msk.bf16.vlgmr.msra.gmra.mrb[76].mxu0 %vm179_vm1, %v3687_v41  ;;  %v5904_v41 = vld [vmem:[#allocation10 + $0x400] ss:$8 sps:$4 sm:$0xff]  }
0x20b6   :  { %5565 = vmatprep.mubr.msk.bf16.mxu0 %vm6187_vm0, %v6186_v0  ;;  %5550 = vmatpush3.bf16.msra.mxu0 %v5895_v34  ;;  %v5905_v34 = vld [vmem:[#allocation10 + $0x410] ss:$8 sps:$4 sm:$0xff]  }
0x20b7   :  { %5551 = vmatprep.subr.bf16.mxu0 %v6186_v0 }
0x20ba   :  { %5552 = vmatpush3.bf16.msra.mxu0 %v5896_v50  ;;  %v5906_v50 = vld [vmem:[#allocation10 + $0x420] ss:$8 sps:$4 sm:$0xff]  }
0x20bb   :  { %5553 = vmatprep.subr.bf16.mxu0 %v6186_v0 }
0x20be   :  { %5554 = vmatpush3.bf16.msra.mxu0 %v5897_v35 }
0x20bf   :  { %5555 = vmatprep.subr.bf16.mxu0 %v6186_v0 }
0x20c2   :  { %5556 = vmatpush3.bf16.msra.mxu0 %v5898_v39 }
0x20c3   :  { %5557 = vmatprep.subr.bf16.mxu0 %v6186_v0 }
0x20c6   :  { %5558 = vmatpush3.bf16.msra.mxu0 %v5899_v36 }
0x20c7   :  { %5559 = vmatprep.subr.bf16.mxu0 %v6186_v0 }
0x20ca   :  { %5560 = vmatpush3.bf16.msra.mxu0 %v5900_v48  ;;  %v4867_v48 = vld [vmem:[#allocation9 + $0x17] ss:$0 sm:$0xff] }
0x20cb   :  { %5561 = vmatprep.subr.bf16.mxu0 %v6186_v0 }
0x20ce   :  { %5562 = vmatpush3.bf16.msra.mxu0 %v5901_v37 }
0x20cf   :  { %5563 = vmatprep.subr.bf16.mxu0 %v6186_v0 }
0x20d2   :  { %5564 = vmatpush3.bf16.msra.mxu0 %v5902_v38 }
0x2188   :  { %v3754_v42 = vpop.f32.mrb[76].mxu0 }
0x2189   :  { %v3755_v43 = vadd.f32 %v4836_v2, %v3754_v42  ;;  %v5547_v46 = vpop.f32.mrb[77].mxu0 }
0x218a   :  { %v3757_v47 = vpop.f32.mrb[78].mxu0 }
0x218b   :  { %v6844_v49 = vadd.f32 %v3755_v43, %v6722_v52  ;;  %v3758_v51 = vadd.f32 %v4836_v2, %v3757_v47  ;;  %v5548_v54 = vpop.f32.mrb[79].mxu0  ;;  %v4854_v2 = vld [vmem:[#allocation9 + $0x16] ss:$0 sm:$0xff] }
0x218d   :  { %v6847_v55 = vadd.f32 %v3758_v51, %v6725_v57  ;;  %v3763_v58 = vsel %vm179_vm1, %v6844_v49, 0.0 }
0x218e   :  { %3764 = vadd.xlane.f32.xlu0 %v3763_v58 }
0x218f   :  { %v3766_v60 = vsel %vm179_vm1, %v6847_v55, 0.0 }
0x2190   :  { %3767 = vadd.xlane.f32.xlu1 %v3766_v60 }
0x221b   :  { %v3765_v61 = vpop.xlane.xlu0 %3764 }
0x221c   :  { %v3769_v1 = vmul.f32 0.015625, %v3765_v61 }
0x221d   :  { %v3768_v3 = vpop.xlane.xlu1 %3767 }
0x221e   :  { %v3771_v4 = vsub.f32 %v6844_v49, %v3769_v1  ;;  %v3770_v52 = vmul.f32 0.015625, %v3768_v3 }
0x2220   :  { %v3772_v59 = vsub.f32 %v6847_v55, %v3770_v52  ;;  %v3773_v6 = vmul.f32 %v3771_v4, %v3771_v4 }
0x2222   :  { %v3775_v57 = vsel %vm179_vm1, %v3773_v6, 0.0  ;;  %v3774_v8 = vmul.f32 %v3772_v59, %v3772_v59 }
0x2223   :  { %3776 = vadd.xlane.f32.xlu0 %v3775_v57 }
0x2224   :  { %v3778_v62 = vsel %vm179_vm1, %v3774_v8, 0.0 }
0x2227   :  { %3779 = vadd.xlane.f32.xlu0 %v3778_v62 }
0x22b0   :  { %v3777_v26 = vpop.xlane.xlu0 %3776 }
0x22b1   :  { %v3781_v15 = vmul.f32 0.015625, %v3777_v26 }
0x22b3   :  { %v3783_v16 = vadd.f32 1e-05, %v3781_v15 }
0x22b4   :  { %v3780_v18 = vpop.xlane.xlu0 %3779 }
0x22b5   :  { %6013 = vrsqrt.f32 %v3783_v16  ;;  %v3782_v22 = vmul.f32 0.015625, %v3780_v18  ;;  %v4853_v18 = vld [vmem:[#allocation9 + $0x15] ss:$0 sm:$0xff] }
0x22b7   :  { %v3784_v44 = vadd.f32 1e-05, %v3782_v22 }
0x22b9   :  { %6015 = vrsqrt.f32 %v3784_v44 }
0x22bf   :  { %v6014_v24 = vpop.eup %6013 }
0x22c0   :  { %v3787_v27 = vmul.f32 %v6014_v24, %v3771_v4 }
0x22c2   :  { %v3794_v29 = vmul.f32 %v4842_v28, %v3787_v27 }
0x22c3   :  { %v6016_v17 = vpop.eup %6015 }
0x22c4   :  { %v3788_v45 = vmul.f32 %v6016_v17, %v3772_v59  ;;  %v3801_v63 = vadd.f32 %v4843_v30, %v3794_v29 }
0x22c6   :  { %v3795_v31 = vmul.f32 %v4842_v28, %v3788_v45 }
0x22c8   :  { %v3802_v32 = vadd.f32 %v4843_v30, %v3795_v31 }
0x22ca   :  { %v3811_v33 = vpack.c.bf16 %v3802_v32, %v3801_v63 }
0x22cc   :  { %4852 = vmatmul.mubr.msk.bf16.vlgmr.msra.gmra.mrb[72].mxu1 %vm179_vm1, %v3811_v33  ;;  %v6873_v33 = vld [vmem:[%s6937_s4] sm:$0xff] }
0x22cd   :  { %5577 = vmatprep.mubr.msk.bf16.mxu1 %vm6187_vm0, %v6186_v0  ;;  %5570 = vmatpush3.bf16.msra.mxu1 %v5903_v40 }
0x22ce   :  { %5571 = vmatprep.subr.bf16.mxu1 %v6186_v0 }
0x22d1   :  { %5572 = vmatpush3.bf16.msra.mxu1 %v5904_v41 }
0x22d2   :  { %5573 = vmatprep.subr.bf16.mxu1 %v6186_v0 }
0x22d5   :  { %5574 = vmatpush3.bf16.msra.mxu1 %v5905_v34 }
0x22d6   :  { %5575 = vmatprep.subr.bf16.mxu1 %v6186_v0 }
0x22d9   :  { %5576 = vmatpush3.bf16.msra.mxu1 %v5906_v50 }
0x22da   :  { %5745 = vmatprep.subr.bf16.mxu1 %v6188_v19 }
0x239f   :  { %v3889_v42 = vpop.f32.mrb[72].mxu1 }
0x23a0   :  { %v3891_v43 = vpop.f32.mrb[73].mxu1  ;;  %v3903_v27 = vadd.f32 %v4853_v18, %v3889_v42 }
0x23a1   :  { %v3910_v46 = vadd.f32 %v4854_v2, %v3891_v43  ;;  %v3893_v47 = vpop.f32.mrb[74].mxu1  ;;  %v4868_v43 = vld [vmem:[#allocation9 + $0x18] ss:$0 sm:$0xff] }
0x23a2   :  { %v3895_v51 = vpop.f32.mrb[75].mxu1  ;;  %v3904_v45 = vadd.f32 %v4853_v18, %v3893_v47  ;;  %v4883_v18 = vld [vmem:[#allocation9 + $0x1a] ss:$0 sm:$0xff] }
0x23a3   :  { %v3912_v54 = vmul.f32 0.044715, %v3910_v46  ;;  %v3911_v58 = vadd.f32 %v4854_v2, %v3895_v51  ;;  %v3940_v22 = vmul.f32 0.5, %v3910_v46 }
0x23a5   :  { %v3914_v60 = vmul.f32 %v3912_v54, %v3910_v46  ;;  %v3913_v61 = vmul.f32 0.044715, %v3911_v58  ;;  %v3941_v28 = vmul.f32 0.5, %v3911_v58 }
0x23a7   :  { %v3916_v1 = vmul.f32 %v3914_v60, %v3910_v46  ;;  %v3915_v3 = vmul.f32 %v3913_v61, %v3911_v58 }
0x23a9   :  { %v3918_v4 = vadd.f32 %v3916_v1, %v3910_v46  ;;  %v3917_v52 = vmul.f32 %v3915_v3, %v3911_v58  ;;  %v6036_v1 = vld [vmem:[#allocation4] sm:$0xff] }
0x23ab   :  { %v3920_v59 = vmul.f32 0.7978846, %v3918_v4  ;;  %v3919_v6 = vadd.f32 %v3917_v52, %v3911_v58 }
0x23ad   :  { %v4855_v57 = vmul.f32 -2.0, %v3920_v59  ;;  %v3921_v8 = vmul.f32 0.7978846, %v3919_v6 }
0x23af   :  { %v3926_v62 = vmul.f32 1.442695, %v4855_v57  ;;  %v4856_v5 = vmul.f32 -2.0, %v3921_v8 }
0x23b1   :  { %6017 = vpow2.f32 %v3926_v62  ;;  %v3928_v9 = vmul.f32 1.442695, %v4856_v5 }
0x23b3   :  { %6019 = vpow2.f32 %v3928_v9 }
0x23bb   :  { %v6018_v10 = vpop.eup %6017 }
0x23bc   :  { %v3930_v7 = vadd.f32 1.0, %v6018_v10 }
0x23bd   :  { %v6020_v12 = vpop.eup %6019 }
0x23be   :  { %v3931_v13 = vadd.f32 1.0, %v6020_v12  ;;  %6021 = vrcp.f32 %v3930_v7  ;;  %v5907_v7 = vld [vmem:[#allocation10 + $0x430] ss:$8 sps:$4 sm:$0xff]   ;;  %v5908_v12 = vld [vmem:[#allocation10 + $0x440] ss:$8 sps:$4 sm:$0xff]  }
0x23c0   :  { %6023 = vrcp.f32 %v3931_v13  ;;  %v5909_v13 = vld [vmem:[#allocation10 + $0x450] ss:$8 sps:$4 sm:$0xff]  }
0x23c8   :  { %v6022_v14 = vpop.eup %6021 }
0x23c9   :  { %v3936_v11 = vmul.f32 2.0, %v6022_v14  ;;  %v5910_v14 = vld [vmem:[#allocation10 + $0x460] ss:$8 sps:$4 sm:$0xff]  }
0x23ca   :  { %v6024_v26 = vpop.eup %6023 }
0x23cb   :  { %v3937_v15 = vmul.f32 2.0, %v6024_v26  ;;  %v4857_v16 = vadd.f32 -1.0, %v3936_v11  ;;  %v4882_v26 = vld [vmem:[#allocation9 + $0x19] ss:$0 sm:$0xff] }
0x23cd   :  { %v4858_v44 = vadd.f32 -1.0, %v3937_v15  ;;  %v3942_v24 = vadd.f32 1.0, %v4857_v16 }
0x23cf   :  { %v3943_v17 = vadd.f32 1.0, %v4858_v44  ;;  %v3944_v29 = vmul.f32 %v3942_v24, %v3940_v22 }
0x23d1   :  { %v3945_v30 = vmul.f32 %v3943_v17, %v3941_v28  ;;  %v3946_v31 = vmul.f32 %v3944_v29, %v3903_v27 }
0x23d3   :  { %v3947_v63 = vmul.f32 %v3945_v30, %v3904_v45 }
0x23d5   :  { %v3964_v32 = vpack.c.bf16 %v3947_v63, %v3946_v31 }
0x23d7   :  { %5566 = vmatmul.mubr.bf16.vlgmr.msra.gmra.mrb[80].mxu0 %v3964_v32 }
0x23d8   :  { %5609 = vmatprep.mubr.msk.f32.mxu0 %vm554_vm3, %v6873_v33 }
0x24aa   :  { %v4047_v35 = vpop.f32.mrb[80].mxu0 }
0x24ab   :  { %v4054_v39 = vadd.f32 %v4047_v35, %v6844_v49  ;;  %v5567_v36 = vpop.f32.mrb[81].mxu0  ;;  %v4886_v35 = vld [vmem:[#allocation9 + $0x1b] ss:$0 sm:$0xff] }
0x24ac   :  { %v4050_v37 = vpop.f32.mrb[82].mxu0 }
0x24ad   :  { %v4055_v38 = vadd.f32 %v4050_v37, %v6847_v55  ;;  %v5568_v40 = vpop.f32.mrb[83].mxu0  ;;  %v4061_v41 = vadd.f32 %v4867_v48, %v4054_v39 }
0x24af   :  { %v4062_v2 = vadd.f32 %v4867_v48, %v4055_v38 }
0x24b1   :  { %v4071_v42 = vpack.c.bf16 %v4062_v2, %v4061_v41 }
0x24b3   :  { %5578 = vmatmul.mubr.msk.bf16.vlgmr.msra.gmra.mrb[76].mxu1 %vm179_vm1, %v4071_v42 }
0x24b4   :  { %5585 = vmatprep.mubr.msk.f32.mxu1 %vm6187_vm0, %v6186_v0 }
0x2586   :  { %v4138_v46 = vpop.f32.mrb[76].mxu1 }
0x2587   :  { %v4139_v47 = vadd.f32 %v4868_v43, %v4138_v46  ;;  %v5579_v51 = vpop.f32.mrb[77].mxu1 }
0x2588   :  { %v4141_v54 = vpop.f32.mrb[78].mxu1 }
0x2589   :  { %v4142_v49 = vadd.f32 %v4868_v43, %v4141_v54  ;;  %v5580_v58 = vpop.f32.mrb[79].mxu1  ;;  %v4145_v60 = vadd.f32 %v4139_v47, %v6550_v20 }
0x258b   :  { %v4146_v55 = vadd.f32 %v4142_v49, %v6553_v21 }
0x258d   :  { %v5746_v61 = vpack.c.bf16 %v4146_v55, %v4145_v60 }
0x258f   :  { %5747 = vmatpush3.bf16.msra.mxu1 %v5746_v61 }
0x2590   :  { %5748 = vmatprep.subr.bf16.mxu1 %v6188_v19 }
0x2592   :  { %5586 = vmatmul.mubr.msk.f32.vlgmr.msra.gmra.mrb[30].mxu1 %vm361_vm2, %v6036_v1 }
0x2593   :  { %5750 = vmatpush3.bf16.msra.mxu1 %v6387_v23  ;;  %5604 = vmatprep.mubr.msk.f32.mxu1 %vm6187_vm0, %v6186_v0 }
0x2594   :  { %5751 = vmatprep.subr.bf16.mxu1 %v6188_v19 }
0x2597   :  { %5753 = vmatpush3.bf16.msra.mxu1 %v6393_v25 }
0x2598   :  { %5754 = vmatprep.subr.bf16.mxu1 %v6188_v19 }
0x259b   :  { %5756 = vmatpush3.bf16.msra.mxu1 %v6416_v53 }
0x259c   :  { %5757 = vmatprep.subr.bf16.mxu1 %v6188_v19 }
0x259f   :  { %5759 = vmatpush3.bf16.msra.mxu1 %v6426_v56 }
0x25a0   :  { %5763 = vmatprep.subr.bf16.mxu1 %v6188_v19 }
0x2665   :  { %v4213_v20 = vpop.f32.mrb[30].mxu1 }
0x2666   :  { %v5587_v21 = vpop.f32.mrb[31].mxu1  ;;  %5605 = vmatmul.mubr.msk.f32.vlgmr.msra.gmra.mrb[80].mxu1 %vm179_vm1, %v4213_v20 }
0x2667   :  { %5765 = vmatpush3.bf16.msra.mxu1 %v6387_v23  ;;  %5635 = vmatprep.mubr.msk.f32.mxu1 %vm6187_vm0, %v6186_v0  ;;  %v6037_v23 = vld [vmem:[%s6937_s4 + $0x8] sm:$0xff] }
0x2668   :  { %5766 = vmatprep.subr.bf16.mxu1 %v6188_v19 }
0x266b   :  { %5768 = vmatpush3.bf16.msra.mxu1 %v6393_v25 }
0x266c   :  { %5769 = vmatprep.subr.bf16.mxu1 %v6188_v19 }
0x266f   :  { %5771 = vmatpush3.bf16.msra.mxu1 %v6416_v53 }
0x2670   :  { %5772 = vmatprep.subr.bf16.mxu1 %v6188_v19 }
0x2673   :  { %5774 = vmatpush3.bf16.msra.mxu1 %v6426_v56 }
0x2739   :  { %v4286_v3 = vpop.f32.mrb[80].mxu1 }
0x273a   :  { %v5606_v4 = vpop.f32.mrb[81].mxu1  ;;  %5607 = vmatprep.subr.mxu0 %v4286_v3 }
0x273b   :  { %5608 = vmatpush3.msra.mxu0 %v4286_v3 }
0x273c   :  { %5610 = vmatmul.mubr.msk.f32.vlgmr.msra.gmra.mrb[84].mxu0 %vm554_vm3, %v6037_v23  ;;  %5760 = vmatprep.subr.bf16.mxu0 %v6188_v19 }
0x273d   :  { %5616 = vmatprep.mubr.msk.f32.mxu0 %vm6187_vm0, %v6186_v0 }
0x280f   :  { %v5611_v25 = vpop.f32.mrb[84].mxu0 }
0x2810   :  { %v4366_v53 = vsub.f32 %v4146_v55, %v5611_v25  ;;  %v4356_v52 = vpop.f32.mrb[85].mxu0 }
0x2811   :  { %v4365_v59 = vsub.f32 %v4145_v60, %v4356_v52 }
0x2812   :  { %v4368_v56 = vmul.f32 %v4366_v53, %v4366_v53 }
0x2813   :  { %v4367_v6 = vmul.f32 %v4365_v59, %v4365_v59 }
0x2815   :  { %v5761_v57 = vpack.c.bf16 %v4368_v56, %v4367_v6 }
0x2817   :  { %5762 = vmatpush3.bf16.msra.mxu0 %v5761_v57 }
0x281a   :  { %5617 = vmatmul.mubr.msk.f32.vlgmr.msra.gmra.mrb[86].mxu0 %vm361_vm2, %v6036_v1 }
0x281b   :  { %5640 = vmatprep.mubr.msk.f32.mxu0 %vm554_vm3, %v6873_v33 }
0x28ed   :  { %v4435_v8 = vpop.f32.mrb[86].mxu0 }
0x28ee   :  { %5636 = vmatmul.mubr.msk.f32.vlgmr.msra.gmra.mrb[82].mxu1 %vm179_vm1, %v4435_v8  ;;  %v5618_v19 = vpop.f32.mrb[87].mxu0 }
0x29c1   :  { %v4508_v62 = vpop.f32.mrb[82].mxu1 }
0x29c2   :  { %v4509_v5 = vadd.f32 1e-05, %v4508_v62  ;;  %v5637_v9 = vpop.f32.mrb[83].mxu1 }
0x29c4   :  { %6025 = vrsqrt.f32 %v4509_v5 }
0x29ce   :  { %v6026_v10 = vpop.eup %6025 }
0x29cf   :  { %5638 = vmatprep.subr.mxu0 %v6026_v10 }
0x29d0   :  { %5639 = vmatpush3.msra.mxu0 %v6026_v10 }
0x29d1   :  { %5641 = vmatmul.mubr.msk.f32.vlgmr.msra.gmra.mrb[88].mxu0 %vm554_vm3, %v6037_v23  ;;  %5643 = vmatprep.subr.bf16.mxu0 %v6186_v0 }
0x29d2   :  { %5651 = vmatprep.mubr.msk.bf16.mxu0 %vm6187_vm0, %v6186_v0  ;;  %5644 = vmatpush3.bf16.msra.mxu0 %v5907_v7 }
0x29d3   :  { %5645 = vmatprep.subr.bf16.mxu0 %v6186_v0 }
0x29d6   :  { %5646 = vmatpush3.bf16.msra.mxu0 %v5908_v12 }
0x29d7   :  { %5647 = vmatprep.subr.bf16.mxu0 %v6186_v0 }
0x29da   :  { %5648 = vmatpush3.bf16.msra.mxu0 %v5909_v13 }
0x29db   :  { %5649 = vmatprep.subr.bf16.mxu0 %v6186_v0 }
0x29de   :  { %5650 = vmatpush3.bf16.msra.mxu0 %v5910_v14 }
0x2aa4   :  { %v5642_v11 = vpop.f32.mrb[88].mxu0 }
0x2aa5   :  { %v4589_v15 = vmul.f32 %v5642_v11, %v4366_v53  ;;  %v4579_v16 = vpop.f32.mrb[89].mxu0 }
0x2aa6   :  { %v4588_v22 = vmul.f32 %v4579_v16, %v4365_v59 }
0x2aa7   :  { %v4596_v44 = vmul.f32 %v4882_v26, %v4589_v15 }
0x2aa8   :  { %v4595_v24 = vmul.f32 %v4882_v26, %v4588_v22 }
0x2aa9   :  { %v4603_v27 = vadd.f32 %v4883_v18, %v4596_v44 }
0x2aaa   :  { %v4602_v28 = vadd.f32 %v4883_v18, %v4595_v24 }
0x2aab   :  { %v4885_v17 = vmul.f32 -1.442695, %v4603_v27 }
0x2aac   :  { %v4884_v29 = vmul.f32 -1.442695, %v4602_v28 }
0x2aad   :  { %6027 = vpow2.f32 %v4885_v17 }
0x2aae   :  { %6029 = vpow2.f32 %v4884_v29 }
0x2ab7   :  { %v6028_v45 = vpop.eup %6027 }
0x2ab8   :  { %v6030_v30 = vpop.eup %6029  ;;  %v4611_v31 = vadd.f32 1.0, %v6028_v45 }
0x2ab9   :  { %v4610_v0 = vadd.f32 1.0, %v6030_v30 }
0x2aba   :  { %6031 = vrcp.f32 %v4611_v31 }
0x2abb   :  { %6033 = vrcp.f32 %v4610_v0 }
0x2ac4   :  { %v6032_v63 = vpop.eup %6031 }
0x2ac5   :  { %v6034_v32 = vpop.eup %6033  ;;  %v4617_v33 = vmul.f32 %v6032_v63, %v4603_v27 }
0x2ac6   :  { %v4616_v34 = vmul.f32 %v6034_v32, %v4602_v28 }
0x2ac8   :  { %v4626_v50 = vpack.c.bf16 %v4617_v33, %v4616_v34 }
0x2aca   :  { %5652 = vmatmul.mubr.msk.bf16.vlgmr.msra.gmra.mrb[92].mxu0 %vm179_vm1, %v4626_v50 }
0x2b9d   :  { %v4693_v39 = vpop.f32.mrb[92].mxu0 }
0x2b9e   :  { %v4694_v36 = vadd.f32 %v4886_v35, %v4693_v39  ;;  %v5653_v48 = vpop.f32.mrb[93].mxu0 }
0x2b9f   :  { %v4696_v37 = vpop.f32.mrb[94].mxu0 }
0x2ba0   :  { %4700 = vst [vmem:[%s6944_s11] sm:$0xff] %v4694_v36  ;;  %v4697_v38 = vadd.f32 %v4886_v35, %v4696_v37  ;;  %v5654_v40 = vpop.f32.mrb[95].mxu0 }
0x2ba2   :  { %4701 = vst [vmem:[%s6944_s11 + $0x8] sm:$0xff] %v4697_v38 }
0x2ba3   :  { %4706 = vsyncpa [#allocation3], 1 }
0x2ba4   :  { %4707 = vsyncpa [#allocation5], 1 }
0x2ba5   :  { %4708 = vsyncpa [#allocation8], 1 }
0x2ba6   :  { %4709 = vsyncpa [#allocation11], 1 }

</bundles_post_ra>
